<compile_context>
chip_gen: v6e
topology: v6e:2x2x1
jax: 0.10.0
libtpu: 0.0.40
codegen_flags: <defaults>
</compile_context>

<pallas_src>
import numpy as np
import jax
import jax.numpy as jnp
from jax.experimental import pallas as pl
from jax.experimental.pallas import tpu as pltpu

# ---------------- problem sizes (small, consistent with the module) ----------
A = 2            # n_agents
B = 8            # batch size (8 -> per-step row slices are full sublane tiles)
T = 8            # sequence length
D_OBS = 16       # per-agent observation dim
H = 32           # recurrent hidden size (communicator / GRU state dim)
H_A = 32         # actor MLP hidden size
N_ACT = 8        # discrete actions per agent
COMM_PASSES = 2  # kwargs['comm_passes']

AH = A * H                 # 64
LOGITS_PAD = 128           # actor output lane-padded to a full vreg width
F32 = jnp.float32

# Flip to jnp.bfloat16 on v6e/v7x for MXU-native operands (f32 accumulation is
# kept via preferred_element_type).  Left at f32 here to keep exact parity with
# the f32 reference at 5e-3 tolerance.
MATMUL_DTYPE = jnp.float32


def _mm(x, w):
    """MXU matmul with f32 accumulation; operands optionally cast to bf16."""
    return jnp.dot(x.astype(MATMUL_DTYPE), w.astype(MATMUL_DTYPE),
                   preferred_element_type=jnp.float32)


# ------------------------------ Pallas kernel --------------------------------
def _commnet_policy_kernel(
    obs_ref, alive_scaled_ref, h0_ref,
    w_enc_ref, b_enc_ref,
    w_msg_ref, b_msg_ref,
    w_gru_ref, b_gru_ref,
    w_a1_ref, b_a1_ref, w_a2_ref, b_a2_ref,
    logits_ref, hT_ref,
    e_scr, h_scr,
):
    # --- obs_encode hoisted out of the recurrence (one big matmul) -----------
    # obs_ref: (T*B, A*D_OBS); w_enc: block-diag (A*D_OBS, A*H)
    e_scr[...] = _mm(obs_ref[...], w_enc_ref[...]) + b_enc_ref[...]

    h = h0_ref[...]                              # (B, A*H) current GRU hidden
    for t in range(T):                           # static, fully unrolled recurrence
        r0 = t * B                               # aligned (B == 8) static offset
        e_t = e_scr[pl.ds(r0, B), :]             # (B, A*H) encoded obs, step t
        amask_t = alive_scaled_ref[pl.ds(r0, B), :]   # (B, A*H) alive/cnt mask

        # --- CommNet message passing: masked mean folded into the matmul -----
        # (msg * amask_t) @ W_msg_stacked == [agg @ W_msg_k]_k with
        # agg = sum_a alive_a * msg_a / max(cnt, 1)  (cnt reciprocal exact, host-side)
        msg = h
        for _ in range(COMM_PASSES):
            msg_recv = jax.nn.relu(
                _mm(msg * amask_t, w_msg_ref[...]) + b_msg_ref[...])   # (B, A*H)
            msg = e_t + msg_recv

        # --- per-agent GRU cell, both gate matmuls fused into one K=128 op ---
        # column layout of w_gru: [r | z | n(x) | n(h)], each A*H wide.
        xh = jnp.concatenate([msg, h], axis=1)                         # (B, 2*A*H)
        g = _mm(xh, w_gru_ref[...]) + b_gru_ref[...]                   # (B, 4*A*H)
        # NOTE: half-vreg gate slices accepted (unpadded 256-col layout, v5e-friendly).
        r = jax.nn.sigmoid(g[:, 0:AH])
        z = jax.nn.sigmoid(g[:, AH:2 * AH])
        n = jnp.tanh(g[:, 2 * AH:3 * AH] + r * g[:, 3 * AH:4 * AH])
        h = (1.0 - z) * n + z * h                                      # (B, A*H)

        h_scr[pl.ds(r0, B), :] = h               # stash for deferred actor head

    hT_ref[...] = h                              # final RNN hidden (written once)

    # --- CategoricalActorNet, amortized over all T*B rows --------------------
    hid = jax.nn.relu(_mm(h_scr[...], w_a1_ref[...]) + b_a1_ref[...])
    # w_a2/b_a2 zero-padded to 128 output lanes -> unmasked full-lane store.
    logits_ref[...] = _mm(hid, w_a2_ref[...]) + b_a2_ref[...]


def _full(shape):
    zeros = (0,) * len(shape)
    return pl.BlockSpec(shape, lambda i, _z=zeros: _z)


def commnet_policy_forward(obs2d, alive_scaled2d, h02d, pk):
    """obs2d: (T*B, A*D_OBS), alive_scaled2d: (T*B, A*H), h02d: (B, A*H)."""
    args = (obs2d, alive_scaled2d, h02d,
            pk['w_enc'], pk['b_enc'], pk['w_msg'], pk['b_msg'],
            pk['w_gru'], pk['b_gru'],
            pk['w_a1'], pk['b_a1'], pk['w_a2'], pk['b_a2'])
    in_specs = [_full(a.shape) for a in args]
    out_specs = [_full((T * B, LOGITS_PAD)), _full((B, AH))]
    out_shape = (
        jax.ShapeDtypeStruct((T * B, LOGITS_PAD), F32),
        jax.ShapeDtypeStruct((B, AH), F32),
    )
    grid_spec = pltpu.PrefetchScalarGridSpec(
        num_scalar_prefetch=0,
        grid=(1,),                                   # single invocation
        in_specs=in_specs,
        out_specs=out_specs,
        scratch_shapes=[pltpu.VMEM((T * B, AH), F32),   # e_scr (encoded obs)
                        pltpu.VMEM((T * B, AH), F32)],  # h_scr (per-step hidden)
    )
    fn = pl.pallas_call(
        _commnet_policy_kernel,
        grid_spec=grid_spec,
        out_shape=out_shape,
        compiler_params=pltpu.CompilerParams(dimension_semantics=("arbitrary",)),
    )
    return fn(*args)


# ------------------------- host-side weight packing ---------------------------
def _block_diag(mats):
    rows = sum(m.shape[0] for m in mats)
    cols = sum(m.shape[1] for m in mats)
    out = jnp.zeros((rows, cols), F32)
    r = c = 0
    for m in mats:
        out = out.at[r:r + m.shape[0], c:c + m.shape[1]].set(m)
        r += m.shape[0]
        c += m.shape[1]
    return out


def pack_params(p):
    """Repack per-agent weights into fused 2-D MXU-friendly weights."""
    # obs_encode (block diagonal over agents)
    w_enc = _block_diag([p['w_enc'][a] for a in range(A)])            # (A*D, A*H)
    b_enc = p['b_enc'].reshape(1, AH)

    # communicator: masked-mean folded in -> stack w_msg vertically A times
    w_msg_row = jnp.concatenate([p['w_msg'][a] for a in range(A)], 1)  # (H, A*H)
    w_msg = jnp.tile(w_msg_row, (A, 1))                                # (A*H, A*H)
    b_msg = p['b_msg'].reshape(1, AH)

    # GRU: single fused (2*A*H, 4*A*H) weight, columns [r | z | n(x) | n(h)]
    wih = [_block_diag([p['w_ih'][g, a] for a in range(A)]) for g in range(3)]
    whh = [_block_diag([p['w_hh'][g, a] for a in range(A)]) for g in range(3)]
    zeros = jnp.zeros((AH, AH), F32)
    top = jnp.concatenate([wih[0], wih[1], wih[2], zeros], 1)          # x rows
    bot = jnp.concatenate([whh[0], whh[1], zeros, whh[2]], 1)          # h rows
    w_gru = jnp.concatenate([top, bot], 0)                             # (128, 256)
    bih = p['b_ih'].reshape(3, AH)
    bhh = p['b_hh'].reshape(3, AH)
    b_gru = jnp.concatenate(
        [bih[0] + bhh[0], bih[1] + bhh[1], bih[2], bhh[2]], 0).reshape(1, 4 * AH)

    # actor head (block diagonal), output lane-padded to 128
    w_a1 = _block_diag([p['w_a1'][a] for a in range(A)])               # (A*H, A*H_A)
    b_a1 = p['b_a1'].reshape(1, A * H_A)
    w_a2_raw = _block_diag([p['w_a2'][a] for a in range(A)])           # (A*H_A, A*N)
    w_a2 = jnp.zeros((A * H_A, LOGITS_PAD), F32).at[:, :A * N_ACT].set(w_a2_raw)
    b_a2 = jnp.zeros((1, LOGITS_PAD), F32).at[:, :A * N_ACT].set(
        p['b_a2'].reshape(1, A * N_ACT))

    return dict(w_enc=w_enc, b_enc=b_enc, w_msg=w_msg, b_msg=b_msg,
                w_gru=w_gru, b_gru=b_gru,
                w_a1=w_a1, b_a1=b_a1, w_a2=w_a2, b_a2=b_a2)


def make_alive_scaled(alive2d):
    """alive2d: (T*B, A) -> (T*B, A*H) lane-dense mask alive_a / max(cnt, 1)."""
    cnt = jnp.maximum(jnp.sum(alive2d, axis=1, keepdims=True), 1.0)    # exact f32
    return jnp.repeat(alive2d / cnt, H, axis=1)                        # agent-major


# ------------------------------ reference (plain JAX) ------------------------
def reference_forward(obs_tab, alive_tab, h0_tab, p):
    """obs_tab: (T,A,B,D), alive_tab: (T,A,B,1), h0_tab: (A,B,H)."""
    h = h0_tab
    logits_all = []
    for t in range(T):
        obs_t, alive_t = obs_tab[t], alive_tab[t]
        e = jnp.einsum('abi,aio->abo', obs_t, p['w_enc']) + p['b_enc'][:, None, :]
        msg_send = h
        for _ in range(COMM_PASSES):
            masked = msg_send * alive_t
            agg = masked.sum(0, keepdims=True)
            cnt = jnp.maximum(alive_t.sum(0, keepdims=True), 1.0)
            agg = jnp.broadcast_to(agg / cnt, msg_send.shape)
            msg_recv = jax.nn.relu(
                jnp.einsum('abi,aio->abo', agg, p['w_msg']) + p['b_msg'][:, None, :])
            msg_send = e + msg_recv
        x = msg_send
        gr = jax.nn.sigmoid(jnp.einsum('abi,aio->abo', x, p['w_ih'][0]) + p['b_ih'][0][:, None, :]
                            + jnp.einsum('abi,aio->abo', h, p['w_hh'][0]) + p['b_hh'][0][:, None, :])
        gz = jax.nn.sigmoid(jnp.einsum('abi,aio->abo', x, p['w_ih'][1]) + p['b_ih'][1][:, None, :]
                            + jnp.einsum('abi,aio->abo', h, p['w_hh'][1]) + p['b_hh'][1][:, None, :])
        gn = jnp.tanh(jnp.einsum('abi,aio->abo', x, p['w_ih'][2]) + p['b_ih'][2][:, None, :]
                      + gr * (jnp.einsum('abi,aio->abo', h, p['w_hh'][2]) + p['b_hh'][2][:, None, :]))
        h = (1.0 - gz) * gn + gz * h
        hid = jax.nn.relu(jnp.einsum('abi,aio->abo', h, p['w_a1']) + p['b_a1'][:, None, :])
        logits = jnp.einsum('abi,aio->abo', hid, p['w_a2']) + p['b_a2'][:, None, :]
        logits_all.append(logits)
    return jnp.stack(logits_all, axis=0), h


# ------------------------------ main ------------------------------------------
if __name__ == "__main__":
    key = jax.random.PRNGKey(0)
    ks = jax.random.split(key, 20)

    def w(k, shape, scale=0.1):
        return (scale * jax.random.normal(k, shape)).astype(F32)

    params = {
        'w_enc': w(ks[0], (A, D_OBS, H)),
        'b_enc': w(ks[1], (A, H)),
        'w_msg': w(ks[2], (A, H, H)),
        'b_msg': w(ks[3], (A, H)),
        'w_ih':  w(ks[4], (3, A, H, H)),
        'b_ih':  w(ks[5], (3, A, H)),
        'w_hh':  w(ks[6], (3, A, H, H)),
        'b_hh':  w(ks[7], (3, A, H)),
        'w_a1':  w(ks[8], (A, H, H_A)),
        'b_a1':  w(ks[9], (A, H_A)),
        'w_a2':  w(ks[10], (A, H_A, N_ACT)),
        'b_a2':  w(ks[11], (A, N_ACT)),
    }

    agent_keys = [f"agent_{i}" for i in range(A)]
    # torch-style inputs: per-agent dicts of (B, T, feat)
    observation = {k: w(ks[12 + i], (B, T, D_OBS), 1.0) for i, k in enumerate(agent_keys)}
    alive_ally = {k: (jax.random.uniform(ks[14 + i], (B, T, 1)) > 0.3).astype(F32)
                  for i, k in enumerate(agent_keys)}
    rnn_hidden = {k: (w(ks[16 + i], (1, B, H)), None) for i, k in enumerate(agent_keys)}

    # ---- pack inputs into the kernel's fused (time*batch, agent*feat) layout --
    obs_stack = jnp.stack([observation[k] for k in agent_keys], axis=2)       # (B,T,A,D)
    obs2d = jnp.transpose(obs_stack, (1, 0, 2, 3)).reshape(T * B, A * D_OBS)  # (T*B, A*D)
    alive_stack = jnp.concatenate([alive_ally[k] for k in agent_keys], -1)    # (B,T,A)
    alive2d = jnp.transpose(alive_stack, (1, 0, 2)).reshape(T * B, A)         # (T*B, A)
    alive_scaled2d = make_alive_scaled(alive2d)                               # (T*B, A*H)
    h02d = jnp.stack([rnn_hidden[k][0][0] for k in agent_keys], 1).reshape(B, AH)

    packed = pack_params(params)

    logits2d_pad, hT2d = jax.block_until_ready(
        commnet_policy_forward(obs2d, alive_scaled2d, h02d, packed))
    logits2d = logits2d_pad[:, :A * N_ACT]       # drop the lane padding host-side

    # ---- unpack back to per-agent / torch-style layouts ------------------------
    logits_tab = jnp.transpose(
        logits2d.reshape(T, B, A, N_ACT), (0, 2, 1, 3))        # (T, A, B, N_ACT)
    hT_tab = jnp.transpose(hT2d.reshape(B, A, H), (1, 0, 2))   # (A, B, H)
    rnn_hidden_new = {k: (hT_tab[i][None], None) for i, k in enumerate(agent_keys)}
    pi_logits = {k: jnp.transpose(logits_tab[:, i], (1, 0, 2)) for i, k in enumerate(agent_keys)}

    # ---- check against a plain-JAX reference in the original per-agent layout --
    obs_tab = jnp.transpose(obs_stack, (1, 2, 0, 3))                   # (T, A, B, D)
    alive_tab = jnp.transpose(alive_stack, (1, 2, 0))[..., None]       # (T, A, B, 1)
    h0_tab = jnp.stack([rnn_hidden[k][0][0] for k in agent_keys], 0)   # (A, B, H)
    ref_logits, ref_hT = reference_forward(obs_tab, alive_tab, h0_tab, params)

    np.testing.assert_allclose(np.asarray(logits_tab), np.asarray(ref_logits),
                               rtol=5e-3, atol=5e-3)
    np.testing.assert_allclose(np.asarray(hT_tab), np.asarray(ref_hT),
                               rtol=5e-3, atol=5e-3)
    assert pi_logits["agent_0"].shape == (B, T, N_ACT)
    assert rnn_hidden_new["agent_0"][0].shape == (1, B, H)

    print("KERNEL_OK")
</pallas_src>

<mosaic_0001>
module attributes {stable_mosaic.version = 11 : i64} {
  func.func @_commnet_policy_kernel(%arg0: i32, %arg1: memref<64x32xf32, #tpu.memory_space<vmem>>, %arg2: memref<64x64xf32, #tpu.memory_space<vmem>>, %arg3: memref<8x64xf32, #tpu.memory_space<vmem>>, %arg4: memref<32x64xf32, #tpu.memory_space<vmem>>, %arg5: memref<1x64xf32, #tpu.memory_space<vmem>>, %arg6: memref<64x64xf32, #tpu.memory_space<vmem>>, %arg7: memref<1x64xf32, #tpu.memory_space<vmem>>, %arg8: memref<128x256xf32, #tpu.memory_space<vmem>>, %arg9: memref<1x256xf32, #tpu.memory_space<vmem>>, %arg10: memref<64x64xf32, #tpu.memory_space<vmem>>, %arg11: memref<1x64xf32, #tpu.memory_space<vmem>>, %arg12: memref<64x128xf32, #tpu.memory_space<vmem>>, %arg13: memref<1x128xf32, #tpu.memory_space<vmem>>, %arg14: memref<64x128xf32, #tpu.memory_space<vmem>>, %arg15: memref<8x64xf32, #tpu.memory_space<vmem>>, %arg16: memref<64x64xf32, #tpu.memory_space<vmem>>, %arg17: memref<64x64xf32, #tpu.memory_space<vmem>>) attributes {dimension_semantics = [#tpu.dimension_semantics<arbitrary>], iteration_bounds = array<i64: 1>, scalar_prefetch = 0 : i64, scratch_operands = 2 : i64, tpu.core_type = #tpu.core_type<tc>, window_params = [{pipeline_mode = #tpu.pipeline_mode<synchronous>, transform_indices = @transform_0, window_bounds = array<i64: 64, 32>}, {pipeline_mode = #tpu.pipeline_mode<synchronous>, transform_indices = @transform_1, window_bounds = array<i64: 64, 64>}, {pipeline_mode = #tpu.pipeline_mode<synchronous>, transform_indices = @transform_2, window_bounds = array<i64: 8, 64>}, {pipeline_mode = #tpu.pipeline_mode<synchronous>, transform_indices = @transform_3, window_bounds = array<i64: 32, 64>}, {pipeline_mode = #tpu.pipeline_mode<synchronous>, transform_indices = @transform_4, window_bounds = array<i64: 1, 64>}, {pipeline_mode = #tpu.pipeline_mode<synchronous>, transform_indices = @transform_5, window_bounds = array<i64: 64, 64>}, {pipeline_mode = #tpu.pipeline_mode<synchronous>, transform_indices = @transform_6, window_bounds = array<i64: 1, 64>}, {pipeline_mode = #tpu.pipeline_mode<synchronous>, transform_indices = @transform_7, window_bounds = array<i64: 128, 256>}, {pipeline_mode = #tpu.pipeline_mode<synchronous>, transform_indices = @transform_8, window_bounds = array<i64: 1, 256>}, {pipeline_mode = #tpu.pipeline_mode<synchronous>, transform_indices = @transform_9, window_bounds = array<i64: 64, 64>}, {pipeline_mode = #tpu.pipeline_mode<synchronous>, transform_indices = @transform_10, window_bounds = array<i64: 1, 64>}, {pipeline_mode = #tpu.pipeline_mode<synchronous>, transform_indices = @transform_11, window_bounds = array<i64: 64, 128>}, {pipeline_mode = #tpu.pipeline_mode<synchronous>, transform_indices = @transform_12, window_bounds = array<i64: 1, 128>}, {pipeline_mode = #tpu.pipeline_mode<synchronous>, transform_indices = @transform_13, window_bounds = array<i64: 64, 128>}, {pipeline_mode = #tpu.pipeline_mode<synchronous>, transform_indices = @transform_14, window_bounds = array<i64: 8, 64>}]} {
    %c0 = arith.constant 0 : index
    %c0_0 = arith.constant 0 : index
    %0 = vector.load %arg1[%c0, %c0_0] : memref<64x32xf32, #tpu.memory_space<vmem>>, vector<64x32xf32>
    %c0_1 = arith.constant 0 : index
    %c0_2 = arith.constant 0 : index
    %1 = vector.load %arg4[%c0_1, %c0_2] : memref<32x64xf32, #tpu.memory_space<vmem>>, vector<32x64xf32>
    %cst = arith.constant dense<0.000000e+00> : vector<64x64xf32>
    %2 = tpu.matmul %0, %1, %cst {dimension_numbers = #tpu.dot_dimension_numbers<[1], [0], [0], [1], [0, 0, 1, 1], [], []>} : vector<64x32xf32>, vector<32x64xf32>, vector<64x64xf32> -> vector<64x64xf32>
    %c0_3 = arith.constant 0 : index
    %c0_4 = arith.constant 0 : index
    %3 = vector.load %arg5[%c0_3, %c0_4] : memref<1x64xf32, #tpu.memory_space<vmem>>, vector<1x64xf32>
    %4 = vector.broadcast %3 : vector<1x64xf32> to vector<64x64xf32>
    %5 = arith.addf %2, %4 : vector<64x64xf32>
    %c0_5 = arith.constant 0 : index
    %c0_6 = arith.constant 0 : index
    %6 = vector.load %arg16[%c0_5, %c0_6] : memref<64x64xf32, #tpu.memory_space<vmem>>, vector<64x64xf32>
    tpu.vector_store %arg16[%c0_5, %c0_6], %5 {strides = array<i32>} : memref<64x64xf32, #tpu.memory_space<vmem>>, vector<64x64xf32>,
    %c0_7 = arith.constant 0 : index
    %c0_8 = arith.constant 0 : index
    %7 = vector.load %arg3[%c0_7, %c0_8] : memref<8x64xf32, #tpu.memory_space<vmem>>, vector<8x64xf32>
    %c0_9 = arith.constant 0 : index
    %c0_10 = arith.constant 0 : index
    %8 = vector.load %arg16[%c0_9, %c0_10] : memref<64x64xf32, #tpu.memory_space<vmem>>, vector<8x64xf32>
    %c0_11 = arith.constant 0 : index
    %c0_12 = arith.constant 0 : index
    %9 = vector.load %arg2[%c0_11, %c0_12] : memref<64x64xf32, #tpu.memory_space<vmem>>, vector<8x64xf32>
    %10 = arith.mulf %7, %9 : vector<8x64xf32>
    %c0_13 = arith.constant 0 : index
    %c0_14 = arith.constant 0 : index
    %11 = vector.load %arg6[%c0_13, %c0_14] : memref<64x64xf32, #tpu.memory_space<vmem>>, vector<64x64xf32>
    %cst_15 = arith.constant dense<0.000000e+00> : vector<8x64xf32>
    %12 = tpu.matmul %10, %11, %cst_15 {dimension_numbers = #tpu.dot_dimension_numbers<[1], [0], [0], [1], [0, 0, 1, 1], [], []>} : vector<8x64xf32>, vector<64x64xf32>, vector<8x64xf32> -> vector<8x64xf32>
    %c0_16 = arith.constant 0 : index
    %c0_17 = arith.constant 0 : index
    %13 = vector.load %arg7[%c0_16, %c0_17] : memref<1x64xf32, #tpu.memory_space<vmem>>, vector<1x64xf32>
    %14 = vector.broadcast %13 : vector<1x64xf32> to vector<8x64xf32>
    %15 = arith.addf %12, %14 : vector<8x64xf32>
    %cst_18 = arith.constant 0.000000e+00 : f32
    %16 = vector.broadcast %cst_18 : f32 to vector<8x64xf32>
    %17 = arith.maximumf %15, %16 : vector<8x64xf32>
    %18 = arith.addf %8, %17 : vector<8x64xf32>
    %19 = arith.mulf %18, %9 : vector<8x64xf32>
    %c0_19 = arith.constant 0 : index
    %c0_20 = arith.constant 0 : index
    %20 = vector.load %arg6[%c0_19, %c0_20] : memref<64x64xf32, #tpu.memory_space<vmem>>, vector<64x64xf32>
    %cst_21 = arith.constant dense<0.000000e+00> : vector<8x64xf32>
    %21 = tpu.matmul %19, %20, %cst_21 {dimension_numbers = #tpu.dot_dimension_numbers<[1], [0], [0], [1], [0, 0, 1, 1], [], []>} : vector<8x64xf32>, vector<64x64xf32>, vector<8x64xf32> -> vector<8x64xf32>
    %c0_22 = arith.constant 0 : index
    %c0_23 = arith.constant 0 : index
    %22 = vector.load %arg7[%c0_22, %c0_23] : memref<1x64xf32, #tpu.memory_space<vmem>>, vector<1x64xf32>
    %23 = vector.broadcast %22 : vector<1x64xf32> to vector<8x64xf32>
    %24 = arith.addf %21, %23 : vector<8x64xf32>
    %cst_24 = arith.constant 0.000000e+00 : f32
    %25 = vector.broadcast %cst_24 : f32 to vector<8x64xf32>
    %26 = arith.maximumf %24, %25 : vector<8x64xf32>
    %27 = arith.addf %8, %26 : vector<8x64xf32>
    %28 = tpu.concatenate %27, %7 in 1 : vector<8x64xf32>, vector<8x64xf32> -> vector<8x128xf32>
    %c0_25 = arith.constant 0 : index
    %c0_26 = arith.constant 0 : index
    %29 = vector.load %arg8[%c0_25, %c0_26] : memref<128x256xf32, #tpu.memory_space<vmem>>, vector<128x256xf32>
    %cst_27 = arith.constant dense<0.000000e+00> : vector<8x256xf32>
    %30 = tpu.matmul %28, %29, %cst_27 {dimension_numbers = #tpu.dot_dimension_numbers<[1], [0], [0], [1], [0, 0, 1, 1], [], []>} : vector<8x128xf32>, vector<128x256xf32>, vector<8x256xf32> -> vector<8x256xf32>
    %c0_28 = arith.constant 0 : index
    %c0_29 = arith.constant 0 : index
    %31 = vector.load %arg9[%c0_28, %c0_29] : memref<1x256xf32, #tpu.memory_space<vmem>>, vector<1x256xf32>
    %32 = vector.broadcast %31 : vector<1x256xf32> to vector<8x256xf32>
    %33 = arith.addf %30, %32 : vector<8x256xf32>
    %34 = vector.extract_strided_slice %33 {offsets = [0, 0], sizes = [8, 64], strides = [1, 1]} : vector<8x256xf32> to vector<8x64xf32>
    %35 = arith.negf %34 : vector<8x64xf32>
    %36 = math.exp %35 : vector<8x64xf32>
    %cst_30 = arith.constant 1.000000e+00 : f32
    %37 = vector.broadcast %cst_30 : f32 to vector<8x64xf32>
    %38 = arith.addf %37, %36 : vector<8x64xf32>
    %39 = arith.divf %37, %38 : vector<8x64xf32>
    %40 = vector.extract_strided_slice %33 {offsets = [0, 64], sizes = [8, 64], strides = [1, 1]} : vector<8x256xf32> to vector<8x64xf32>
    %41 = arith.negf %40 : vector<8x64xf32>
    %42 = math.exp %41 : vector<8x64xf32>
    %cst_31 = arith.constant 1.000000e+00 : f32
    %43 = vector.broadcast %cst_31 : f32 to vector<8x64xf32>
    %44 = arith.addf %43, %42 : vector<8x64xf32>
    %45 = arith.divf %43, %44 : vector<8x64xf32>
    %46 = vector.extract_strided_slice %33 {offsets = [0, 128], sizes = [8, 64], strides = [1, 1]} : vector<8x256xf32> to vector<8x64xf32>
    %47 = vector.extract_strided_slice %33 {offsets = [0, 192], sizes = [8, 64], strides = [1, 1]} : vector<8x256xf32> to vector<8x64xf32>
    %48 = arith.mulf %39, %47 : vector<8x64xf32>
    %49 = arith.addf %46, %48 : vector<8x64xf32>
    %50 = math.tanh %49 : vector<8x64xf32>
    %cst_32 = arith.constant 1.000000e+00 : f32
    %51 = vector.broadcast %cst_32 : f32 to vector<8x64xf32>
    %52 = arith.subf %51, %45 : vector<8x64xf32>
    %53 = arith.mulf %52, %50 : vector<8x64xf32>
    %54 = arith.mulf %45, %7 : vector<8x64xf32>
    %55 = arith.addf %53, %54 : vector<8x64xf32>
    %c0_33 = arith.constant 0 : index
    %c0_34 = arith.constant 0 : index
    %56 = vector.load %arg17[%c0_33, %c0_34] : memref<64x64xf32, #tpu.memory_space<vmem>>, vector<8x64xf32>
    tpu.vector_store %arg17[%c0_33, %c0_34], %55 {strides = array<i32>} : memref<64x64xf32, #tpu.memory_space<vmem>>, vector<8x64xf32>,
    %c8 = arith.constant 8 : index
    %c0_35 = arith.constant 0 : index
    %57 = vector.load %arg16[%c8, %c0_35] : memref<64x64xf32, #tpu.memory_space<vmem>>, vector<8x64xf32>
    %c8_36 = arith.constant 8 : index
    %c0_37 = arith.constant 0 : index
    %58 = vector.load %arg2[%c8_36, %c0_37] : memref<64x64xf32, #tpu.memory_space<vmem>>, vector<8x64xf32>
    %59 = arith.mulf %55, %58 : vector<8x64xf32>
    %c0_38 = arith.constant 0 : index
    %c0_39 = arith.constant 0 : index
    %60 = vector.load %arg6[%c0_38, %c0_39] : memref<64x64xf32, #tpu.memory_space<vmem>>, vector<64x64xf32>
    %cst_40 = arith.constant dense<0.000000e+00> : vector<8x64xf32>
    %61 = tpu.matmul %59, %60, %cst_40 {dimension_numbers = #tpu.dot_dimension_numbers<[1], [0], [0], [1], [0, 0, 1, 1], [], []>} : vector<8x64xf32>, vector<64x64xf32>, vector<8x64xf32> -> vector<8x64xf32>
    %c0_41 = arith.constant 0 : index
    %c0_42 = arith.constant 0 : index
    %62 = vector.load %arg7[%c0_41, %c0_42] : memref<1x64xf32, #tpu.memory_space<vmem>>, vector<1x64xf32>
    %63 = vector.broadcast %62 : vector<1x64xf32> to vector<8x64xf32>
    %64 = arith.addf %61, %63 : vector<8x64xf32>
    %cst_43 = arith.constant 0.000000e+00 : f32
    %65 = vector.broadcast %cst_43 : f32 to vector<8x64xf32>
    %66 = arith.maximumf %64, %65 : vector<8x64xf32>
    %67 = arith.addf %57, %66 : vector<8x64xf32>
    %68 = arith.mulf %67, %58 : vector<8x64xf32>
    %c0_44 = arith.constant 0 : index
    %c0_45 = arith.constant 0 : index
    %69 = vector.load %arg6[%c0_44, %c0_45] : memref<64x64xf32, #tpu.memory_space<vmem>>, vector<64x64xf32>
    %cst_46 = arith.constant dense<0.000000e+00> : vector<8x64xf32>
    %70 = tpu.matmul %68, %69, %cst_46 {dimension_numbers = #tpu.dot_dimension_numbers<[1], [0], [0], [1], [0, 0, 1, 1], [], []>} : vector<8x64xf32>, vector<64x64xf32>, vector<8x64xf32> -> vector<8x64xf32>
    %c0_47 = arith.constant 0 : index
    %c0_48 = arith.constant 0 : index
    %71 = vector.load %arg7[%c0_47, %c0_48] : memref<1x64xf32, #tpu.memory_space<vmem>>, vector<1x64xf32>
    %72 = vector.broadcast %71 : vector<1x64xf32> to vector<8x64xf32>
    %73 = arith.addf %70, %72 : vector<8x64xf32>
    %cst_49 = arith.constant 0.000000e+00 : f32
    %74 = vector.broadcast %cst_49 : f32 to vector<8x64xf32>
    %75 = arith.maximumf %73, %74 : vector<8x64xf32>
    %76 = arith.addf %57, %75 : vector<8x64xf32>
    %77 = tpu.concatenate %76, %55 in 1 : vector<8x64xf32>, vector<8x64xf32> -> vector<8x128xf32>
    %c0_50 = arith.constant 0 : index
    %c0_51 = arith.constant 0 : index
    %78 = vector.load %arg8[%c0_50, %c0_51] : memref<128x256xf32, #tpu.memory_space<vmem>>, vector<128x256xf32>
    %cst_52 = arith.constant dense<0.000000e+00> : vector<8x256xf32>
    %79 = tpu.matmul %77, %78, %cst_52 {dimension_numbers = #tpu.dot_dimension_numbers<[1], [0], [0], [1], [0, 0, 1, 1], [], []>} : vector<8x128xf32>, vector<128x256xf32>, vector<8x256xf32> -> vector<8x256xf32>
    %c0_53 = arith.constant 0 : index
    %c0_54 = arith.constant 0 : index
    %80 = vector.load %arg9[%c0_53, %c0_54] : memref<1x256xf32, #tpu.memory_space<vmem>>, vector<1x256xf32>
    %81 = vector.broadcast %80 : vector<1x256xf32> to vector<8x256xf32>
    %82 = arith.addf %79, %81 : vector<8x256xf32>
    %83 = vector.extract_strided_slice %82 {offsets = [0, 0], sizes = [8, 64], strides = [1, 1]} : vector<8x256xf32> to vector<8x64xf32>
    %84 = arith.negf %83 : vector<8x64xf32>
    %85 = math.exp %84 : vector<8x64xf32>
    %cst_55 = arith.constant 1.000000e+00 : f32
    %86 = vector.broadcast %cst_55 : f32 to vector<8x64xf32>
    %87 = arith.addf %86, %85 : vector<8x64xf32>
    %88 = arith.divf %86, %87 : vector<8x64xf32>
    %89 = vector.extract_strided_slice %82 {offsets = [0, 64], sizes = [8, 64], strides = [1, 1]} : vector<8x256xf32> to vector<8x64xf32>
    %90 = arith.negf %89 : vector<8x64xf32>
    %91 = math.exp %90 : vector<8x64xf32>
    %cst_56 = arith.constant 1.000000e+00 : f32
    %92 = vector.broadcast %cst_56 : f32 to vector<8x64xf32>
    %93 = arith.addf %92, %91 : vector<8x64xf32>
    %94 = arith.divf %92, %93 : vector<8x64xf32>
    %95 = vector.extract_strided_slice %82 {offsets = [0, 128], sizes = [8, 64], strides = [1, 1]} : vector<8x256xf32> to vector<8x64xf32>
    %96 = vector.extract_strided_slice %82 {offsets = [0, 192], sizes = [8, 64], strides = [1, 1]} : vector<8x256xf32> to vector<8x64xf32>
    %97 = arith.mulf %88, %96 : vector<8x64xf32>
    %98 = arith.addf %95, %97 : vector<8x64xf32>
    %99 = math.tanh %98 : vector<8x64xf32>
    %cst_57 = arith.constant 1.000000e+00 : f32
    %100 = vector.broadcast %cst_57 : f32 to vector<8x64xf32>
    %101 = arith.subf %100, %94 : vector<8x64xf32>
    %102 = arith.mulf %101, %99 : vector<8x64xf32>
    %103 = arith.mulf %94, %55 : vector<8x64xf32>
    %104 = arith.addf %102, %103 : vector<8x64xf32>
    %c8_58 = arith.constant 8 : index
    %c0_59 = arith.constant 0 : index
    %105 = vector.load %arg17[%c8_58, %c0_59] : memref<64x64xf32, #tpu.memory_space<vmem>>, vector<8x64xf32>
    tpu.vector_store %arg17[%c8_58, %c0_59], %104 {strides = array<i32>} : memref<64x64xf32, #tpu.memory_space<vmem>>, vector<8x64xf32>,
    %c16 = arith.constant 16 : index
    %c0_60 = arith.constant 0 : index
    %106 = vector.load %arg16[%c16, %c0_60] : memref<64x64xf32, #tpu.memory_space<vmem>>, vector<8x64xf32>
    %c16_61 = arith.constant 16 : index
    %c0_62 = arith.constant 0 : index
    %107 = vector.load %arg2[%c16_61, %c0_62] : memref<64x64xf32, #tpu.memory_space<vmem>>, vector<8x64xf32>
    %108 = arith.mulf %104, %107 : vector<8x64xf32>
    %c0_63 = arith.constant 0 : index
    %c0_64 = arith.constant 0 : index
    %109 = vector.load %arg6[%c0_63, %c0_64] : memref<64x64xf32, #tpu.memory_space<vmem>>, vector<64x64xf32>
    %cst_65 = arith.constant dense<0.000000e+00> : vector<8x64xf32>
    %110 = tpu.matmul %108, %109, %cst_65 {dimension_numbers = #tpu.dot_dimension_numbers<[1], [0], [0], [1], [0, 0, 1, 1], [], []>} : vector<8x64xf32>, vector<64x64xf32>, vector<8x64xf32> -> vector<8x64xf32>
    %c0_66 = arith.constant 0 : index
    %c0_67 = arith.constant 0 : index
    %111 = vector.load %arg7[%c0_66, %c0_67] : memref<1x64xf32, #tpu.memory_space<vmem>>, vector<1x64xf32>
    %112 = vector.broadcast %111 : vector<1x64xf32> to vector<8x64xf32>
    %113 = arith.addf %110, %112 : vector<8x64xf32>
    %cst_68 = arith.constant 0.000000e+00 : f32
    %114 = vector.broadcast %cst_68 : f32 to vector<8x64xf32>
    %115 = arith.maximumf %113, %114 : vector<8x64xf32>
    %116 = arith.addf %106, %115 : vector<8x64xf32>
    %117 = arith.mulf %116, %107 : vector<8x64xf32>
    %c0_69 = arith.constant 0 : index
    %c0_70 = arith.constant 0 : index
    %118 = vector.load %arg6[%c0_69, %c0_70] : memref<64x64xf32, #tpu.memory_space<vmem>>, vector<64x64xf32>
    %cst_71 = arith.constant dense<0.000000e+00> : vector<8x64xf32>
    %119 = tpu.matmul %117, %118, %cst_71 {dimension_numbers = #tpu.dot_dimension_numbers<[1], [0], [0], [1], [0, 0, 1, 1], [], []>} : vector<8x64xf32>, vector<64x64xf32>, vector<8x64xf32> -> vector<8x64xf32>
    %c0_72 = arith.constant 0 : index
    %c0_73 = arith.constant 0 : index
    %120 = vector.load %arg7[%c0_72, %c0_73] : memref<1x64xf32, #tpu.memory_space<vmem>>, vector<1x64xf32>
    %121 = vector.broadcast %120 : vector<1x64xf32> to vector<8x64xf32>
    %122 = arith.addf %119, %121 : vector<8x64xf32>
    %cst_74 = arith.constant 0.000000e+00 : f32
    %123 = vector.broadcast %cst_74 : f32 to vector<8x64xf32>
    %124 = arith.maximumf %122, %123 : vector<8x64xf32>
    %125 = arith.addf %106, %124 : vector<8x64xf32>
    %126 = tpu.concatenate %125, %104 in 1 : vector<8x64xf32>, vector<8x64xf32> -> vector<8x128xf32>
    %c0_75 = arith.constant 0 : index
    %c0_76 = arith.constant 0 : index
    %127 = vector.load %arg8[%c0_75, %c0_76] : memref<128x256xf32, #tpu.memory_space<vmem>>, vector<128x256xf32>
    %cst_77 = arith.constant dense<0.000000e+00> : vector<8x256xf32>
    %128 = tpu.matmul %126, %127, %cst_77 {dimension_numbers = #tpu.dot_dimension_numbers<[1], [0], [0], [1], [0, 0, 1, 1], [], []>} : vector<8x128xf32>, vector<128x256xf32>, vector<8x256xf32> -> vector<8x256xf32>
    %c0_78 = arith.constant 0 : index
    %c0_79 = arith.constant 0 : index
    %129 = vector.load %arg9[%c0_78, %c0_79] : memref<1x256xf32, #tpu.memory_space<vmem>>, vector<1x256xf32>
    %130 = vector.broadcast %129 : vector<1x256xf32> to vector<8x256xf32>
    %131 = arith.addf %128, %130 : vector<8x256xf32>
    %132 = vector.extract_strided_slice %131 {offsets = [0, 0], sizes = [8, 64], strides = [1, 1]} : vector<8x256xf32> to vector<8x64xf32>
    %133 = arith.negf %132 : vector<8x64xf32>
    %134 = math.exp %133 : vector<8x64xf32>
    %cst_80 = arith.constant 1.000000e+00 : f32
    %135 = vector.broadcast %cst_80 : f32 to vector<8x64xf32>
    %136 = arith.addf %135, %134 : vector<8x64xf32>
    %137 = arith.divf %135, %136 : vector<8x64xf32>
    %138 = vector.extract_strided_slice %131 {offsets = [0, 64], sizes = [8, 64], strides = [1, 1]} : vector<8x256xf32> to vector<8x64xf32>
    %139 = arith.negf %138 : vector<8x64xf32>
    %140 = math.exp %139 : vector<8x64xf32>
    %cst_81 = arith.constant 1.000000e+00 : f32
    %141 = vector.broadcast %cst_81 : f32 to vector<8x64xf32>
    %142 = arith.addf %141, %140 : vector<8x64xf32>
    %143 = arith.divf %141, %142 : vector<8x64xf32>
    %144 = vector.extract_strided_slice %131 {offsets = [0, 128], sizes = [8, 64], strides = [1, 1]} : vector<8x256xf32> to vector<8x64xf32>
    %145 = vector.extract_strided_slice %131 {offsets = [0, 192], sizes = [8, 64], strides = [1, 1]} : vector<8x256xf32> to vector<8x64xf32>
    %146 = arith.mulf %137, %145 : vector<8x64xf32>
    %147 = arith.addf %144, %146 : vector<8x64xf32>
    %148 = math.tanh %147 : vector<8x64xf32>
    %cst_82 = arith.constant 1.000000e+00 : f32
    %149 = vector.broadcast %cst_82 : f32 to vector<8x64xf32>
    %150 = arith.subf %149, %143 : vector<8x64xf32>
    %151 = arith.mulf %150, %148 : vector<8x64xf32>
    %152 = arith.mulf %143, %104 : vector<8x64xf32>
    %153 = arith.addf %151, %152 : vector<8x64xf32>
    %c16_83 = arith.constant 16 : index
    %c0_84 = arith.constant 0 : index
    %154 = vector.load %arg17[%c16_83, %c0_84] : memref<64x64xf32, #tpu.memory_space<vmem>>, vector<8x64xf32>
    tpu.vector_store %arg17[%c16_83, %c0_84], %153 {strides = array<i32>} : memref<64x64xf32, #tpu.memory_space<vmem>>, vector<8x64xf32>,
    %c24 = arith.constant 24 : index
    %c0_85 = arith.constant 0 : index
    %155 = vector.load %arg16[%c24, %c0_85] : memref<64x64xf32, #tpu.memory_space<vmem>>, vector<8x64xf32>
    %c24_86 = arith.constant 24 : index
    %c0_87 = arith.constant 0 : index
    %156 = vector.load %arg2[%c24_86, %c0_87] : memref<64x64xf32, #tpu.memory_space<vmem>>, vector<8x64xf32>
    %157 = arith.mulf %153, %156 : vector<8x64xf32>
    %c0_88 = arith.constant 0 : index
    %c0_89 = arith.constant 0 : index
    %158 = vector.load %arg6[%c0_88, %c0_89] : memref<64x64xf32, #tpu.memory_space<vmem>>, vector<64x64xf32>
    %cst_90 = arith.constant dense<0.000000e+00> : vector<8x64xf32>
    %159 = tpu.matmul %157, %158, %cst_90 {dimension_numbers = #tpu.dot_dimension_numbers<[1], [0], [0], [1], [0, 0, 1, 1], [], []>} : vector<8x64xf32>, vector<64x64xf32>, vector<8x64xf32> -> vector<8x64xf32>
    %c0_91 = arith.constant 0 : index
    %c0_92 = arith.constant 0 : index
    %160 = vector.load %arg7[%c0_91, %c0_92] : memref<1x64xf32, #tpu.memory_space<vmem>>, vector<1x64xf32>
    %161 = vector.broadcast %160 : vector<1x64xf32> to vector<8x64xf32>
    %162 = arith.addf %159, %161 : vector<8x64xf32>
    %cst_93 = arith.constant 0.000000e+00 : f32
    %163 = vector.broadcast %cst_93 : f32 to vector<8x64xf32>
    %164 = arith.maximumf %162, %163 : vector<8x64xf32>
    %165 = arith.addf %155, %164 : vector<8x64xf32>
    %166 = arith.mulf %165, %156 : vector<8x64xf32>
    %c0_94 = arith.constant 0 : index
    %c0_95 = arith.constant 0 : index
    %167 = vector.load %arg6[%c0_94, %c0_95] : memref<64x64xf32, #tpu.memory_space<vmem>>, vector<64x64xf32>
    %cst_96 = arith.constant dense<0.000000e+00> : vector<8x64xf32>
    %168 = tpu.matmul %166, %167, %cst_96 {dimension_numbers = #tpu.dot_dimension_numbers<[1], [0], [0], [1], [0, 0, 1, 1], [], []>} : vector<8x64xf32>, vector<64x64xf32>, vector<8x64xf32> -> vector<8x64xf32>
    %c0_97 = arith.constant 0 : index
    %c0_98 = arith.constant 0 : index
    %169 = vector.load %arg7[%c0_97, %c0_98] : memref<1x64xf32, #tpu.memory_space<vmem>>, vector<1x64xf32>
    %170 = vector.broadcast %169 : vector<1x64xf32> to vector<8x64xf32>
    %171 = arith.addf %168, %170 : vector<8x64xf32>
    %cst_99 = arith.constant 0.000000e+00 : f32
    %172 = vector.broadcast %cst_99 : f32 to vector<8x64xf32>
    %173 = arith.maximumf %171, %172 : vector<8x64xf32>
    %174 = arith.addf %155, %173 : vector<8x64xf32>
    %175 = tpu.concatenate %174, %153 in 1 : vector<8x64xf32>, vector<8x64xf32> -> vector<8x128xf32>
    %c0_100 = arith.constant 0 : index
    %c0_101 = arith.constant 0 : index
    %176 = vector.load %arg8[%c0_100, %c0_101] : memref<128x256xf32, #tpu.memory_space<vmem>>, vector<128x256xf32>
    %cst_102 = arith.constant dense<0.000000e+00> : vector<8x256xf32>
    %177 = tpu.matmul %175, %176, %cst_102 {dimension_numbers = #tpu.dot_dimension_numbers<[1], [0], [0], [1], [0, 0, 1, 1], [], []>} : vector<8x128xf32>, vector<128x256xf32>, vector<8x256xf32> -> vector<8x256xf32>
    %c0_103 = arith.constant 0 : index
    %c0_104 = arith.constant 0 : index
    %178 = vector.load %arg9[%c0_103, %c0_104] : memref<1x256xf32, #tpu.memory_space<vmem>>, vector<1x256xf32>
    %179 = vector.broadcast %178 : vector<1x256xf32> to vector<8x256xf32>
    %180 = arith.addf %177, %179 : vector<8x256xf32>
    %181 = vector.extract_strided_slice %180 {offsets = [0, 0], sizes = [8, 64], strides = [1, 1]} : vector<8x256xf32> to vector<8x64xf32>
    %182 = arith.negf %181 : vector<8x64xf32>
    %183 = math.exp %182 : vector<8x64xf32>
    %cst_105 = arith.constant 1.000000e+00 : f32
    %184 = vector.broadcast %cst_105 : f32 to vector<8x64xf32>
    %185 = arith.addf %184, %183 : vector<8x64xf32>
    %186 = arith.divf %184, %185 : vector<8x64xf32>
    %187 = vector.extract_strided_slice %180 {offsets = [0, 64], sizes = [8, 64], strides = [1, 1]} : vector<8x256xf32> to vector<8x64xf32>
    %188 = arith.negf %187 : vector<8x64xf32>
    %189 = math.exp %188 : vector<8x64xf32>
    %cst_106 = arith.constant 1.000000e+00 : f32
    %190 = vector.broadcast %cst_106 : f32 to vector<8x64xf32>
    %191 = arith.addf %190, %189 : vector<8x64xf32>
    %192 = arith.divf %190, %191 : vector<8x64xf32>
    %193 = vector.extract_strided_slice %180 {offsets = [0, 128], sizes = [8, 64], strides = [1, 1]} : vector<8x256xf32> to vector<8x64xf32>
    %194 = vector.extract_strided_slice %180 {offsets = [0, 192], sizes = [8, 64], strides = [1, 1]} : vector<8x256xf32> to vector<8x64xf32>
    %195 = arith.mulf %186, %194 : vector<8x64xf32>
    %196 = arith.addf %193, %195 : vector<8x64xf32>
    %197 = math.tanh %196 : vector<8x64xf32>
    %cst_107 = arith.constant 1.000000e+00 : f32
    %198 = vector.broadcast %cst_107 : f32 to vector<8x64xf32>
    %199 = arith.subf %198, %192 : vector<8x64xf32>
    %200 = arith.mulf %199, %197 : vector<8x64xf32>
    %201 = arith.mulf %192, %153 : vector<8x64xf32>
    %202 = arith.addf %200, %201 : vector<8x64xf32>
    %c24_108 = arith.constant 24 : index
    %c0_109 = arith.constant 0 : index
    %203 = vector.load %arg17[%c24_108, %c0_109] : memref<64x64xf32, #tpu.memory_space<vmem>>, vector<8x64xf32>
    tpu.vector_store %arg17[%c24_108, %c0_109], %202 {strides = array<i32>} : memref<64x64xf32, #tpu.memory_space<vmem>>, vector<8x64xf32>,
    %c32 = arith.constant 32 : index
    %c0_110 = arith.constant 0 : index
    %204 = vector.load %arg16[%c32, %c0_110] : memref<64x64xf32, #tpu.memory_space<vmem>>, vector<8x64xf32>
    %c32_111 = arith.constant 32 : index
    %c0_112 = arith.constant 0 : index
    %205 = vector.load %arg2[%c32_111, %c0_112] : memref<64x64xf32, #tpu.memory_space<vmem>>, vector<8x64xf32>
    %206 = arith.mulf %202, %205 : vector<8x64xf32>
    %c0_113 = arith.constant 0 : index
    %c0_114 = arith.constant 0 : index
    %207 = vector.load %arg6[%c0_113, %c0_114] : memref<64x64xf32, #tpu.memory_space<vmem>>, vector<64x64xf32>
    %cst_115 = arith.constant dense<0.000000e+00> : vector<8x64xf32>
    %208 = tpu.matmul %206, %207, %cst_115 {dimension_numbers = #tpu.dot_dimension_numbers<[1], [0], [0], [1], [0, 0, 1, 1], [], []>} : vector<8x64xf32>, vector<64x64xf32>, vector<8x64xf32> -> vector<8x64xf32>
    %c0_116 = arith.constant 0 : index
    %c0_117 = arith.constant 0 : index
    %209 = vector.load %arg7[%c0_116, %c0_117] : memref<1x64xf32, #tpu.memory_space<vmem>>, vector<1x64xf32>
    %210 = vector.broadcast %209 : vector<1x64xf32> to vector<8x64xf32>
    %211 = arith.addf %208, %210 : vector<8x64xf32>
    %cst_118 = arith.constant 0.000000e+00 : f32
    %212 = vector.broadcast %cst_118 : f32 to vector<8x64xf32>
    %213 = arith.maximumf %211, %212 : vector<8x64xf32>
    %214 = arith.addf %204, %213 : vector<8x64xf32>
    %215 = arith.mulf %214, %205 : vector<8x64xf32>
    %c0_119 = arith.constant 0 : index
    %c0_120 = arith.constant 0 : index
    %216 = vector.load %arg6[%c0_119, %c0_120] : memref<64x64xf32, #tpu.memory_space<vmem>>, vector<64x64xf32>
    %cst_121 = arith.constant dense<0.000000e+00> : vector<8x64xf32>
    %217 = tpu.matmul %215, %216, %cst_121 {dimension_numbers = #tpu.dot_dimension_numbers<[1], [0], [0], [1], [0, 0, 1, 1], [], []>} : vector<8x64xf32>, vector<64x64xf32>, vector<8x64xf32> -> vector<8x64xf32>
    %c0_122 = arith.constant 0 : index
    %c0_123 = arith.constant 0 : index
    %218 = vector.load %arg7[%c0_122, %c0_123] : memref<1x64xf32, #tpu.memory_space<vmem>>, vector<1x64xf32>
    %219 = vector.broadcast %218 : vector<1x64xf32> to vector<8x64xf32>
    %220 = arith.addf %217, %219 : vector<8x64xf32>
    %cst_124 = arith.constant 0.000000e+00 : f32
    %221 = vector.broadcast %cst_124 : f32 to vector<8x64xf32>
    %222 = arith.maximumf %220, %221 : vector<8x64xf32>
    %223 = arith.addf %204, %222 : vector<8x64xf32>
    %224 = tpu.concatenate %223, %202 in 1 : vector<8x64xf32>, vector<8x64xf32> -> vector<8x128xf32>
    %c0_125 = arith.constant 0 : index
    %c0_126 = arith.constant 0 : index
    %225 = vector.load %arg8[%c0_125, %c0_126] : memref<128x256xf32, #tpu.memory_space<vmem>>, vector<128x256xf32>
    %cst_127 = arith.constant dense<0.000000e+00> : vector<8x256xf32>
    %226 = tpu.matmul %224, %225, %cst_127 {dimension_numbers = #tpu.dot_dimension_numbers<[1], [0], [0], [1], [0, 0, 1, 1], [], []>} : vector<8x128xf32>, vector<128x256xf32>, vector<8x256xf32> -> vector<8x256xf32>
    %c0_128 = arith.constant 0 : index
    %c0_129 = arith.constant 0 : index
    %227 = vector.load %arg9[%c0_128, %c0_129] : memref<1x256xf32, #tpu.memory_space<vmem>>, vector<1x256xf32>
    %228 = vector.broadcast %227 : vector<1x256xf32> to vector<8x256xf32>
    %229 = arith.addf %226, %228 : vector<8x256xf32>
    %230 = vector.extract_strided_slice %229 {offsets = [0, 0], sizes = [8, 64], strides = [1, 1]} : vector<8x256xf32> to vector<8x64xf32>
    %231 = arith.negf %230 : vector<8x64xf32>
    %232 = math.exp %231 : vector<8x64xf32>
    %cst_130 = arith.constant 1.000000e+00 : f32
    %233 = vector.broadcast %cst_130 : f32 to vector<8x64xf32>
    %234 = arith.addf %233, %232 : vector<8x64xf32>
    %235 = arith.divf %233, %234 : vector<8x64xf32>
    %236 = vector.extract_strided_slice %229 {offsets = [0, 64], sizes = [8, 64], strides = [1, 1]} : vector<8x256xf32> to vector<8x64xf32>
    %237 = arith.negf %236 : vector<8x64xf32>
    %238 = math.exp %237 : vector<8x64xf32>
    %cst_131 = arith.constant 1.000000e+00 : f32
    %239 = vector.broadcast %cst_131 : f32 to vector<8x64xf32>
    %240 = arith.addf %239, %238 : vector<8x64xf32>
    %241 = arith.divf %239, %240 : vector<8x64xf32>
    %242 = vector.extract_strided_slice %229 {offsets = [0, 128], sizes = [8, 64], strides = [1, 1]} : vector<8x256xf32> to vector<8x64xf32>
    %243 = vector.extract_strided_slice %229 {offsets = [0, 192], sizes = [8, 64], strides = [1, 1]} : vector<8x256xf32> to vector<8x64xf32>
    %244 = arith.mulf %235, %243 : vector<8x64xf32>
    %245 = arith.addf %242, %244 : vector<8x64xf32>
    %246 = math.tanh %245 : vector<8x64xf32>
    %cst_132 = arith.constant 1.000000e+00 : f32
    %247 = vector.broadcast %cst_132 : f32 to vector<8x64xf32>
    %248 = arith.subf %247, %241 : vector<8x64xf32>
    %249 = arith.mulf %248, %246 : vector<8x64xf32>
    %250 = arith.mulf %241, %202 : vector<8x64xf32>
    %251 = arith.addf %249, %250 : vector<8x64xf32>
    %c32_133 = arith.constant 32 : index
    %c0_134 = arith.constant 0 : index
    %252 = vector.load %arg17[%c32_133, %c0_134] : memref<64x64xf32, #tpu.memory_space<vmem>>, vector<8x64xf32>
    tpu.vector_store %arg17[%c32_133, %c0_134], %251 {strides = array<i32>} : memref<64x64xf32, #tpu.memory_space<vmem>>, vector<8x64xf32>,
    %c40 = arith.constant 40 : index
    %c0_135 = arith.constant 0 : index
    %253 = vector.load %arg16[%c40, %c0_135] : memref<64x64xf32, #tpu.memory_space<vmem>>, vector<8x64xf32>
    %c40_136 = arith.constant 40 : index
    %c0_137 = arith.constant 0 : index
    %254 = vector.load %arg2[%c40_136, %c0_137] : memref<64x64xf32, #tpu.memory_space<vmem>>, vector<8x64xf32>
    %255 = arith.mulf %251, %254 : vector<8x64xf32>
    %c0_138 = arith.constant 0 : index
    %c0_139 = arith.constant 0 : index
    %256 = vector.load %arg6[%c0_138, %c0_139] : memref<64x64xf32, #tpu.memory_space<vmem>>, vector<64x64xf32>
    %cst_140 = arith.constant dense<0.000000e+00> : vector<8x64xf32>
    %257 = tpu.matmul %255, %256, %cst_140 {dimension_numbers = #tpu.dot_dimension_numbers<[1], [0], [0], [1], [0, 0, 1, 1], [], []>} : vector<8x64xf32>, vector<64x64xf32>, vector<8x64xf32> -> vector<8x64xf32>
    %c0_141 = arith.constant 0 : index
    %c0_142 = arith.constant 0 : index
    %258 = vector.load %arg7[%c0_141, %c0_142] : memref<1x64xf32, #tpu.memory_space<vmem>>, vector<1x64xf32>
    %259 = vector.broadcast %258 : vector<1x64xf32> to vector<8x64xf32>
    %260 = arith.addf %257, %259 : vector<8x64xf32>
    %cst_143 = arith.constant 0.000000e+00 : f32
    %261 = vector.broadcast %cst_143 : f32 to vector<8x64xf32>
    %262 = arith.maximumf %260, %261 : vector<8x64xf32>
    %263 = arith.addf %253, %262 : vector<8x64xf32>
    %264 = arith.mulf %263, %254 : vector<8x64xf32>
    %c0_144 = arith.constant 0 : index
    %c0_145 = arith.constant 0 : index
    %265 = vector.load %arg6[%c0_144, %c0_145] : memref<64x64xf32, #tpu.memory_space<vmem>>, vector<64x64xf32>
    %cst_146 = arith.constant dense<0.000000e+00> : vector<8x64xf32>
    %266 = tpu.matmul %264, %265, %cst_146 {dimension_numbers = #tpu.dot_dimension_numbers<[1], [0], [0], [1], [0, 0, 1, 1], [], []>} : vector<8x64xf32>, vector<64x64xf32>, vector<8x64xf32> -> vector<8x64xf32>
    %c0_147 = arith.constant 0 : index
    %c0_148 = arith.constant 0 : index
    %267 = vector.load %arg7[%c0_147, %c0_148] : memref<1x64xf32, #tpu.memory_space<vmem>>, vector<1x64xf32>
    %268 = vector.broadcast %267 : vector<1x64xf32> to vector<8x64xf32>
    %269 = arith.addf %266, %268 : vector<8x64xf32>
    %cst_149 = arith.constant 0.000000e+00 : f32
    %270 = vector.broadcast %cst_149 : f32 to vector<8x64xf32>
    %271 = arith.maximumf %269, %270 : vector<8x64xf32>
    %272 = arith.addf %253, %271 : vector<8x64xf32>
    %273 = tpu.concatenate %272, %251 in 1 : vector<8x64xf32>, vector<8x64xf32> -> vector<8x128xf32>
    %c0_150 = arith.constant 0 : index
    %c0_151 = arith.constant 0 : index
    %274 = vector.load %arg8[%c0_150, %c0_151] : memref<128x256xf32, #tpu.memory_space<vmem>>, vector<128x256xf32>
    %cst_152 = arith.constant dense<0.000000e+00> : vector<8x256xf32>
    %275 = tpu.matmul %273, %274, %cst_152 {dimension_numbers = #tpu.dot_dimension_numbers<[1], [0], [0], [1], [0, 0, 1, 1], [], []>} : vector<8x128xf32>, vector<128x256xf32>, vector<8x256xf32> -> vector<8x256xf32>
    %c0_153 = arith.constant 0 : index
    %c0_154 = arith.constant 0 : index
    %276 = vector.load %arg9[%c0_153, %c0_154] : memref<1x256xf32, #tpu.memory_space<vmem>>, vector<1x256xf32>
    %277 = vector.broadcast %276 : vector<1x256xf32> to vector<8x256xf32>
    %278 = arith.addf %275, %277 : vector<8x256xf32>
    %279 = vector.extract_strided_slice %278 {offsets = [0, 0], sizes = [8, 64], strides = [1, 1]} : vector<8x256xf32> to vector<8x64xf32>
    %280 = arith.negf %279 : vector<8x64xf32>
    %281 = math.exp %280 : vector<8x64xf32>
    %cst_155 = arith.constant 1.000000e+00 : f32
    %282 = vector.broadcast %cst_155 : f32 to vector<8x64xf32>
    %283 = arith.addf %282, %281 : vector<8x64xf32>
    %284 = arith.divf %282, %283 : vector<8x64xf32>
    %285 = vector.extract_strided_slice %278 {offsets = [0, 64], sizes = [8, 64], strides = [1, 1]} : vector<8x256xf32> to vector<8x64xf32>
    %286 = arith.negf %285 : vector<8x64xf32>
    %287 = math.exp %286 : vector<8x64xf32>
    %cst_156 = arith.constant 1.000000e+00 : f32
    %288 = vector.broadcast %cst_156 : f32 to vector<8x64xf32>
    %289 = arith.addf %288, %287 : vector<8x64xf32>
    %290 = arith.divf %288, %289 : vector<8x64xf32>
    %291 = vector.extract_strided_slice %278 {offsets = [0, 128], sizes = [8, 64], strides = [1, 1]} : vector<8x256xf32> to vector<8x64xf32>
    %292 = vector.extract_strided_slice %278 {offsets = [0, 192], sizes = [8, 64], strides = [1, 1]} : vector<8x256xf32> to vector<8x64xf32>
    %293 = arith.mulf %284, %292 : vector<8x64xf32>
    %294 = arith.addf %291, %293 : vector<8x64xf32>
    %295 = math.tanh %294 : vector<8x64xf32>
    %cst_157 = arith.constant 1.000000e+00 : f32
    %296 = vector.broadcast %cst_157 : f32 to vector<8x64xf32>
    %297 = arith.subf %296, %290 : vector<8x64xf32>
    %298 = arith.mulf %297, %295 : vector<8x64xf32>
    %299 = arith.mulf %290, %251 : vector<8x64xf32>
    %300 = arith.addf %298, %299 : vector<8x64xf32>
    %c40_158 = arith.constant 40 : index
    %c0_159 = arith.constant 0 : index
    %301 = vector.load %arg17[%c40_158, %c0_159] : memref<64x64xf32, #tpu.memory_space<vmem>>, vector<8x64xf32>
    tpu.vector_store %arg17[%c40_158, %c0_159], %300 {strides = array<i32>} : memref<64x64xf32, #tpu.memory_space<vmem>>, vector<8x64xf32>,
    %c48 = arith.constant 48 : index
    %c0_160 = arith.constant 0 : index
    %302 = vector.load %arg16[%c48, %c0_160] : memref<64x64xf32, #tpu.memory_space<vmem>>, vector<8x64xf32>
    %c48_161 = arith.constant 48 : index
    %c0_162 = arith.constant 0 : index
    %303 = vector.load %arg2[%c48_161, %c0_162] : memref<64x64xf32, #tpu.memory_space<vmem>>, vector<8x64xf32>
    %304 = arith.mulf %300, %303 : vector<8x64xf32>
    %c0_163 = arith.constant 0 : index
    %c0_164 = arith.constant 0 : index
    %305 = vector.load %arg6[%c0_163, %c0_164] : memref<64x64xf32, #tpu.memory_space<vmem>>, vector<64x64xf32>
    %cst_165 = arith.constant dense<0.000000e+00> : vector<8x64xf32>
    %306 = tpu.matmul %304, %305, %cst_165 {dimension_numbers = #tpu.dot_dimension_numbers<[1], [0], [0], [1], [0, 0, 1, 1], [], []>} : vector<8x64xf32>, vector<64x64xf32>, vector<8x64xf32> -> vector<8x64xf32>
    %c0_166 = arith.constant 0 : index
    %c0_167 = arith.constant 0 : index
    %307 = vector.load %arg7[%c0_166, %c0_167] : memref<1x64xf32, #tpu.memory_space<vmem>>, vector<1x64xf32>
    %308 = vector.broadcast %307 : vector<1x64xf32> to vector<8x64xf32>
    %309 = arith.addf %306, %308 : vector<8x64xf32>
    %cst_168 = arith.constant 0.000000e+00 : f32
    %310 = vector.broadcast %cst_168 : f32 to vector<8x64xf32>
    %311 = arith.maximumf %309, %310 : vector<8x64xf32>
    %312 = arith.addf %302, %311 : vector<8x64xf32>
    %313 = arith.mulf %312, %303 : vector<8x64xf32>
    %c0_169 = arith.constant 0 : index
    %c0_170 = arith.constant 0 : index
    %314 = vector.load %arg6[%c0_169, %c0_170] : memref<64x64xf32, #tpu.memory_space<vmem>>, vector<64x64xf32>
    %cst_171 = arith.constant dense<0.000000e+00> : vector<8x64xf32>
    %315 = tpu.matmul %313, %314, %cst_171 {dimension_numbers = #tpu.dot_dimension_numbers<[1], [0], [0], [1], [0, 0, 1, 1], [], []>} : vector<8x64xf32>, vector<64x64xf32>, vector<8x64xf32> -> vector<8x64xf32>
    %c0_172 = arith.constant 0 : index
    %c0_173 = arith.constant 0 : index
    %316 = vector.load %arg7[%c0_172, %c0_173] : memref<1x64xf32, #tpu.memory_space<vmem>>, vector<1x64xf32>
    %317 = vector.broadcast %316 : vector<1x64xf32> to vector<8x64xf32>
    %318 = arith.addf %315, %317 : vector<8x64xf32>
    %cst_174 = arith.constant 0.000000e+00 : f32
    %319 = vector.broadcast %cst_174 : f32 to vector<8x64xf32>
    %320 = arith.maximumf %318, %319 : vector<8x64xf32>
    %321 = arith.addf %302, %320 : vector<8x64xf32>
    %322 = tpu.concatenate %321, %300 in 1 : vector<8x64xf32>, vector<8x64xf32> -> vector<8x128xf32>
    %c0_175 = arith.constant 0 : index
    %c0_176 = arith.constant 0 : index
    %323 = vector.load %arg8[%c0_175, %c0_176] : memref<128x256xf32, #tpu.memory_space<vmem>>, vector<128x256xf32>
    %cst_177 = arith.constant dense<0.000000e+00> : vector<8x256xf32>
    %324 = tpu.matmul %322, %323, %cst_177 {dimension_numbers = #tpu.dot_dimension_numbers<[1], [0], [0], [1], [0, 0, 1, 1], [], []>} : vector<8x128xf32>, vector<128x256xf32>, vector<8x256xf32> -> vector<8x256xf32>
    %c0_178 = arith.constant 0 : index
    %c0_179 = arith.constant 0 : index
    %325 = vector.load %arg9[%c0_178, %c0_179] : memref<1x256xf32, #tpu.memory_space<vmem>>, vector<1x256xf32>
    %326 = vector.broadcast %325 : vector<1x256xf32> to vector<8x256xf32>
    %327 = arith.addf %324, %326 : vector<8x256xf32>
    %328 = vector.extract_strided_slice %327 {offsets = [0, 0], sizes = [8, 64], strides = [1, 1]} : vector<8x256xf32> to vector<8x64xf32>
    %329 = arith.negf %328 : vector<8x64xf32>
    %330 = math.exp %329 : vector<8x64xf32>
    %cst_180 = arith.constant 1.000000e+00 : f32
    %331 = vector.broadcast %cst_180 : f32 to vector<8x64xf32>
    %332 = arith.addf %331, %330 : vector<8x64xf32>
    %333 = arith.divf %331, %332 : vector<8x64xf32>
    %334 = vector.extract_strided_slice %327 {offsets = [0, 64], sizes = [8, 64], strides = [1, 1]} : vector<8x256xf32> to vector<8x64xf32>
    %335 = arith.negf %334 : vector<8x64xf32>
    %336 = math.exp %335 : vector<8x64xf32>
    %cst_181 = arith.constant 1.000000e+00 : f32
    %337 = vector.broadcast %cst_181 : f32 to vector<8x64xf32>
    %338 = arith.addf %337, %336 : vector<8x64xf32>
    %339 = arith.divf %337, %338 : vector<8x64xf32>
    %340 = vector.extract_strided_slice %327 {offsets = [0, 128], sizes = [8, 64], strides = [1, 1]} : vector<8x256xf32> to vector<8x64xf32>
    %341 = vector.extract_strided_slice %327 {offsets = [0, 192], sizes = [8, 64], strides = [1, 1]} : vector<8x256xf32> to vector<8x64xf32>
    %342 = arith.mulf %333, %341 : vector<8x64xf32>
    %343 = arith.addf %340, %342 : vector<8x64xf32>
    %344 = math.tanh %343 : vector<8x64xf32>
    %cst_182 = arith.constant 1.000000e+00 : f32
    %345 = vector.broadcast %cst_182 : f32 to vector<8x64xf32>
    %346 = arith.subf %345, %339 : vector<8x64xf32>
    %347 = arith.mulf %346, %344 : vector<8x64xf32>
    %348 = arith.mulf %339, %300 : vector<8x64xf32>
    %349 = arith.addf %347, %348 : vector<8x64xf32>
    %c48_183 = arith.constant 48 : index
    %c0_184 = arith.constant 0 : index
    %350 = vector.load %arg17[%c48_183, %c0_184] : memref<64x64xf32, #tpu.memory_space<vmem>>, vector<8x64xf32>
    tpu.vector_store %arg17[%c48_183, %c0_184], %349 {strides = array<i32>} : memref<64x64xf32, #tpu.memory_space<vmem>>, vector<8x64xf32>,
    %c56 = arith.constant 56 : index
    %c0_185 = arith.constant 0 : index
    %351 = vector.load %arg16[%c56, %c0_185] : memref<64x64xf32, #tpu.memory_space<vmem>>, vector<8x64xf32>
    %c56_186 = arith.constant 56 : index
    %c0_187 = arith.constant 0 : index
    %352 = vector.load %arg2[%c56_186, %c0_187] : memref<64x64xf32, #tpu.memory_space<vmem>>, vector<8x64xf32>
    %353 = arith.mulf %349, %352 : vector<8x64xf32>
    %c0_188 = arith.constant 0 : index
    %c0_189 = arith.constant 0 : index
    %354 = vector.load %arg6[%c0_188, %c0_189] : memref<64x64xf32, #tpu.memory_space<vmem>>, vector<64x64xf32>
    %cst_190 = arith.constant dense<0.000000e+00> : vector<8x64xf32>
    %355 = tpu.matmul %353, %354, %cst_190 {dimension_numbers = #tpu.dot_dimension_numbers<[1], [0], [0], [1], [0, 0, 1, 1], [], []>} : vector<8x64xf32>, vector<64x64xf32>, vector<8x64xf32> -> vector<8x64xf32>
    %c0_191 = arith.constant 0 : index
    %c0_192 = arith.constant 0 : index
    %356 = vector.load %arg7[%c0_191, %c0_192] : memref<1x64xf32, #tpu.memory_space<vmem>>, vector<1x64xf32>
    %357 = vector.broadcast %356 : vector<1x64xf32> to vector<8x64xf32>
    %358 = arith.addf %355, %357 : vector<8x64xf32>
    %cst_193 = arith.constant 0.000000e+00 : f32
    %359 = vector.broadcast %cst_193 : f32 to vector<8x64xf32>
    %360 = arith.maximumf %358, %359 : vector<8x64xf32>
    %361 = arith.addf %351, %360 : vector<8x64xf32>
    %362 = arith.mulf %361, %352 : vector<8x64xf32>
    %c0_194 = arith.constant 0 : index
    %c0_195 = arith.constant 0 : index
    %363 = vector.load %arg6[%c0_194, %c0_195] : memref<64x64xf32, #tpu.memory_space<vmem>>, vector<64x64xf32>
    %cst_196 = arith.constant dense<0.000000e+00> : vector<8x64xf32>
    %364 = tpu.matmul %362, %363, %cst_196 {dimension_numbers = #tpu.dot_dimension_numbers<[1], [0], [0], [1], [0, 0, 1, 1], [], []>} : vector<8x64xf32>, vector<64x64xf32>, vector<8x64xf32> -> vector<8x64xf32>
    %c0_197 = arith.constant 0 : index
    %c0_198 = arith.constant 0 : index
    %365 = vector.load %arg7[%c0_197, %c0_198] : memref<1x64xf32, #tpu.memory_space<vmem>>, vector<1x64xf32>
    %366 = vector.broadcast %365 : vector<1x64xf32> to vector<8x64xf32>
    %367 = arith.addf %364, %366 : vector<8x64xf32>
    %cst_199 = arith.constant 0.000000e+00 : f32
    %368 = vector.broadcast %cst_199 : f32 to vector<8x64xf32>
    %369 = arith.maximumf %367, %368 : vector<8x64xf32>
    %370 = arith.addf %351, %369 : vector<8x64xf32>
    %371 = tpu.concatenate %370, %349 in 1 : vector<8x64xf32>, vector<8x64xf32> -> vector<8x128xf32>
    %c0_200 = arith.constant 0 : index
    %c0_201 = arith.constant 0 : index
    %372 = vector.load %arg8[%c0_200, %c0_201] : memref<128x256xf32, #tpu.memory_space<vmem>>, vector<128x256xf32>
    %cst_202 = arith.constant dense<0.000000e+00> : vector<8x256xf32>
    %373 = tpu.matmul %371, %372, %cst_202 {dimension_numbers = #tpu.dot_dimension_numbers<[1], [0], [0], [1], [0, 0, 1, 1], [], []>} : vector<8x128xf32>, vector<128x256xf32>, vector<8x256xf32> -> vector<8x256xf32>
    %c0_203 = arith.constant 0 : index
    %c0_204 = arith.constant 0 : index
    %374 = vector.load %arg9[%c0_203, %c0_204] : memref<1x256xf32, #tpu.memory_space<vmem>>, vector<1x256xf32>
    %375 = vector.broadcast %374 : vector<1x256xf32> to vector<8x256xf32>
    %376 = arith.addf %373, %375 : vector<8x256xf32>
    %377 = vector.extract_strided_slice %376 {offsets = [0, 0], sizes = [8, 64], strides = [1, 1]} : vector<8x256xf32> to vector<8x64xf32>
    %378 = arith.negf %377 : vector<8x64xf32>
    %379 = math.exp %378 : vector<8x64xf32>
    %cst_205 = arith.constant 1.000000e+00 : f32
    %380 = vector.broadcast %cst_205 : f32 to vector<8x64xf32>
    %381 = arith.addf %380, %379 : vector<8x64xf32>
    %382 = arith.divf %380, %381 : vector<8x64xf32>
    %383 = vector.extract_strided_slice %376 {offsets = [0, 64], sizes = [8, 64], strides = [1, 1]} : vector<8x256xf32> to vector<8x64xf32>
    %384 = arith.negf %383 : vector<8x64xf32>
    %385 = math.exp %384 : vector<8x64xf32>
    %cst_206 = arith.constant 1.000000e+00 : f32
    %386 = vector.broadcast %cst_206 : f32 to vector<8x64xf32>
    %387 = arith.addf %386, %385 : vector<8x64xf32>
    %388 = arith.divf %386, %387 : vector<8x64xf32>
    %389 = vector.extract_strided_slice %376 {offsets = [0, 128], sizes = [8, 64], strides = [1, 1]} : vector<8x256xf32> to vector<8x64xf32>
    %390 = vector.extract_strided_slice %376 {offsets = [0, 192], sizes = [8, 64], strides = [1, 1]} : vector<8x256xf32> to vector<8x64xf32>
    %391 = arith.mulf %382, %390 : vector<8x64xf32>
    %392 = arith.addf %389, %391 : vector<8x64xf32>
    %393 = math.tanh %392 : vector<8x64xf32>
    %cst_207 = arith.constant 1.000000e+00 : f32
    %394 = vector.broadcast %cst_207 : f32 to vector<8x64xf32>
    %395 = arith.subf %394, %388 : vector<8x64xf32>
    %396 = arith.mulf %395, %393 : vector<8x64xf32>
    %397 = arith.mulf %388, %349 : vector<8x64xf32>
    %398 = arith.addf %396, %397 : vector<8x64xf32>
    %c56_208 = arith.constant 56 : index
    %c0_209 = arith.constant 0 : index
    %399 = vector.load %arg17[%c56_208, %c0_209] : memref<64x64xf32, #tpu.memory_space<vmem>>, vector<8x64xf32>
    tpu.vector_store %arg17[%c56_208, %c0_209], %398 {strides = array<i32>} : memref<64x64xf32, #tpu.memory_space<vmem>>, vector<8x64xf32>,
    %c0_210 = arith.constant 0 : index
    %c0_211 = arith.constant 0 : index
    %400 = vector.load %arg15[%c0_210, %c0_211] : memref<8x64xf32, #tpu.memory_space<vmem>>, vector<8x64xf32>
    tpu.vector_store %arg15[%c0_210, %c0_211], %398 {strides = array<i32>} : memref<8x64xf32, #tpu.memory_space<vmem>>, vector<8x64xf32>,
    %c0_212 = arith.constant 0 : index
    %c0_213 = arith.constant 0 : index
    %401 = vector.load %arg17[%c0_212, %c0_213] : memref<64x64xf32, #tpu.memory_space<vmem>>, vector<64x64xf32>
    %c0_214 = arith.constant 0 : index
    %c0_215 = arith.constant 0 : index
    %402 = vector.load %arg10[%c0_214, %c0_215] : memref<64x64xf32, #tpu.memory_space<vmem>>, vector<64x64xf32>
    %cst_216 = arith.constant dense<0.000000e+00> : vector<64x64xf32>
    %403 = tpu.matmul %401, %402, %cst_216 {dimension_numbers = #tpu.dot_dimension_numbers<[1], [0], [0], [1], [0, 0, 1, 1], [], []>} : vector<64x64xf32>, vector<64x64xf32>, vector<64x64xf32> -> vector<64x64xf32>
    %c0_217 = arith.constant 0 : index
    %c0_218 = arith.constant 0 : index
    %404 = vector.load %arg11[%c0_217, %c0_218] : memref<1x64xf32, #tpu.memory_space<vmem>>, vector<1x64xf32>
    %405 = vector.broadcast %404 : vector<1x64xf32> to vector<64x64xf32>
    %406 = arith.addf %403, %405 : vector<64x64xf32>
    %cst_219 = arith.constant 0.000000e+00 : f32
    %407 = vector.broadcast %cst_219 : f32 to vector<64x64xf32>
    %408 = arith.maximumf %406, %407 : vector<64x64xf32>
    %c0_220 = arith.constant 0 : index
    %c0_221 = arith.constant 0 : index
    %409 = vector.load %arg12[%c0_220, %c0_221] : memref<64x128xf32, #tpu.memory_space<vmem>>, vector<64x128xf32>
    %cst_222 = arith.constant dense<0.000000e+00> : vector<64x128xf32>
    %410 = tpu.matmul %408, %409, %cst_222 {dimension_numbers = #tpu.dot_dimension_numbers<[1], [0], [0], [1], [0, 0, 1, 1], [], []>} : vector<64x64xf32>, vector<64x128xf32>, vector<64x128xf32> -> vector<64x128xf32>
    %c0_223 = arith.constant 0 : index
    %c0_224 = arith.constant 0 : index
    %411 = vector.load %arg13[%c0_223, %c0_224] : memref<1x128xf32, #tpu.memory_space<vmem>>, vector<1x128xf32>
    %412 = vector.broadcast %411 : vector<1x128xf32> to vector<64x128xf32>
    %413 = arith.addf %410, %412 : vector<64x128xf32>
    %c0_225 = arith.constant 0 : index
    %c0_226 = arith.constant 0 : index
    %414 = vector.load %arg14[%c0_225, %c0_226] : memref<64x128xf32, #tpu.memory_space<vmem>>, vector<64x128xf32>
    tpu.vector_store %arg14[%c0_225, %c0_226], %413 {strides = array<i32>} : memref<64x128xf32, #tpu.memory_space<vmem>>, vector<64x128xf32>,
    return
  }
  func.func @transform_0(%arg0: i32) -> (i32, i32) {
    %c0_i32 = arith.constant 0 : i32
    %c0_i32_0 = arith.constant 0 : i32
    %c0_i32_1 = arith.constant 0 : i32
    return %c0_i32, %c0_i32_0 : i32, i32
  }
  func.func @transform_1(%arg0: i32) -> (i32, i32) {
    %c0_i32 = arith.constant 0 : i32
    %c0_i32_0 = arith.constant 0 : i32
    %c0_i32_1 = arith.constant 0 : i32
    return %c0_i32, %c0_i32_0 : i32, i32
  }
  func.func @transform_2(%arg0: i32) -> (i32, i32) {
    %c0_i32 = arith.constant 0 : i32
    %c0_i32_0 = arith.constant 0 : i32
    %c0_i32_1 = arith.constant 0 : i32
    return %c0_i32, %c0_i32_0 : i32, i32
  }
  func.func @transform_3(%arg0: i32) -> (i32, i32) {
    %c0_i32 = arith.constant 0 : i32
    %c0_i32_0 = arith.constant 0 : i32
    %c0_i32_1 = arith.constant 0 : i32
    return %c0_i32, %c0_i32_0 : i32, i32
  }
  func.func @transform_4(%arg0: i32) -> (i32, i32) {
    %c0_i32 = arith.constant 0 : i32
    %c0_i32_0 = arith.constant 0 : i32
    %c0_i32_1 = arith.constant 0 : i32
    return %c0_i32, %c0_i32_0 : i32, i32
  }
  func.func @transform_5(%arg0: i32) -> (i32, i32) {
    %c0_i32 = arith.constant 0 : i32
    %c0_i32_0 = arith.constant 0 : i32
    %c0_i32_1 = arith.constant 0 : i32
    return %c0_i32, %c0_i32_0 : i32, i32
  }
  func.func @transform_6(%arg0: i32) -> (i32, i32) {
    %c0_i32 = arith.constant 0 : i32
    %c0_i32_0 = arith.constant 0 : i32
    %c0_i32_1 = arith.constant 0 : i32
    return %c0_i32, %c0_i32_0 : i32, i32
  }
  func.func @transform_7(%arg0: i32) -> (i32, i32) {
    %c0_i32 = arith.constant 0 : i32
    %c0_i32_0 = arith.constant 0 : i32
    %c0_i32_1 = arith.constant 0 : i32
    return %c0_i32, %c0_i32_0 : i32, i32
  }
  func.func @transform_8(%arg0: i32) -> (i32, i32) {
    %c0_i32 = arith.constant 0 : i32
    %c0_i32_0 = arith.constant 0 : i32
    %c0_i32_1 = arith.constant 0 : i32
    return %c0_i32, %c0_i32_0 : i32, i32
  }
  func.func @transform_9(%arg0: i32) -> (i32, i32) {
    %c0_i32 = arith.constant 0 : i32
    %c0_i32_0 = arith.constant 0 : i32
    %c0_i32_1 = arith.constant 0 : i32
    return %c0_i32, %c0_i32_0 : i32, i32
  }
  func.func @transform_10(%arg0: i32) -> (i32, i32) {
    %c0_i32 = arith.constant 0 : i32
    %c0_i32_0 = arith.constant 0 : i32
    %c0_i32_1 = arith.constant 0 : i32
    return %c0_i32, %c0_i32_0 : i32, i32
  }
  func.func @transform_11(%arg0: i32) -> (i32, i32) {
    %c0_i32 = arith.constant 0 : i32
    %c0_i32_0 = arith.constant 0 : i32
    %c0_i32_1 = arith.constant 0 : i32
    return %c0_i32, %c0_i32_0 : i32, i32
  }
  func.func @transform_12(%arg0: i32) -> (i32, i32) {
    %c0_i32 = arith.constant 0 : i32
    %c0_i32_0 = arith.constant 0 : i32
    %c0_i32_1 = arith.constant 0 : i32
    return %c0_i32, %c0_i32_0 : i32, i32
  }
  func.func @transform_13(%arg0: i32) -> (i32, i32) {
    %c0_i32 = arith.constant 0 : i32
    %c0_i32_0 = arith.constant 0 : i32
    %c0_i32_1 = arith.constant 0 : i32
    return %c0_i32, %c0_i32_0 : i32, i32
  }
  func.func @transform_14(%arg0: i32) -> (i32, i32) {
    %c0_i32 = arith.constant 0 : i32
    %c0_i32_0 = arith.constant 0 : i32
    %c0_i32_1 = arith.constant 0 : i32
    return %c0_i32, %c0_i32_0 : i32, i32
  }
}

</mosaic_0001>

<bundles_post_ra>
// kernel: tpu_custom_call.1
= control target key start
LH: loop header
LB: loop body
LE: loop exit
PB: predicated region body
PF: predicated region fallthrough
CT: control target
= control target key end

     0   :  { %20 = vsyncpa [#allocation5], 0  ;;  %s5123_s0 = inlined_call_operand.vmem [shape: f32[64,32], index: 0, kind: input, shape index: {}]   ;;  %s5124_s1 = inlined_call_operand.vmem [shape: f32[64,64], index: 1, kind: input, shape index: {}]   ;;  %s5125_s2 = inlined_call_operand.hbm [shape: f32[8,64], index: 2, kind: input, shape index: {}]   ;;  %s5126_s3 = inlined_call_operand.vmem [shape: f32[32,64], index: 3, kind: input, shape index: {}]   ;;  %s5127_s4 = inlined_call_operand.vmem [shape: f32[1,64], index: 4, kind: input, shape index: {}]   ;;  %s5128_s5 = inlined_call_operand.hbm [shape: f32[64,64], index: 5, kind: input, shape index: {}]   ;;  %s5129_s6 = inlined_call_operand.vmem [shape: f32[1,64], index: 6, kind: input, shape index: {}]   ;;  %s5130_s7 = inlined_call_operand.hbm [shape: f32[128,256], index: 7, kind: input, shape index: {}]   ;;  %s5131_s8 = inlined_call_operand.vmem [shape: f32[1,256], index: 8, kind: input, shape index: {}]   ;;  %s5132_s9 = inlined_call_operand.hbm [shape: f32[64,64], index: 9, kind: input, shape index: {}]   ;;  %s5133_s10 = inlined_call_operand.vmem [shape: f32[1,64], index: 10, kind: input, shape index: {}]   ;;  %s5134_s11 = inlined_call_operand.hbm [shape: f32[64,128], index: 11, kind: input, shape index: {}]   ;;  %s5135_s12 = inlined_call_operand.vmem [shape: f32[1,128], index: 12, kind: input, shape index: {}]   ;;  %s5136_s13 = inlined_call_operand.hbm [shape: f32[64,128], index: 13, kind: output, shape index: {0}]   ;;  %s5137_s14 = inlined_call_operand.hbm [shape: f32[8,64], index: 14, kind: output, shape index: {1}]  }
   0x1   :  { %21 = vsyncpa [#allocation8], 0 }
   0x2   :  { %22 = vsyncpa [#allocation11], 0 }
   0x3   :  { %23 = vsyncpa [#allocation6], 0 }
   0x4   :  { %24 = vsyncpa [#allocation15], 0  ;;  %s3992_s29 = smov [#allocation7]  }
   0x5   :  { %s48_s30 = sshll.u32 %s3992_s29, 4  ;;  %s49_s30 = int_to_ptr.vmem [resolvable:$true] %s48_s30 }
   0x6   :  { %s3850_s15 = scalar_lea.vmem %s49_s30, 1024  ;;  %p3855_p1 = scmp.lt.s32.totalorder %s49_s30, %s49_s30 }
   0x7   :  { %p3851_p0 = scmp.ne.s32.totalorder %s49_s30, %s3850_s15  ;;  %p3856_p2 = scmp.lt.s32.totalorder %s3850_s15, %s3850_s15 }
   0x9   :  { %p3857_p3 = por %p3856_p2, %p3855_p1 }
   0xb   :  { %p3858_p4 = pnand %p3857_p3, %p3851_p0 }
   0xd   :  { %3861 = shalt.err (!%p3858_p4)
}
   0xe   :  { %s3993_s16 = smov 128   ;;  %s3994_s17 = smov 8  }
   0xf   :  { %54 = dma.hbm_to_vmem [thread:$0]  %s5128_s5, 1024, %s49_s30, [#allocation8], %s3993_s16, %s3993_s16, %s3994_s17  }
  0x10   :  { %s3995_s20 = smov [#allocation10]   ;;  %s3996_s22 = smov [#allocation4]  }
  0x11   :  { %s76_s21 = sshll.u32 %s3995_s20, 4  ;;  %s35_s23 = sshll.u32 %s3996_s22, 4  ;;  %s77_s21 = int_to_ptr.vmem [resolvable:$true] %s76_s21  ;;  %s36_s23 = int_to_ptr.vmem [resolvable:$true] %s35_s23 }
  0x12   :  { %s3870_s24 = scalar_lea.vmem %s77_s21, 1024  ;;  %p3875_p6 = scmp.lt.s32.totalorder %s77_s21, %s77_s21 }
  0x13   :  { %p3871_p5 = scmp.ne.s32.totalorder %s77_s21, %s3870_s24  ;;  %p3876_p7 = scmp.lt.s32.totalorder %s3870_s24, %s3870_s24 }
  0x15   :  { %p3877_p8 = por %p3876_p7, %p3875_p6 }
  0x17   :  { %p3878_p9 = pnand %p3877_p8, %p3871_p5 }
  0x19   :  { %3881 = shalt.err (!%p3878_p9)
}
  0x1a   :  { %82 = dma.hbm_to_vmem [thread:$0]  %s5132_s9, 1024, %s77_s21, [#allocation11], %s3993_s16, %s3993_s16, %s3994_s17  }
  0x1b   :  { %s3890_s5 = scalar_lea.vmem %s36_s23, 128  ;;  %p3895_p11 = scmp.lt.s32.totalorder %s36_s23, %s36_s23 }
  0x1c   :  { %p3891_p10 = scmp.ne.s32.totalorder %s36_s23, %s3890_s5  ;;  %p3896_p12 = scmp.lt.s32.totalorder %s3890_s5, %s3890_s5 }
  0x1e   :  { %p3897_p13 = por %p3896_p12, %p3895_p11 }
  0x20   :  { %p3898_p0 = pnand %p3897_p13, %p3891_p10 }
  0x22   :  { %3901 = shalt.err (!%p3898_p0)
}
  0x23   :  { %38 = dma.hbm_to_vmem [thread:$0]  %s5125_s2, 128, %s36_s23, [#allocation5]  }
  0x24   :  { %s3997_s29 = smov [#allocation9]  }
  0x25   :  { %s62_s30 = sshll.u32 %s3997_s29, 4  ;;  %s63_s30 = int_to_ptr.vmem [resolvable:$true] %s62_s30 }
  0x26   :  { %s3910_s15 = scalar_lea.vmem %s63_s30, 4096  ;;  %p3915_p2 = scmp.lt.s32.totalorder %s63_s30, %s63_s30 }
  0x27   :  { %p3911_p1 = scmp.ne.s32.totalorder %s63_s30, %s3910_s15  ;;  %p3916_p3 = scmp.lt.s32.totalorder %s3910_s15, %s3910_s15 }
  0x29   :  { %p3917_p4 = por %p3916_p3, %p3915_p2 }
  0x2b   :  { %p3918_p5 = pnand %p3917_p4, %p3911_p1 }
  0x2d   :  { %3921 = shalt.err (!%p3918_p5)
}
  0x2e   :  { %s3998_s9 = smov 256   ;;  %s3999_s18 = smov 16  }
  0x2f   :  { %68 = dma.hbm_to_vmem [thread:$0]  %s5130_s7, 4096, %s63_s30, [#allocation8], %s3998_s9, %s3998_s9, %s3999_s18  }
  0x30   :  { %s4000_s21 = smov [#allocation12]  }
  0x31   :  { %s90_s22 = sshll.u32 %s4000_s21, 4  ;;  %s91_s22 = int_to_ptr.vmem [resolvable:$true] %s90_s22 }
  0x32   :  { %s3930_s2 = scalar_lea.vmem %s91_s22, 1024  ;;  %p3935_p7 = scmp.lt.s32.totalorder %s91_s22, %s91_s22 }
  0x33   :  { %p3931_p6 = scmp.ne.s32.totalorder %s91_s22, %s3930_s2  ;;  %p3936_p8 = scmp.lt.s32.totalorder %s3930_s2, %s3930_s2 }
  0x35   :  { %p3937_p9 = por %p3936_p8, %p3935_p7 }
  0x37   :  { %p3938_p10 = pnand %p3937_p9, %p3931_p6 }
  0x39   :  { %3941 = shalt.err (!%p3938_p10)
}
  0x3a   :  { %96 = dma.hbm_to_vmem [thread:$0]  %s5134_s11, 1024, %s91_s22, [#allocation11], %s3993_s16, %s3993_s16, %s3994_s17  }
  0x3b   :  { %3982 = dma.done.wait [#allocation5], 128  }
  0x3c   :  { %3983 = vsyncadd [#allocation5], 4294967168 }
  0x3d   :  { %3984 = dma.done.wait [#allocation8], 5120  }
  0x3e   :  { %3985 = vsyncadd [#allocation8], 4294962176 }
  0x3f   :  { %3986 = dma.done.wait [#allocation11], 2048  }
  0x40   :  { %3987 = vsyncadd [#allocation11], 4294965248  ;;  %v5138_v0 = vmov 0.0   ;;  %vm4002_vm0 = vmmov 0   ;;  %vm133_vm1 = vcmask 261120   ;;  %v125_v1 = vld [vmem:[%s5126_s3 + $0x18] sm:$0xff] }
  0x41   :  { %3439 = vmatprep.subr.mxu0 %v5138_v0  ;;  %3455 = vmatprep.mubr.msk.f32.mxu0 %vm4002_vm0, %v5138_v0  ;;  %v124_v2 = vld [vmem:[%s5126_s3 + $0x10] sm:$0xff]  ;;  %v114_v3 = vld [vmem:[%s5123_s0] sm:$0xff]  ;;  %v123_v4 = vld [vmem:[%s5126_s3 + $0x8] sm:$0xff]  ;;  %vm263_vm2 = vcmask 523264  }
  0x42   :  { %3400 = vmatprep.subr.mxu1 %v125_v1  ;;  %3408 = vmatprep.mubr.msk.f32.mxu1 %vm133_vm1, %v114_v3  ;;  %v4121_v5 = vld [vmem:[#allocation7 + $0x38] sm:$0xff]  ;;  %v4127_v7 = vld [vmem:[#allocation7 + $0x30] sm:$0xff]  ;;  %v115_v8 = vld [vmem:[%s5123_s0 + $0x8] sm:$0xff] }
  0x43   :  { %3401 = vmatpush3.msra.mxu1 %v125_v1  ;;  %3440 = vmatpush3.msra.mxu0 %v4121_v5  ;;  %v122_v6 = vld [vmem:[%s5126_s3] sm:$0xff]  ;;  %v4134_v9 = vld [vmem:[#allocation7 + $0x28] sm:$0xff]  ;;  %v117_v11 = vld [vmem:[%s5123_s0 + $0x18] sm:$0xff] }
  0x44   :  { %3402 = vmatprep.subr.mxu1 %v124_v2  ;;  %3441 = vmatprep.subr.mxu0 %v5138_v0  ;;  %v116_v10 = vld [vmem:[%s5123_s0 + $0x10] sm:$0xff]  ;;  %v4149_v12 = vld [vmem:[#allocation7 + $0x20] sm:$0xff]  ;;  %v118_v13 = vld [vmem:[%s5123_s0 + $0x20] sm:$0xff] }
  0x45   :  { %3403 = vmatpush3.msra.mxu1 %v124_v2  ;;  %3442 = vmatpush3.msra.mxu0 %v4127_v7  ;;  %v119_v14 = vld [vmem:[%s5123_s0 + $0x28] sm:$0xff]  ;;  %v4165_v15 = vld [vmem:[#allocation7 + $0x18] sm:$0xff]  ;;  %v120_v16 = vld [vmem:[%s5123_s0 + $0x30] sm:$0xff] }
  0x46   :  { %3404 = vmatprep.subr.mxu1 %v123_v4  ;;  %3443 = vmatprep.subr.mxu0 %v5138_v0  ;;  %v4176_v17 = vld [vmem:[#allocation7 + $0x10] sm:$0xff]  ;;  %v272_v19 = vld [vmem:[#allocation4] sm:$0xff]  ;;  %v4189_v21 = vld [vmem:[#allocation7 + $0x8] sm:$0xff] }
  0x47   :  { %3405 = vmatpush3.msra.mxu1 %v123_v4  ;;  %3444 = vmatpush3.msra.mxu0 %v4134_v9  ;;  %v121_v18 = vld [vmem:[%s5123_s0 + $0x38] sm:$0xff]  ;;  %v4186_v20 = vld [vmem:[%s5124_s1] sm:$0xff]  ;;  %v4196_v22 = vld [vmem:[#allocation7] sm:$0xff]  ;;  %s4003_s0 = smov 64  }
  0x48   :  { %3406 = vmatprep.subr.mxu1 %v122_v6  ;;  %3445 = vmatprep.subr.mxu0 %v5138_v0  ;;  %v275_v23 = vmul.f32 %v4186_v20, %v272_v19  ;;  %v4210_v24 = vld [vmem:[#allocation9 + $0xf8] sm:$0xff]  ;;  %v4212_v25 = vld [vmem:[#allocation9 + $0xf0] sm:$0xff]  ;;  %v4214_v26 = vld [vmem:[#allocation9 + $0xe8] sm:$0xff] }
  0x49   :  { %3407 = vmatpush3.msra.mxu1 %v122_v6  ;;  %3446 = vmatpush3.msra.mxu0 %v4149_v12  ;;  %v4218_v27 = vld [vmem:[#allocation9 + $0xe0] sm:$0xff]  ;;  %v4221_v28 = vld [vmem:[#allocation9 + $0xd8] sm:$0xff]  ;;  %v4224_v29 = vld [vmem:[#allocation9 + $0xd0] sm:$0xff] }
  0x4a   :  { %3409 = vmatmul.mubr.msk.f32.vlgmr.msra.gmra.mxu1 %vm133_vm1, %v115_v8  ;;  %3420 = vmatprep.subr.mxu1 %v5138_v0  ;;  %v4227_v30 = vld [vmem:[#allocation9 + $0xc8] sm:$0xff]  ;;  %v4230_v31 = vld [vmem:[#allocation9 + $0xc0] sm:$0xff]  ;;  %v4233_v32 = vld [vmem:[#allocation9 + $0xb8] sm:$0xff] }
  0x4b   :  { %3421 = vmatpush3.msra.mxu1 %v4121_v5  ;;  %3411 = vmatprep.mubr.msk.f32.mxu1 %vm133_vm1, %v116_v10  ;;  %v4236_v33 = vld [vmem:[#allocation9 + $0xb0] sm:$0xff]  ;;  %v4239_v34 = vld [vmem:[#allocation9 + $0xa8] sm:$0xff]  ;;  %v4242_v35 = vld [vmem:[#allocation9 + $0xa0] sm:$0xff] }
  0x4c   :  { %3422 = vmatprep.subr.mxu1 %v5138_v0  ;;  %3447 = vmatprep.subr.mxu0 %v5138_v0  ;;  %v4245_v36 = vld [vmem:[#allocation9 + $0x98] sm:$0xff]  ;;  %v4248_v37 = vld [vmem:[#allocation9 + $0x90] sm:$0xff]  ;;  %v4251_v38 = vld [vmem:[#allocation9 + $0x88] sm:$0xff] }
  0x4d   :  { %3423 = vmatpush3.msra.mxu1 %v4127_v7  ;;  %3448 = vmatpush3.msra.mxu0 %v4165_v15  ;;  %v4254_v39 = vld [vmem:[#allocation9 + $0x80] sm:$0xff]  ;;  %v4257_v40 = vld [vmem:[#allocation9 + $0x78] sm:$0xff]  ;;  %v4260_v41 = vld [vmem:[#allocation9 + $0x70] sm:$0xff] }
  0x4e   :  { %3412 = vmatmul.mubr.msk.f32.gmra.mxu1 %vm133_vm1, %v117_v11  ;;  %3424 = vmatprep.subr.mxu1 %v5138_v0  ;;  %v4263_v42 = vld [vmem:[#allocation9 + $0x68] sm:$0xff]  ;;  %v4266_v43 = vld [vmem:[#allocation9 + $0x60] sm:$0xff]  ;;  %v4269_v44 = vld [vmem:[#allocation9 + $0x58] sm:$0xff] }
  0x4f   :  { %3425 = vmatpush3.msra.mxu1 %v4134_v9  ;;  %3414 = vmatprep.mubr.msk.f32.mxu1 %vm133_vm1, %v118_v13  ;;  %v4272_v45 = vld [vmem:[#allocation9 + $0x50] sm:$0xff]  ;;  %v4275_v46 = vld [vmem:[#allocation9 + $0x48] sm:$0xff]  ;;  %v4278_v47 = vld [vmem:[#allocation9 + $0x40] sm:$0xff] }
  0x50   :  { %3426 = vmatprep.subr.mxu1 %v5138_v0  ;;  %3449 = vmatprep.subr.mxu0 %v5138_v0  ;;  %v3153_v48 = vld [vmem:[%s5127_s4] ss:$0 sm:$0xff] }
  0x51   :  { %3427 = vmatpush3.msra.mxu1 %v4149_v12  ;;  %3450 = vmatpush3.msra.mxu0 %v4176_v17  ;;  %v4295_v1 = vld [vmem:[%s5129_s6] ss:$0 sm:$0xff] }
  0x52   :  { %3415 = vmatmul.mubr.msk.f32.gmra.mxu1 %vm133_vm1, %v119_v14  ;;  %3428 = vmatprep.subr.mxu1 %v5138_v0  ;;  %v4320_v14 = vld [vmem:[#allocation9 + $0x38] sm:$0xff] }
  0x53   :  { %3429 = vmatpush3.msra.mxu1 %v4165_v15  ;;  %3417 = vmatprep.mubr.msk.f32.mxu1 %vm133_vm1, %v120_v16  ;;  %v4323_v16 = vld [vmem:[#allocation9 + $0x30] sm:$0xff] }
  0x54   :  { %3430 = vmatprep.subr.mxu1 %v5138_v0  ;;  %3451 = vmatprep.subr.mxu0 %v5138_v0 }
  0x55   :  { %3431 = vmatpush3.msra.mxu1 %v4176_v17  ;;  %3452 = vmatpush3.msra.mxu0 %v4189_v21 }
  0x56   :  { %3418 = vmatmul.mubr.msk.f32.gmra.mxu1 %vm133_vm1, %v121_v18  ;;  %3432 = vmatprep.subr.mxu1 %v5138_v0  ;;  %v4326_v18 = vld [vmem:[#allocation9 + $0x28] sm:$0xff] }
  0x57   :  { %3433 = vmatpush3.msra.mxu1 %v4189_v21  ;;  %3436 = vmatprep.mubr.msk.f32.mxu1 %vm4002_vm0, %v5138_v0 }
  0x58   :  { %3434 = vmatprep.subr.mxu1 %v5138_v0  ;;  %3453 = vmatprep.subr.mxu0 %v5138_v0 }
  0x59   :  { %3435 = vmatpush3.msra.mxu1 %v4196_v22  ;;  %3454 = vmatpush3.msra.mxu0 %v4196_v22 }
  0x5a   :  { %3437 = vmatmul.mubr.msk.f32.vlgmr.msra.gmra.mxu1 %vm263_vm2, %v275_v23  ;;  %3458 = vmatprep.subr.mxu0 %v5138_v0  ;;  %v4335_v23 = vld [vmem:[#allocation9 + $0x10] sm:$0xff] }
  0x5b   :  { %555 = vmatprep.mubr.f32.mxu1 %v5138_v0  ;;  %443 = vrot.lane.b32.xlu0 %v272_v19, %s4003_s0  ;;  %v4329_v19 = vld [vmem:[#allocation9 + $0x20] sm:$0xff] }
  0x5c   :  { %491 = vmatprep.subr.mxu1 %v4210_v24 }
  0x5d   :  { %492 = vmatpush1.msra.mxu1 %v4212_v25 }
  0x5e   :  { %493 = vmatprep.subr.mxu1 %v4214_v26 }
  0x5f   :  { %494 = vmatpush1.msra.mxu1 %v4218_v27 }
  0x60   :  { %495 = vmatprep.subr.mxu1 %v4221_v28 }
  0x61   :  { %496 = vmatpush1.msra.mxu1 %v4224_v29 }
  0x62   :  { %497 = vmatprep.subr.mxu1 %v4227_v30 }
  0x63   :  { %498 = vmatpush1.msra.mxu1 %v4230_v31 }
  0x64   :  { %499 = vmatprep.subr.mxu1 %v4233_v32 }
  0x65   :  { %500 = vmatpush1.msra.mxu1 %v4236_v33 }
  0x66   :  { %501 = vmatprep.subr.mxu1 %v4239_v34 }
  0x67   :  { %502 = vmatpush1.msra.mxu1 %v4242_v35 }
  0x68   :  { %503 = vmatprep.subr.mxu1 %v4245_v36 }
  0x69   :  { %504 = vmatpush1.msra.mxu1 %v4248_v37 }
  0x6a   :  { %505 = vmatprep.subr.mxu1 %v4251_v38 }
  0x6b   :  { %506 = vmatpush1.msra.mxu1 %v4254_v39 }
  0x6c   :  { %507 = vmatprep.subr.mxu1 %v4257_v40 }
  0x6d   :  { %508 = vmatpush1.msra.mxu1 %v4260_v41 }
  0x6e   :  { %509 = vmatprep.subr.mxu1 %v4263_v42 }
  0x6f   :  { %510 = vmatpush1.msra.mxu1 %v4266_v43 }
  0x70   :  { %511 = vmatprep.subr.mxu1 %v4269_v44 }
  0x71   :  { %512 = vmatpush1.msra.mxu1 %v4272_v45 }
  0x72   :  { %513 = vmatprep.subr.mxu1 %v4275_v46 }
  0x73   :  { %514 = vmatpush1.msra.mxu1 %v4278_v47 }
  0x74   :  { %515 = vmatprep.subr.mxu1 %v4320_v14 }
  0x75   :  { %516 = vmatpush1.msra.mxu1 %v4323_v16 }
  0x76   :  { %517 = vmatprep.subr.mxu1 %v4326_v18 }
  0x77   :  { %518 = vmatpush1.msra.mxu1 %v4329_v19 }
 0x10a   :  { %v3410_v49 = vpop.f32.mrf.mxu1 }
 0x10b   :  { %v230_v50 = vadd.f32 %v3410_v49, %v3153_v48  ;;  %v4341_v49 = vld [vmem:[#allocation9] sm:$0xff] }
 0x10c   :  { %v224_v51 = vpop.f32.mrf.mxu1 }
 0x10d   :  { %265 = vst.msk [vmem:[#allocation2 + $0x8] sm:$0xff] %vm263_vm2, %v230_v50  ;;  %v225_v52 = vadd.f32 %v3153_v48, %v224_v51 }
 0x10e   :  { %v3413_v53 = vpop.f32.mrf.mxu1 }
 0x10f   :  { %264 = vst.msk [vmem:[#allocation2] sm:$0xff] %vm263_vm2, %v225_v52  ;;  %v240_v54 = vadd.f32 %v3413_v53, %v3153_v48 }
 0x110   :  { %v234_v55 = vpop.f32.mrf.mxu1 }
 0x111   :  { %267 = vst.msk [vmem:[#allocation2 + $0x18] sm:$0xff] %vm263_vm2, %v240_v54  ;;  %v235_v56 = vadd.f32 %v3153_v48, %v234_v55  ;;  %v4346_v54 = vpop.permute.xlu0 %443 }
 0x112   :  { %v3416_v57 = vpop.f32.mrf.mxu1 }
 0x113   :  { %266 = vst.msk [vmem:[#allocation2 + $0x10] sm:$0xff] %vm263_vm2, %v235_v56  ;;  %v250_v58 = vadd.f32 %v3416_v57, %v3153_v48  ;;  %v481_v57 = vlaneseq }
 0x114   :  { %v244_v59 = vpop.f32.mrf.mxu1 }
 0x115   :  { %269 = vst.msk [vmem:[#allocation2 + $0x28] sm:$0xff] %vm263_vm2, %v250_v58  ;;  %v245_v60 = vadd.f32 %v3153_v48, %v244_v59  ;;  %v482_v58 = vshrl.u32 %v481_v57, 7 }
 0x116   :  { %v3419_v61 = vpop.f32.mrf.mxu1  ;;  %v273_v10 = vld [vmem:[#allocation2] sm:$0xff] }
 0x117   :  { %268 = vst.msk [vmem:[#allocation2 + $0x20] sm:$0xff] %vm263_vm2, %v245_v60  ;;  %v260_v62 = vadd.f32 %v3419_v61, %v3153_v48  ;;  %v4383_v59 = vsub.s32 1, %v482_v58  ;;  %v479_v60 = vld [vmem:[%s5131_s8] sm:$0x3] }
 0x118   :  { %v254_v63 = vpop.f32.mrf.mxu1 }
 0x119   :  { %271 = vst.msk [vmem:[#allocation2 + $0x38] sm:$0xff] %vm263_vm2, %v260_v62  ;;  %v255_v2 = vadd.f32 %v3153_v48, %v254_v63  ;;  %v4338_v48 = vld [vmem:[#allocation9 + $0x8] sm:$0xff]  ;;  %v488_v61 = vrot.slane %v479_v60, %v4383_v59 }
 0x11a   :  { %v360_v3 = vpop.f32.mrf.mxu1 }
 0x11b   :  { %270 = vst.msk [vmem:[#allocation2 + $0x30] sm:$0xff] %vm263_vm2, %v255_v2  ;;  %v361_v4 = vadd.f32 %v4295_v1, %v360_v3  ;;  %v4390_v3 = vsub.s32 0, %v482_v58 }
 0x11c   :  { %v3438_v6 = vpop.f32.mrf.mxu1 }
 0x11d   :  { %v364_v8 = vmax.f32 %v361_v4, 0.0  ;;  %v484_v4 = vrot.slane %v479_v60, %v4390_v3 }
 0x11f   :  { %v365_v11 = vadd.f32 %v364_v8, %v273_v10 }
 0x121   :  { %v366_v13 = vmul.f32 %v365_v11, %v4186_v20  ;;  %v4332_v20 = vld [vmem:[#allocation9 + $0x18] sm:$0xff] }
 0x122   :  { %519 = vmatprep.subr.mxu1 %v4332_v20 }
 0x123   :  { %3456 = vmatmul.mubr.msk.f32.vlgmr.msra.gmra.mxu0 %vm263_vm2, %v366_v13  ;;  %520 = vmatpush1.msra.mxu1 %v4335_v23 }
 0x124   :  { %3459 = vmatpush3.msra.mxu0 %v4121_v5  ;;  %3474 = vmatprep.mubr.msk.f32.mxu0 %vm4002_vm0, %v5138_v0 }
 0x125   :  { %3460 = vmatprep.subr.mxu0 %v5138_v0  ;;  %521 = vmatprep.subr.mxu1 %v4338_v48 }
 0x126   :  { %3461 = vmatpush3.msra.mxu0 %v4127_v7  ;;  %522 = vmatpush1.msra.mxu1 %v4341_v49 }
 0x127   :  { %3462 = vmatprep.subr.mxu0 %v5138_v0  ;;  %808 = vmatprep.subr.mxu1 %v4210_v24 }
 0x128   :  { %3463 = vmatpush3.msra.mxu0 %v4134_v9 }
 0x129   :  { %3464 = vmatprep.subr.mxu0 %v5138_v0 }
 0x12a   :  { %3465 = vmatpush3.msra.mxu0 %v4149_v12 }
 0x12b   :  { %3466 = vmatprep.subr.mxu0 %v5138_v0 }
 0x12c   :  { %3467 = vmatpush3.msra.mxu0 %v4165_v15 }
 0x12d   :  { %3468 = vmatprep.subr.mxu0 %v5138_v0 }
 0x12e   :  { %3469 = vmatpush3.msra.mxu0 %v4176_v17 }
 0x12f   :  { %3470 = vmatprep.subr.mxu0 %v5138_v0 }
 0x130   :  { %3471 = vmatpush3.msra.mxu0 %v4189_v21 }
 0x131   :  { %3472 = vmatprep.subr.mxu0 %v5138_v0 }
 0x132   :  { %3473 = vmatpush3.msra.mxu0 %v4196_v22 }
 0x133   :  { %3477 = vmatprep.subr.mxu0 %v5138_v0 }
 0x1e3   :  { %v436_v50 = vpop.f32.mrf.mxu0 }
 0x1e4   :  { %v437_v51 = vadd.f32 %v4295_v1, %v436_v50 }
 0x1e5   :  { %v3457_v52 = vpop.f32.mrf.mxu0 }
 0x1e6   :  { %v440_v53 = vmax.f32 %v437_v51, 0.0 }
 0x1e8   :  { %v441_v55 = vadd.f32 %v440_v53, %v273_v10 }
 0x1ea   :  { %v446_v56 = vsel %vm263_vm2, %v441_v55, %v4346_v54  ;;  %v589_v55 = vld [vmem:[%s5124_s1 + $0x8] sm:$0xff] }
 0x1eb   :  { %556 = vmatmul.mubr.f32.vlgmr.msra.gmra.mxu1 %v446_v56 }
 0x1ec   :  { %809 = vmatpush1.msra.mxu1 %v4212_v25  ;;  %872 = vmatprep.mubr.f32.mxu1 %v5138_v0 }
 0x1ed   :  { %810 = vmatprep.subr.mxu1 %v4214_v26 }
 0x1ee   :  { %811 = vmatpush1.msra.mxu1 %v4218_v27 }
 0x1ef   :  { %812 = vmatprep.subr.mxu1 %v4221_v28 }
 0x1f0   :  { %813 = vmatpush1.msra.mxu1 %v4224_v29 }
 0x1f1   :  { %814 = vmatprep.subr.mxu1 %v4227_v30 }
 0x1f2   :  { %815 = vmatpush1.msra.mxu1 %v4230_v31 }
 0x1f3   :  { %816 = vmatprep.subr.mxu1 %v4233_v32 }
 0x1f4   :  { %817 = vmatpush1.msra.mxu1 %v4236_v33 }
 0x1f5   :  { %818 = vmatprep.subr.mxu1 %v4239_v34 }
 0x1f6   :  { %819 = vmatpush1.msra.mxu1 %v4242_v35 }
 0x1f7   :  { %820 = vmatprep.subr.mxu1 %v4245_v36 }
 0x1f8   :  { %821 = vmatpush1.msra.mxu1 %v4248_v37 }
 0x1f9   :  { %822 = vmatprep.subr.mxu1 %v4251_v38 }
 0x1fa   :  { %823 = vmatpush1.msra.mxu1 %v4254_v39 }
 0x1fb   :  { %824 = vmatprep.subr.mxu1 %v4257_v40 }
 0x1fc   :  { %825 = vmatpush1.msra.mxu1 %v4260_v41 }
 0x1fd   :  { %826 = vmatprep.subr.mxu1 %v4263_v42 }
 0x1fe   :  { %827 = vmatpush1.msra.mxu1 %v4266_v43 }
 0x1ff   :  { %828 = vmatprep.subr.mxu1 %v4269_v44 }
 0x200   :  { %829 = vmatpush1.msra.mxu1 %v4272_v45 }
 0x201   :  { %830 = vmatprep.subr.mxu1 %v4275_v46 }
 0x202   :  { %831 = vmatpush1.msra.mxu1 %v4278_v47 }
 0x203   :  { %832 = vmatprep.subr.mxu1 %v4320_v14 }
 0x204   :  { %833 = vmatpush1.msra.mxu1 %v4323_v16 }
 0x205   :  { %834 = vmatprep.subr.mxu1 %v4326_v18 }
 0x206   :  { %835 = vmatpush1.msra.mxu1 %v4329_v19 }
 0x207   :  { %836 = vmatprep.subr.mxu1 %v4332_v20 }
 0x208   :  { %837 = vmatpush1.msra.mxu1 %v4335_v23 }
 0x209   :  { %838 = vmatprep.subr.mxu1 %v4338_v48 }
 0x20a   :  { %839 = vmatpush1.msra.mxu1 %v4341_v49 }
 0x20b   :  { %1125 = vmatprep.subr.mxu1 %v4210_v24 }
 0x2ab   :  { %v557_v62 = vpop.f32.mrf.mxu1 }
 0x2ac   :  { %v558_v6 = vadd.f32 %v557_v62, %v484_v4 }
 0x2ad   :  { %v559_v63 = vpop.f32.mrf.mxu1 }
 0x2ae   :  { %v560_v2 = vadd.f32 %v559_v63, %v488_v61  ;;  %v3165_v8 = vmul.f32 -1.442695, %v558_v6 }
 0x2b0   :  { %569 = vrot.lane.b32.xlu0 %v560_v2, %s4003_s0  ;;  %3794 = vpow2.f32 %v3165_v8 }
 0x2bd   :  { %v3795_v10 = vpop.eup %3794 }
 0x2be   :  { %v565_v11 = vadd.f32 1.0, %v3795_v10  ;;  %v588_v10 = vld [vmem:[#allocation2 + $0x8] sm:$0xff] }
 0x2c0   :  { %3796 = vrcp.f32 %v565_v11 }
 0x2cd   :  { %v3797_v13 = vpop.eup %3796 }
 0x2ce   :  { %v575_v56 = vsub.f32 1.0, %v3797_v13  ;;  %v581_v58 = vmul.f32 %v3797_v13, %v4346_v54 }
 0x322   :  { %v570_v50 = vpop.permute.xlu0 %569 }
 0x323   :  { %v572_v51 = vmul.f32 %v3797_v13, %v570_v50 }
 0x325   :  { %v573_v52 = vadd.f32 %v572_v51, %v560_v2 }
 0x327   :  { %3798 = vtanh.f32 %v573_v52 }
 0x334   :  { %v3799_v53 = vpop.eup %3798 }
 0x335   :  { %577 = vrot.lane.b32.xlu1 %v3799_v53, %s4003_s0 }
 0x339   :  { %591 = vrot.lane.b32.xlu1 %v589_v55, %s4003_s0 }
 0x3a7   :  { %v578_v57 = vpop.permute.xlu1 %577 }
 0x3a8   :  { %v580_v60 = vmul.f32 %v578_v57, %v575_v56  ;;  %v796_v57 = vld [vmem:[%s5131_s8] sm:$0x3] }
 0x3aa   :  { %v4399_v61 = vadd.f32 %v581_v58, %v580_v60  ;;  %v805_v58 = vrot.slane %v796_v57, %v4383_v59 }
 0x3ab   :  { %v592_v62 = vpop.permute.xlu1 %591 }
 0x3ac   :  { %v594_v63 = vmul.f32 %v592_v62, %v4399_v61 }
 0x3ae   :  { %611 = vrot.lane.b32.xlu0 %v594_v63, %s4003_s0 }
 0x420   :  { %v612_v2 = vpop.permute.xlu0 %611 }
 0x421   :  { %3475 = vmatmul.mubr.msk.f32.vlgmr.msra.gmra.mxu0 %vm263_vm2, %v612_v2  ;;  %v906_v2 = vld [vmem:[%s5124_s1 + $0x10] sm:$0xff] }
 0x422   :  { %3478 = vmatpush3.msra.mxu0 %v4121_v5  ;;  %3493 = vmatprep.mubr.msk.f32.mxu0 %vm4002_vm0, %v5138_v0 }
 0x423   :  { %3479 = vmatprep.subr.mxu0 %v5138_v0 }
 0x424   :  { %3480 = vmatpush3.msra.mxu0 %v4127_v7 }
 0x425   :  { %3481 = vmatprep.subr.mxu0 %v5138_v0 }
 0x426   :  { %3482 = vmatpush3.msra.mxu0 %v4134_v9 }
 0x427   :  { %3483 = vmatprep.subr.mxu0 %v5138_v0 }
 0x428   :  { %3484 = vmatpush3.msra.mxu0 %v4149_v12 }
 0x429   :  { %3485 = vmatprep.subr.mxu0 %v5138_v0 }
 0x42a   :  { %3486 = vmatpush3.msra.mxu0 %v4165_v15 }
 0x42b   :  { %3487 = vmatprep.subr.mxu0 %v5138_v0 }
 0x42c   :  { %3488 = vmatpush3.msra.mxu0 %v4176_v17 }
 0x42d   :  { %3489 = vmatprep.subr.mxu0 %v5138_v0 }
 0x42e   :  { %3490 = vmatpush3.msra.mxu0 %v4189_v21 }
 0x42f   :  { %3491 = vmatprep.subr.mxu0 %v5138_v0 }
 0x430   :  { %3492 = vmatpush3.msra.mxu0 %v4196_v22 }
 0x431   :  { %3496 = vmatprep.subr.mxu0 %v5138_v0 }
 0x4e1   :  { %v681_v54 = vpop.f32.mrf.mxu0 }
 0x4e2   :  { %v682_v4 = vadd.f32 %v4295_v1, %v681_v54  ;;  %v801_v54 = vrot.slane %v796_v57, %v4390_v3 }
 0x4e3   :  { %v3476_v6 = vpop.f32.mrf.mxu0 }
 0x4e4   :  { %v685_v8 = vmax.f32 %v682_v4, 0.0 }
 0x4e6   :  { %v686_v11 = vadd.f32 %v685_v8, %v588_v10 }
 0x4e8   :  { %v687_v13 = vmul.f32 %v686_v11, %v589_v55 }
 0x4ea   :  { %3494 = vmatmul.mubr.msk.f32.vlgmr.msra.gmra.mxu0 %vm263_vm2, %v687_v13 }
 0x4eb   :  { %3497 = vmatpush3.msra.mxu0 %v4121_v5  ;;  %3512 = vmatprep.mubr.msk.f32.mxu0 %vm4002_vm0, %v5138_v0 }
 0x4ec   :  { %3498 = vmatprep.subr.mxu0 %v5138_v0 }
 0x4ed   :  { %3499 = vmatpush3.msra.mxu0 %v4127_v7 }
 0x4ee   :  { %3500 = vmatprep.subr.mxu0 %v5138_v0 }
 0x4ef   :  { %3501 = vmatpush3.msra.mxu0 %v4134_v9 }
 0x4f0   :  { %3502 = vmatprep.subr.mxu0 %v5138_v0 }
 0x4f1   :  { %3503 = vmatpush3.msra.mxu0 %v4149_v12 }
 0x4f2   :  { %3504 = vmatprep.subr.mxu0 %v5138_v0 }
 0x4f3   :  { %3505 = vmatpush3.msra.mxu0 %v4165_v15 }
 0x4f4   :  { %3506 = vmatprep.subr.mxu0 %v5138_v0 }
 0x4f5   :  { %3507 = vmatpush3.msra.mxu0 %v4176_v17 }
 0x4f6   :  { %3508 = vmatprep.subr.mxu0 %v5138_v0 }
 0x4f7   :  { %3509 = vmatpush3.msra.mxu0 %v4189_v21 }
 0x4f8   :  { %3510 = vmatprep.subr.mxu0 %v5138_v0 }
 0x4f9   :  { %3511 = vmatpush3.msra.mxu0 %v4196_v22 }
 0x4fa   :  { %3515 = vmatprep.subr.mxu0 %v5138_v0 }
 0x5aa   :  { %v757_v50 = vpop.f32.mrf.mxu0 }
 0x5ab   :  { %v758_v51 = vadd.f32 %v4295_v1, %v757_v50 }
 0x5ac   :  { %v3495_v52 = vpop.f32.mrf.mxu0 }
 0x5ad   :  { %v761_v53 = vmax.f32 %v758_v51, 0.0 }
 0x5af   :  { %v762_v55 = vadd.f32 %v761_v53, %v588_v10 }
 0x5b1   :  { %v763_v56 = vsel %vm263_vm2, %v762_v55, %v4399_v61 }
 0x5b2   :  { %873 = vmatmul.mubr.f32.vlgmr.msra.gmra.mxu1 %v763_v56 }
 0x5b3   :  { %1126 = vmatpush1.msra.mxu1 %v4212_v25  ;;  %1189 = vmatprep.mubr.f32.mxu1 %v5138_v0 }
 0x5b4   :  { %1127 = vmatprep.subr.mxu1 %v4214_v26 }
 0x5b5   :  { %1128 = vmatpush1.msra.mxu1 %v4218_v27 }
 0x5b6   :  { %1129 = vmatprep.subr.mxu1 %v4221_v28 }
 0x5b7   :  { %1130 = vmatpush1.msra.mxu1 %v4224_v29 }
 0x5b8   :  { %1131 = vmatprep.subr.mxu1 %v4227_v30 }
 0x5b9   :  { %1132 = vmatpush1.msra.mxu1 %v4230_v31 }
 0x5ba   :  { %1133 = vmatprep.subr.mxu1 %v4233_v32 }
 0x5bb   :  { %1134 = vmatpush1.msra.mxu1 %v4236_v33 }
 0x5bc   :  { %1135 = vmatprep.subr.mxu1 %v4239_v34 }
 0x5bd   :  { %1136 = vmatpush1.msra.mxu1 %v4242_v35 }
 0x5be   :  { %1137 = vmatprep.subr.mxu1 %v4245_v36 }
 0x5bf   :  { %1138 = vmatpush1.msra.mxu1 %v4248_v37 }
 0x5c0   :  { %1139 = vmatprep.subr.mxu1 %v4251_v38 }
 0x5c1   :  { %1140 = vmatpush1.msra.mxu1 %v4254_v39 }
 0x5c2   :  { %1141 = vmatprep.subr.mxu1 %v4257_v40 }
 0x5c3   :  { %1142 = vmatpush1.msra.mxu1 %v4260_v41 }
 0x5c4   :  { %1143 = vmatprep.subr.mxu1 %v4263_v42 }
 0x5c5   :  { %1144 = vmatpush1.msra.mxu1 %v4266_v43 }
 0x5c6   :  { %1145 = vmatprep.subr.mxu1 %v4269_v44 }
 0x5c7   :  { %1146 = vmatpush1.msra.mxu1 %v4272_v45 }
 0x5c8   :  { %1147 = vmatprep.subr.mxu1 %v4275_v46 }
 0x5c9   :  { %1148 = vmatpush1.msra.mxu1 %v4278_v47 }
 0x5ca   :  { %1149 = vmatprep.subr.mxu1 %v4320_v14 }
 0x5cb   :  { %1150 = vmatpush1.msra.mxu1 %v4323_v16 }
 0x5cc   :  { %1151 = vmatprep.subr.mxu1 %v4326_v18 }
 0x5cd   :  { %1152 = vmatpush1.msra.mxu1 %v4329_v19 }
 0x5ce   :  { %1153 = vmatprep.subr.mxu1 %v4332_v20 }
 0x5cf   :  { %1154 = vmatpush1.msra.mxu1 %v4335_v23 }
 0x5d0   :  { %1155 = vmatprep.subr.mxu1 %v4338_v48 }
 0x5d1   :  { %1156 = vmatpush1.msra.mxu1 %v4341_v49 }
 0x5d2   :  { %1442 = vmatprep.subr.mxu1 %v4210_v24 }
 0x672   :  { %v874_v60 = vpop.f32.mrf.mxu1 }
 0x673   :  { %v875_v24 = vadd.f32 %v874_v60, %v801_v54 }
 0x674   :  { %v876_v62 = vpop.f32.mrf.mxu1 }
 0x675   :  { %v877_v63 = vadd.f32 %v876_v62, %v805_v58  ;;  %v3169_v4 = vmul.f32 -1.442695, %v875_v24 }
 0x677   :  { %886 = vrot.lane.b32.xlu1 %v877_v63, %s4003_s0  ;;  %3800 = vpow2.f32 %v3169_v4 }
 0x67b   :  { %908 = vrot.lane.b32.xlu1 %v906_v2, %s4003_s0 }
 0x684   :  { %v3801_v6 = vpop.eup %3800 }
 0x685   :  { %v882_v8 = vadd.f32 1.0, %v3801_v6  ;;  %v905_v6 = vld [vmem:[#allocation2 + $0x10] sm:$0xff] }
 0x687   :  { %3802 = vrcp.f32 %v882_v8 }
 0x694   :  { %v3803_v10 = vpop.eup %3802 }
 0x695   :  { %v892_v52 = vsub.f32 1.0, %v3803_v10  ;;  %v898_v55 = vmul.f32 %v3803_v10, %v4399_v61 }
 0x6e9   :  { %v887_v11 = vpop.permute.xlu1 %886 }
 0x6ea   :  { %v889_v13 = vmul.f32 %v3803_v10, %v887_v11 }
 0x6ec   :  { %v890_v50 = vadd.f32 %v889_v13, %v877_v63 }
 0x6ed   :  { %v909_v57 = vpop.permute.xlu1 %908 }
 0x6ee   :  { %3804 = vtanh.f32 %v890_v50 }
 0x6fb   :  { %v3805_v51 = vpop.eup %3804 }
 0x6fc   :  { %894 = vrot.lane.b32.xlu0 %v3805_v51, %s4003_s0 }
 0x76e   :  { %v895_v53 = vpop.permute.xlu0 %894 }
 0x76f   :  { %v897_v56 = vmul.f32 %v895_v53, %v892_v52 }
 0x771   :  { %v4490_v58 = vadd.f32 %v898_v55, %v897_v56 }
 0x773   :  { %5142 = vst [vmem:[#allocation21_spill] sm:$0xff] %v4490_v58  ;;  %v911_v60 = vmul.f32 %v909_v57, %v4490_v58 }
 0x775   :  { %928 = vrot.lane.b32.xlu0 %v911_v60, %s4003_s0 }
 0x7e7   :  { %v929_v62 = vpop.permute.xlu0 %928 }
 0x7e8   :  { %3513 = vmatmul.mubr.msk.f32.vlgmr.msra.gmra.mxu0 %vm263_vm2, %v929_v62 }
 0x7e9   :  { %3516 = vmatpush3.msra.mxu0 %v4121_v5  ;;  %3531 = vmatprep.mubr.msk.f32.mxu0 %vm4002_vm0, %v5138_v0 }
 0x7ea   :  { %3517 = vmatprep.subr.mxu0 %v5138_v0 }
 0x7eb   :  { %3518 = vmatpush3.msra.mxu0 %v4127_v7 }
 0x7ec   :  { %3519 = vmatprep.subr.mxu0 %v5138_v0 }
 0x7ed   :  { %3520 = vmatpush3.msra.mxu0 %v4134_v9 }
 0x7ee   :  { %3521 = vmatprep.subr.mxu0 %v5138_v0 }
 0x7ef   :  { %3522 = vmatpush3.msra.mxu0 %v4149_v12 }
 0x7f0   :  { %3523 = vmatprep.subr.mxu0 %v5138_v0 }
 0x7f1   :  { %3524 = vmatpush3.msra.mxu0 %v4165_v15 }
 0x7f2   :  { %3525 = vmatprep.subr.mxu0 %v5138_v0 }
 0x7f3   :  { %3526 = vmatpush3.msra.mxu0 %v4176_v17 }
 0x7f4   :  { %3527 = vmatprep.subr.mxu0 %v5138_v0 }
 0x7f5   :  { %3528 = vmatpush3.msra.mxu0 %v4189_v21 }
 0x7f6   :  { %3529 = vmatprep.subr.mxu0 %v5138_v0 }
 0x7f7   :  { %3530 = vmatpush3.msra.mxu0 %v4196_v22 }
 0x7f8   :  { %3534 = vmatprep.subr.mxu0 %v5138_v0 }
 0x8a8   :  { %v998_v63 = vpop.f32.mrf.mxu0 }
 0x8a9   :  { %v999_v54 = vadd.f32 %v4295_v1, %v998_v63 }
 0x8aa   :  { %v3514_v24 = vpop.f32.mrf.mxu0 }
 0x8ab   :  { %v1002_v4 = vmax.f32 %v999_v54, 0.0 }
 0x8ad   :  { %v1003_v8 = vadd.f32 %v1002_v4, %v905_v6 }
 0x8af   :  { %v1004_v10 = vmul.f32 %v1003_v8, %v906_v2 }
 0x8b1   :  { %3532 = vmatmul.mubr.msk.f32.vlgmr.msra.gmra.mxu0 %vm263_vm2, %v1004_v10  ;;  %v4624_v10 = vld [vmem:[#allocation7 + $0x38] sm:$0xff] }
 0x8b2   :  { %3535 = vmatpush3.msra.mxu0 %v4121_v5  ;;  %3550 = vmatprep.mubr.msk.f32.mxu0 %vm4002_vm0, %v5138_v0 }
 0x8b3   :  { %3536 = vmatprep.subr.mxu0 %v5138_v0 }
 0x8b4   :  { %3537 = vmatpush3.msra.mxu0 %v4127_v7 }
 0x8b5   :  { %3538 = vmatprep.subr.mxu0 %v5138_v0 }
 0x8b6   :  { %3539 = vmatpush3.msra.mxu0 %v4134_v9 }
 0x8b7   :  { %3540 = vmatprep.subr.mxu0 %v5138_v0 }
 0x8b8   :  { %3541 = vmatpush3.msra.mxu0 %v4149_v12 }
 0x8b9   :  { %3542 = vmatprep.subr.mxu0 %v5138_v0 }
 0x8ba   :  { %3543 = vmatpush3.msra.mxu0 %v4165_v15 }
 0x8bb   :  { %3544 = vmatprep.subr.mxu0 %v5138_v0 }
 0x8bc   :  { %3545 = vmatpush3.msra.mxu0 %v4176_v17 }
 0x8bd   :  { %3546 = vmatprep.subr.mxu0 %v5138_v0 }
 0x8be   :  { %3547 = vmatpush3.msra.mxu0 %v4189_v21 }
 0x8bf   :  { %3548 = vmatprep.subr.mxu0 %v5138_v0 }
 0x8c0   :  { %3549 = vmatpush3.msra.mxu0 %v4196_v22 }
 0x8c1   :  { %3553 = vmatprep.subr.mxu0 %v5138_v0 }
 0x971   :  { %v1074_v2 = vpop.f32.mrf.mxu0 }
 0x972   :  { %v1075_v11 = vadd.f32 %v4295_v1, %v1074_v2  ;;  %v4626_v2 = vld [vmem:[#allocation7 + $0x30] sm:$0xff] }
 0x973   :  { %v3533_v13 = vpop.f32.mrf.mxu0 }
 0x974   :  { %v1078_v50 = vmax.f32 %v1075_v11, 0.0  ;;  %v4630_v11 = vld [vmem:[#allocation7 + $0x28] sm:$0xff]  ;;  %v4634_v13 = vld [vmem:[#allocation7 + $0x20] sm:$0xff] }
 0x976   :  { %v1079_v51 = vadd.f32 %v1078_v50, %v905_v6 }
 0x978   :  { %v1080_v52 = vsel %vm263_vm2, %v1079_v51, %v4490_v58  ;;  %v4638_v51 = vld [vmem:[#allocation7 + $0x18] sm:$0xff] }
 0x979   :  { %1190 = vmatmul.mubr.f32.vlgmr.msra.gmra.mxu1 %v1080_v52  ;;  %v4643_v52 = vld [vmem:[#allocation7 + $0x10] sm:$0xff] }
 0x97a   :  { %1443 = vmatpush1.msra.mxu1 %v4212_v25  ;;  %1506 = vmatprep.mubr.f32.mxu1 %v5138_v0  ;;  %v1113_v25 = vld [vmem:[%s5131_s8] sm:$0x3] }
 0x97b   :  { %1444 = vmatprep.subr.mxu1 %v4214_v26  ;;  %v1122_v26 = vrot.slane %v1113_v25, %v4383_v59 }
 0x97c   :  { %1445 = vmatpush1.msra.mxu1 %v4218_v27 }
 0x97d   :  { %1446 = vmatprep.subr.mxu1 %v4221_v28 }
 0x97e   :  { %1447 = vmatpush1.msra.mxu1 %v4224_v29 }
 0x97f   :  { %1448 = vmatprep.subr.mxu1 %v4227_v30  ;;  %v1223_v30 = vld [vmem:[%s5124_s1 + $0x18] sm:$0xff] }
 0x980   :  { %1449 = vmatpush1.msra.mxu1 %v4230_v31  ;;  %v1118_v31 = vrot.slane %v1113_v25, %v4390_v3  ;;  %v4647_v25 = vld [vmem:[#allocation7 + $0x8] sm:$0xff] }
 0x981   :  { %1450 = vmatprep.subr.mxu1 %v4233_v32 }
 0x982   :  { %1451 = vmatpush1.msra.mxu1 %v4236_v33 }
 0x983   :  { %1452 = vmatprep.subr.mxu1 %v4239_v34 }
 0x984   :  { %1453 = vmatpush1.msra.mxu1 %v4242_v35 }
 0x985   :  { %1454 = vmatprep.subr.mxu1 %v4245_v36 }
 0x986   :  { %1455 = vmatpush1.msra.mxu1 %v4248_v37 }
 0x987   :  { %1456 = vmatprep.subr.mxu1 %v4251_v38 }
 0x988   :  { %1457 = vmatpush1.msra.mxu1 %v4254_v39 }
 0x989   :  { %1458 = vmatprep.subr.mxu1 %v4257_v40 }
 0x98a   :  { %1459 = vmatpush1.msra.mxu1 %v4260_v41 }
 0x98b   :  { %1460 = vmatprep.subr.mxu1 %v4263_v42 }
 0x98c   :  { %1461 = vmatpush1.msra.mxu1 %v4266_v43 }
 0x98d   :  { %1462 = vmatprep.subr.mxu1 %v4269_v44 }
 0x98e   :  { %1463 = vmatpush1.msra.mxu1 %v4272_v45 }
 0x98f   :  { %1464 = vmatprep.subr.mxu1 %v4275_v46 }
 0x990   :  { %1465 = vmatpush1.msra.mxu1 %v4278_v47 }
 0x991   :  { %1466 = vmatprep.subr.mxu1 %v4320_v14 }
 0x992   :  { %1467 = vmatpush1.msra.mxu1 %v4323_v16 }
 0x993   :  { %1468 = vmatprep.subr.mxu1 %v4326_v18 }
 0x994   :  { %1469 = vmatpush1.msra.mxu1 %v4329_v19 }
 0x995   :  { %1470 = vmatprep.subr.mxu1 %v4332_v20 }
 0x996   :  { %1471 = vmatpush1.msra.mxu1 %v4335_v23 }
 0x997   :  { %1472 = vmatprep.subr.mxu1 %v4338_v48  ;;  %v1430_v48 = vld [vmem:[%s5131_s8] sm:$0x3] }
 0x998   :  { %1473 = vmatpush1.msra.mxu1 %v4341_v49  ;;  %v1439_v49 = vrot.slane %v1430_v48, %v4383_v59  ;;  %v1435_v57 = vrot.slane %v1430_v48, %v4390_v3 }
 0xa39   :  { %v1191_v27 = vpop.f32.mrf.mxu1 }
 0xa3a   :  { %v1192_v32 = vadd.f32 %v1191_v27, %v1118_v31 }
 0xa3b   :  { %v1193_v28 = vpop.f32.mrf.mxu1 }
 0xa3c   :  { %v1194_v29 = vadd.f32 %v1193_v28, %v1122_v26  ;;  %v3173_v33 = vmul.f32 -1.442695, %v1192_v32  ;;  %v4651_v26 = vld [vmem:[#allocation7] sm:$0xff] }
 0xa3e   :  { %1203 = vrot.lane.b32.xlu1 %v1194_v29, %s4003_s0  ;;  %3806 = vpow2.f32 %v3173_v33 }
 0xa42   :  { %1225 = vrot.lane.b32.xlu1 %v1223_v30, %s4003_s0 }
 0xa4b   :  { %v3807_v34 = vpop.eup %3806 }
 0xa4c   :  { %v1199_v35 = vadd.f32 1.0, %v3807_v34 }
 0xa4e   :  { %3808 = vrcp.f32 %v1199_v35  ;;  %v4681_v35 = vld [vmem:[#allocation9 + $0xf8] sm:$0xff] }
 0xa4f   :  { %1759 = vmatprep.subr.mxu1 %v4681_v35 }
 0xa5b   :  { %v3809_v36 = vpop.eup %3808 }
 0xa5c   :  { %v1209_v41 = vsub.f32 1.0, %v3809_v36  ;;  %v1215_v43 = vmul.f32 %v3809_v36, %v4490_v58 }
 0xab0   :  { %v1204_v37 = vpop.permute.xlu1 %1203 }
 0xab1   :  { %v1206_v38 = vmul.f32 %v3809_v36, %v1204_v37  ;;  %v4683_v36 = vld [vmem:[#allocation9 + $0xf0] sm:$0xff]  ;;  %v4685_v37 = vld [vmem:[#allocation9 + $0xe8] sm:$0xff] }
 0xab3   :  { %v1207_v39 = vadd.f32 %v1206_v38, %v1194_v29  ;;  %v4688_v38 = vld [vmem:[#allocation9 + $0xe0] sm:$0xff] }
 0xab4   :  { %v1226_v45 = vpop.permute.xlu1 %1225 }
 0xab5   :  { %3810 = vtanh.f32 %v1207_v39  ;;  %v4691_v39 = vld [vmem:[#allocation9 + $0xd8] sm:$0xff] }
 0xac2   :  { %v3811_v40 = vpop.eup %3810 }
 0xac3   :  { %1211 = vrot.lane.b32.xlu0 %v3811_v40, %s4003_s0  ;;  %v4694_v40 = vld [vmem:[#allocation9 + $0xd0] sm:$0xff] }
 0xb35   :  { %v1212_v42 = vpop.permute.xlu0 %1211 }
 0xb36   :  { %v1214_v44 = vmul.f32 %v1212_v42, %v1209_v41  ;;  %v4697_v41 = vld [vmem:[#allocation9 + $0xc8] sm:$0xff]  ;;  %v4700_v42 = vld [vmem:[#allocation9 + $0xc0] sm:$0xff] }
 0xb38   :  { %v4580_v46 = vadd.f32 %v1215_v43, %v1214_v44  ;;  %v4703_v43 = vld [vmem:[#allocation9 + $0xb8] sm:$0xff]  ;;  %v4706_v44 = vld [vmem:[#allocation9 + $0xb0] sm:$0xff] }
 0xb3a   :  { %v1228_v47 = vmul.f32 %v1226_v45, %v4580_v46  ;;  %v4709_v45 = vld [vmem:[#allocation9 + $0xa8] sm:$0xff] }
 0xb3c   :  { %1245 = vrot.lane.b32.xlu0 %v1228_v47, %s4003_s0  ;;  %v4712_v47 = vld [vmem:[#allocation9 + $0xa0] sm:$0xff] }
 0xbae   :  { %v1246_v14 = vpop.permute.xlu0 %1245 }
 0xbaf   :  { %3551 = vmatmul.mubr.msk.f32.vlgmr.msra.gmra.mxu0 %vm263_vm2, %v1246_v14  ;;  %v4715_v14 = vld [vmem:[#allocation9 + $0x98] sm:$0xff] }
 0xbb0   :  { %3554 = vmatpush3.msra.mxu0 %v4121_v5  ;;  %3569 = vmatprep.mubr.msk.f32.mxu0 %vm4002_vm0, %v5138_v0 }
 0xbb1   :  { %3555 = vmatprep.subr.mxu0 %v5138_v0 }
 0xbb2   :  { %3556 = vmatpush3.msra.mxu0 %v4127_v7 }
 0xbb3   :  { %3557 = vmatprep.subr.mxu0 %v5138_v0 }
 0xbb4   :  { %3558 = vmatpush3.msra.mxu0 %v4134_v9 }
 0xbb5   :  { %3559 = vmatprep.subr.mxu0 %v5138_v0 }
 0xbb6   :  { %3560 = vmatpush3.msra.mxu0 %v4149_v12 }
 0xbb7   :  { %3561 = vmatprep.subr.mxu0 %v5138_v0 }
 0xbb8   :  { %3562 = vmatpush3.msra.mxu0 %v4165_v15  ;;  %v1222_v15 = vld [vmem:[#allocation2 + $0x18] sm:$0xff] }
 0xbb9   :  { %3563 = vmatprep.subr.mxu0 %v5138_v0 }
 0xbba   :  { %3564 = vmatpush3.msra.mxu0 %v4176_v17 }
 0xbbb   :  { %3565 = vmatprep.subr.mxu0 %v5138_v0 }
 0xbbc   :  { %3566 = vmatpush3.msra.mxu0 %v4189_v21 }
 0xbbd   :  { %3567 = vmatprep.subr.mxu0 %v5138_v0 }
 0xbbe   :  { %3568 = vmatpush3.msra.mxu0 %v4196_v22 }
 0xbbf   :  { %3572 = vmatprep.subr.mxu0 %v5138_v0 }
 0xc6f   :  { %v1315_v5 = vpop.f32.mrf.mxu0 }
 0xc70   :  { %v1316_v7 = vadd.f32 %v4295_v1, %v1315_v5  ;;  %v4718_v5 = vld [vmem:[#allocation9 + $0x90] sm:$0xff] }
 0xc71   :  { %v3552_v9 = vpop.f32.mrf.mxu0 }
 0xc72   :  { %v1319_v12 = vmax.f32 %v1316_v7, 0.0  ;;  %v4721_v7 = vld [vmem:[#allocation9 + $0x88] sm:$0xff]  ;;  %v4724_v9 = vld [vmem:[#allocation9 + $0x80] sm:$0xff] }
 0xc74   :  { %v1320_v16 = vadd.f32 %v1319_v12, %v1222_v15  ;;  %v4727_v12 = vld [vmem:[#allocation9 + $0x78] sm:$0xff] }
 0xc76   :  { %v1321_v18 = vmul.f32 %v1320_v16, %v1223_v30  ;;  %v4733_v16 = vld [vmem:[#allocation9 + $0x68] sm:$0xff] }
 0xc78   :  { %3570 = vmatmul.mubr.msk.f32.vlgmr.msra.gmra.mxu0 %vm263_vm2, %v1321_v18  ;;  %v4736_v18 = vld [vmem:[#allocation9 + $0x60] sm:$0xff] }
 0xc79   :  { %3588 = vmatprep.mubr.msk.f32.mxu0 %vm4002_vm0, %v5138_v0  ;;  %3573 = vmatpush3.msra.mxu0 %v4624_v10 }
 0xc7a   :  { %3574 = vmatprep.subr.mxu0 %v5138_v0 }
 0xc7b   :  { %3575 = vmatpush3.msra.mxu0 %v4626_v2 }
 0xc7c   :  { %3576 = vmatprep.subr.mxu0 %v5138_v0 }
 0xc7d   :  { %3577 = vmatpush3.msra.mxu0 %v4630_v11 }
 0xc7e   :  { %3578 = vmatprep.subr.mxu0 %v5138_v0 }
 0xc7f   :  { %3579 = vmatpush3.msra.mxu0 %v4634_v13 }
 0xc80   :  { %3580 = vmatprep.subr.mxu0 %v5138_v0 }
 0xc81   :  { %3581 = vmatpush3.msra.mxu0 %v4638_v51 }
 0xc82   :  { %3582 = vmatprep.subr.mxu0 %v5138_v0 }
 0xc83   :  { %3583 = vmatpush3.msra.mxu0 %v4643_v52 }
 0xc84   :  { %3584 = vmatprep.subr.mxu0 %v5138_v0 }
 0xc85   :  { %3585 = vmatpush3.msra.mxu0 %v4647_v25 }
 0xc86   :  { %3586 = vmatprep.subr.mxu0 %v5138_v0 }
 0xc87   :  { %3587 = vmatpush3.msra.mxu0 %v4651_v26 }
 0xc88   :  { %3591 = vmatprep.subr.mxu0 %v5138_v0 }
 0xd38   :  { %v1391_v17 = vpop.f32.mrf.mxu0 }
 0xd39   :  { %v1392_v21 = vadd.f32 %v4295_v1, %v1391_v17  ;;  %v4619_v1 = vld [vmem:[%s5124_s1 + $0x20] sm:$0xff] }
 0xd3a   :  { %v3571_v19 = vpop.f32.mrf.mxu0  ;;  %v4739_v17 = vld [vmem:[#allocation9 + $0x58] sm:$0xff] }
 0xd3b   :  { %v1395_v22 = vmax.f32 %v1392_v21, 0.0  ;;  %v4742_v21 = vld [vmem:[#allocation9 + $0x50] sm:$0xff]  ;;  %v4745_v19 = vld [vmem:[#allocation9 + $0x48] sm:$0xff] }
 0xd3d   :  { %v1396_v20 = vadd.f32 %v1395_v22, %v1222_v15  ;;  %v4730_v15 = vld [vmem:[#allocation9 + $0x70] sm:$0xff]  ;;  %v4748_v22 = vld [vmem:[#allocation9 + $0x40] sm:$0xff] }
 0xd3f   :  { %v1397_v23 = vsel %vm263_vm2, %v1396_v20, %v4580_v46  ;;  %v4756_v20 = vld [vmem:[%s5129_s6] ss:$0 sm:$0xff] }
 0xd40   :  { %1507 = vmatmul.mubr.f32.vlgmr.msra.gmra.mxu1 %v1397_v23 }
 0xd41   :  { %1823 = vmatprep.mubr.f32.mxu1 %v5138_v0  ;;  %1760 = vmatpush1.msra.mxu1 %v4683_v36 }
 0xd42   :  { %1761 = vmatprep.subr.mxu1 %v4685_v37 }
 0xd43   :  { %1762 = vmatpush1.msra.mxu1 %v4688_v38 }
 0xd44   :  { %1763 = vmatprep.subr.mxu1 %v4691_v39 }
 0xd45   :  { %1764 = vmatpush1.msra.mxu1 %v4694_v40 }
 0xd46   :  { %1765 = vmatprep.subr.mxu1 %v4697_v41 }
 0xd47   :  { %1766 = vmatpush1.msra.mxu1 %v4700_v42 }
 0xd48   :  { %1767 = vmatprep.subr.mxu1 %v4703_v43 }
 0xd49   :  { %1768 = vmatpush1.msra.mxu1 %v4706_v44 }
 0xd4a   :  { %1769 = vmatprep.subr.mxu1 %v4709_v45 }
 0xd4b   :  { %1770 = vmatpush1.msra.mxu1 %v4712_v47 }
 0xd4c   :  { %1771 = vmatprep.subr.mxu1 %v4715_v14 }
 0xd4d   :  { %1772 = vmatpush1.msra.mxu1 %v4718_v5 }
 0xd4e   :  { %1773 = vmatprep.subr.mxu1 %v4721_v7 }
 0xd4f   :  { %1774 = vmatpush1.msra.mxu1 %v4724_v9 }
 0xd50   :  { %1775 = vmatprep.subr.mxu1 %v4727_v12 }
 0xd51   :  { %1776 = vmatpush1.msra.mxu1 %v4730_v15 }
 0xd52   :  { %1777 = vmatprep.subr.mxu1 %v4733_v16 }
 0xd53   :  { %1778 = vmatpush1.msra.mxu1 %v4736_v18 }
 0xd54   :  { %1779 = vmatprep.subr.mxu1 %v4739_v17 }
 0xd55   :  { %1780 = vmatpush1.msra.mxu1 %v4742_v21 }
 0xd56   :  { %1781 = vmatprep.subr.mxu1 %v4745_v19 }
 0xd57   :  { %1782 = vmatpush1.msra.mxu1 %v4748_v22 }
 0xe00   :  { %v1508_v53 = vpop.f32.mrf.mxu1 }
 0xe01   :  { %v1509_v60 = vadd.f32 %v1508_v53, %v1435_v57 }
 0xe02   :  { %v1510_v55 = vpop.f32.mrf.mxu1 }
 0xe03   :  { %v1511_v56 = vadd.f32 %v1510_v55, %v1439_v49  ;;  %v3177_v62 = vmul.f32 -1.442695, %v1509_v60  ;;  %v1539_v55 = vld [vmem:[#allocation2 + $0x20] sm:$0xff]  ;;  %v4782_v60 = vld [vmem:[#allocation9 + $0x30] sm:$0xff] }
 0xe05   :  { %1520 = vrot.lane.b32.xlu1 %v1511_v56, %s4003_s0  ;;  %3812 = vpow2.f32 %v3177_v62  ;;  %v4785_v62 = vld [vmem:[#allocation9 + $0x28] sm:$0xff] }
 0xe09   :  { %1542 = vrot.lane.b32.xlu1 %v4619_v1, %s4003_s0 }
 0xe12   :  { %v3813_v63 = vpop.eup %3812 }
 0xe13   :  { %v1516_v54 = vadd.f32 1.0, %v3813_v63  ;;  %v4788_v63 = vld [vmem:[#allocation9 + $0x20] sm:$0xff] }
 0xe15   :  { %3814 = vrcp.f32 %v1516_v54  ;;  %v4791_v54 = vld [vmem:[#allocation9 + $0x18] sm:$0xff] }
 0xe22   :  { %v3815_v24 = vpop.eup %3814 }
 0xe23   :  { %v1526_v27 = vsub.f32 1.0, %v3815_v24  ;;  %v1532_v29 = vmul.f32 %v3815_v24, %v4580_v46 }
 0xe77   :  { %v1521_v4 = vpop.permute.xlu1 %1520 }
 0xe78   :  { %v1523_v6 = vmul.f32 %v3815_v24, %v1521_v4  ;;  %v4794_v24 = vld [vmem:[#allocation9 + $0x10] sm:$0xff]  ;;  %v4797_v4 = vld [vmem:[#allocation9 + $0x8] sm:$0xff] }
 0xe7a   :  { %v1524_v8 = vadd.f32 %v1523_v6, %v1511_v56  ;;  %v4799_v6 = vld [vmem:[#allocation9] sm:$0xff] }
 0xe7b   :  { %v1543_v31 = vpop.permute.xlu1 %1542 }
 0xe7c   :  { %3816 = vtanh.f32 %v1524_v8 }
 0xe89   :  { %v3817_v50 = vpop.eup %3816 }
 0xe8a   :  { %1528 = vrot.lane.b32.xlu0 %v3817_v50, %s4003_s0 }
 0xefc   :  { %v1529_v28 = vpop.permute.xlu0 %1528 }
 0xefd   :  { %v1531_v30 = vmul.f32 %v1529_v28, %v1526_v27 }
 0xeff   :  { %v4658_v32 = vadd.f32 %v1532_v29, %v1531_v30 }
 0xf01   :  { %5143 = vst [vmem:[#allocation22_spill] sm:$0xff] %v4658_v32  ;;  %v1545_v33 = vmul.f32 %v1543_v31, %v4658_v32  ;;  %v1747_v31 = vld [vmem:[%s5131_s8] sm:$0x3] }
 0xf03   :  { %1562 = vrot.lane.b32.xlu0 %v1545_v33, %s4003_s0  ;;  %v1756_v33 = vrot.slane %v1747_v31, %v4383_v59 }
 0xf75   :  { %v1563_v34 = vpop.permute.xlu0 %1562 }
 0xf76   :  { %3589 = vmatmul.mubr.msk.f32.vlgmr.msra.gmra.mxu0 %vm263_vm2, %v1563_v34 }
 0xf77   :  { %3592 = vmatpush3.msra.mxu0 %v4624_v10  ;;  %3607 = vmatprep.mubr.msk.f32.mxu0 %vm4002_vm0, %v5138_v0 }
 0xf78   :  { %3593 = vmatprep.subr.mxu0 %v5138_v0 }
 0xf79   :  { %3594 = vmatpush3.msra.mxu0 %v4626_v2 }
 0xf7a   :  { %3595 = vmatprep.subr.mxu0 %v5138_v0 }
 0xf7b   :  { %3596 = vmatpush3.msra.mxu0 %v4630_v11 }
 0xf7c   :  { %3597 = vmatprep.subr.mxu0 %v5138_v0 }
 0xf7d   :  { %3598 = vmatpush3.msra.mxu0 %v4634_v13 }
 0xf7e   :  { %3599 = vmatprep.subr.mxu0 %v5138_v0 }
 0xf7f   :  { %3600 = vmatpush3.msra.mxu0 %v4638_v51 }
 0xf80   :  { %3601 = vmatprep.subr.mxu0 %v5138_v0 }
 0xf81   :  { %3602 = vmatpush3.msra.mxu0 %v4643_v52 }
 0xf82   :  { %3603 = vmatprep.subr.mxu0 %v5138_v0 }
 0xf83   :  { %3604 = vmatpush3.msra.mxu0 %v4647_v25 }
 0xf84   :  { %3605 = vmatprep.subr.mxu0 %v5138_v0 }
 0xf85   :  { %3606 = vmatpush3.msra.mxu0 %v4651_v26 }
 0xf86   :  { %3610 = vmatprep.subr.mxu0 %v5138_v0 }
0x1036   :  { %v1632_v23 = vpop.f32.mrf.mxu0 }
0x1037   :  { %v1633_v48 = vadd.f32 %v4756_v20, %v1632_v23 }
0x1038   :  { %v3590_v49 = vpop.f32.mrf.mxu0 }
0x1039   :  { %v1636_v53 = vmax.f32 %v1633_v48, 0.0  ;;  %v1857_v49 = vld [vmem:[%s5124_s1 + $0x28] sm:$0xff] }
0x103b   :  { %v1637_v56 = vadd.f32 %v1636_v53, %v1539_v55  ;;  %v1752_v53 = vrot.slane %v1747_v31, %v4390_v3 }
0x103d   :  { %v1638_v57 = vmul.f32 %v1637_v56, %v4619_v1  ;;  %v4779_v1 = vld [vmem:[#allocation9 + $0x38] sm:$0xff] }
0x103e   :  { %1783 = vmatprep.subr.mxu1 %v4779_v1 }
0x103f   :  { %3608 = vmatmul.mubr.msk.f32.vlgmr.msra.gmra.mxu0 %vm263_vm2, %v1638_v57  ;;  %1784 = vmatpush1.msra.mxu1 %v4782_v60 }
0x1040   :  { %3611 = vmatpush3.msra.mxu0 %v4624_v10  ;;  %3626 = vmatprep.mubr.msk.f32.mxu0 %vm4002_vm0, %v5138_v0 }
0x1041   :  { %3612 = vmatprep.subr.mxu0 %v5138_v0  ;;  %1785 = vmatprep.subr.mxu1 %v4785_v62 }
0x1042   :  { %3613 = vmatpush3.msra.mxu0 %v4626_v2  ;;  %1786 = vmatpush1.msra.mxu1 %v4788_v63 }
0x1043   :  { %3614 = vmatprep.subr.mxu0 %v5138_v0  ;;  %1787 = vmatprep.subr.mxu1 %v4791_v54 }
0x1044   :  { %3615 = vmatpush3.msra.mxu0 %v4630_v11  ;;  %1788 = vmatpush1.msra.mxu1 %v4794_v24 }
0x1045   :  { %3616 = vmatprep.subr.mxu0 %v5138_v0  ;;  %1789 = vmatprep.subr.mxu1 %v4797_v4 }
0x1046   :  { %3617 = vmatpush3.msra.mxu0 %v4634_v13  ;;  %1790 = vmatpush1.msra.mxu1 %v4799_v6 }
0x1047   :  { %3618 = vmatprep.subr.mxu0 %v5138_v0  ;;  %2076 = vmatprep.subr.mxu1 %v4681_v35 }
0x1048   :  { %3619 = vmatpush3.msra.mxu0 %v4638_v51 }
0x1049   :  { %3620 = vmatprep.subr.mxu0 %v5138_v0 }
0x104a   :  { %3621 = vmatpush3.msra.mxu0 %v4643_v52 }
0x104b   :  { %3622 = vmatprep.subr.mxu0 %v5138_v0 }
0x104c   :  { %3623 = vmatpush3.msra.mxu0 %v4647_v25 }
0x104d   :  { %3624 = vmatprep.subr.mxu0 %v5138_v0 }
0x104e   :  { %3625 = vmatpush3.msra.mxu0 %v4651_v26 }
0x104f   :  { %3629 = vmatprep.subr.mxu0 %v5138_v0 }
0x10ff   :  { %v1708_v8 = vpop.f32.mrf.mxu0 }
0x1100   :  { %v1709_v50 = vadd.f32 %v4756_v20, %v1708_v8 }
0x1101   :  { %v3609_v27 = vpop.f32.mrf.mxu0 }
0x1102   :  { %v1712_v28 = vmax.f32 %v1709_v50, 0.0 }
0x1104   :  { %v1713_v29 = vadd.f32 %v1712_v28, %v1539_v55 }
0x1106   :  { %v1714_v30 = vsel %vm263_vm2, %v1713_v29, %v4658_v32 }
0x1107   :  { %1824 = vmatmul.mubr.f32.vlgmr.msra.gmra.mxu1 %v1714_v30 }
0x1108   :  { %2077 = vmatpush1.msra.mxu1 %v4683_v36  ;;  %2140 = vmatprep.mubr.f32.mxu1 %v5138_v0 }
0x1109   :  { %2078 = vmatprep.subr.mxu1 %v4685_v37 }
0x110a   :  { %2079 = vmatpush1.msra.mxu1 %v4688_v38 }
0x110b   :  { %2080 = vmatprep.subr.mxu1 %v4691_v39 }
0x110c   :  { %2081 = vmatpush1.msra.mxu1 %v4694_v40 }
0x110d   :  { %2082 = vmatprep.subr.mxu1 %v4697_v41 }
0x110e   :  { %2083 = vmatpush1.msra.mxu1 %v4700_v42 }
0x110f   :  { %2084 = vmatprep.subr.mxu1 %v4703_v43 }
0x1110   :  { %2085 = vmatpush1.msra.mxu1 %v4706_v44 }
0x1111   :  { %2086 = vmatprep.subr.mxu1 %v4709_v45 }
0x1112   :  { %2087 = vmatpush1.msra.mxu1 %v4712_v47 }
0x1113   :  { %2088 = vmatprep.subr.mxu1 %v4715_v14 }
0x1114   :  { %2089 = vmatpush1.msra.mxu1 %v4718_v5 }
0x1115   :  { %2090 = vmatprep.subr.mxu1 %v4721_v7 }
0x1116   :  { %2091 = vmatpush1.msra.mxu1 %v4724_v9 }
0x1117   :  { %2092 = vmatprep.subr.mxu1 %v4727_v12 }
0x1118   :  { %2093 = vmatpush1.msra.mxu1 %v4730_v15 }
0x1119   :  { %2094 = vmatprep.subr.mxu1 %v4733_v16 }
0x111a   :  { %2095 = vmatpush1.msra.mxu1 %v4736_v18 }
0x111b   :  { %2096 = vmatprep.subr.mxu1 %v4739_v17 }
0x111c   :  { %2097 = vmatpush1.msra.mxu1 %v4742_v21 }
0x111d   :  { %2098 = vmatprep.subr.mxu1 %v4745_v19 }
0x111e   :  { %2099 = vmatpush1.msra.mxu1 %v4748_v22 }
0x111f   :  { %2100 = vmatprep.subr.mxu1 %v4779_v1 }
0x1120   :  { %2101 = vmatpush1.msra.mxu1 %v4782_v60 }
0x1121   :  { %2102 = vmatprep.subr.mxu1 %v4785_v62 }
0x1122   :  { %2103 = vmatpush1.msra.mxu1 %v4788_v63 }
0x1123   :  { %2104 = vmatprep.subr.mxu1 %v4791_v54 }
0x1124   :  { %2105 = vmatpush1.msra.mxu1 %v4794_v24 }
0x1125   :  { %2106 = vmatprep.subr.mxu1 %v4797_v4 }
0x1126   :  { %2107 = vmatpush1.msra.mxu1 %v4799_v6 }
0x1127   :  { %2393 = vmatprep.subr.mxu1 %v4681_v35 }
0x11c7   :  { %v1825_v34 = vpop.f32.mrf.mxu1 }
0x11c8   :  { %v1826_v55 = vadd.f32 %v1825_v34, %v1752_v53 }
0x11c9   :  { %v1827_v23 = vpop.f32.mrf.mxu1 }
0x11ca   :  { %v1828_v48 = vadd.f32 %v1827_v23, %v1756_v33  ;;  %v3181_v56 = vmul.f32 -1.442695, %v1826_v55 }
0x11cc   :  { %1837 = vrot.lane.b32.xlu1 %v1828_v48, %s4003_s0  ;;  %3818 = vpow2.f32 %v3181_v56 }
0x11d0   :  { %1859 = vrot.lane.b32.xlu1 %v1857_v49, %s4003_s0 }
0x11d9   :  { %v3819_v57 = vpop.eup %3818 }
0x11da   :  { %v1833_v8 = vadd.f32 1.0, %v3819_v57 }
0x11dc   :  { %3820 = vrcp.f32 %v1833_v8  ;;  %v1856_v8 = vld [vmem:[#allocation2 + $0x28] sm:$0xff] }
0x11e9   :  { %v3821_v50 = vpop.eup %3820 }
0x11ea   :  { %v1843_v33 = vsub.f32 1.0, %v3821_v50  ;;  %v1849_v0 = vmul.f32 %v3821_v50, %v4658_v32 }
0x123e   :  { %v1838_v27 = vpop.permute.xlu1 %1837 }
0x123f   :  { %v1840_v28 = vmul.f32 %v3821_v50, %v1838_v27 }
0x1241   :  { %v1841_v29 = vadd.f32 %v1840_v28, %v1828_v48  ;;  %v5144_v48 = vmov 0.0  }
0x1242   :  { %v1860_v31 = vpop.permute.xlu1 %1859 }
0x1243   :  { %3822 = vtanh.f32 %v1841_v29 }
0x1250   :  { %v3823_v30 = vpop.eup %3822 }
0x1251   :  { %1845 = vrot.lane.b32.xlu0 %v3823_v30, %s4003_s0 }
0x12c3   :  { %v1846_v23 = vpop.permute.xlu0 %1845 }
0x12c4   :  { %v1848_v58 = vmul.f32 %v1846_v23, %v1843_v33 }
0x12c6   :  { %v4852_v34 = vadd.f32 %v1849_v0, %v1848_v58 }
0x12c8   :  { %v1862_v53 = vmul.f32 %v1860_v31, %v4852_v34  ;;  %v2064_v31 = vld [vmem:[%s5131_s8] sm:$0x3] }
0x12ca   :  { %1879 = vrot.lane.b32.xlu0 %v1862_v53, %s4003_s0  ;;  %v2073_v53 = vrot.slane %v2064_v31, %v4383_v59 }
0x133c   :  { %v1880_v55 = vpop.permute.xlu0 %1879 }
0x133d   :  { %3627 = vmatmul.mubr.msk.f32.vlgmr.msra.gmra.mxu0 %vm263_vm2, %v1880_v55 }
0x133e   :  { %3630 = vmatpush3.msra.mxu0 %v4624_v10  ;;  %3645 = vmatprep.mubr.msk.f32.mxu0 %vm4002_vm0, %v5144_v48 }
0x133f   :  { %3631 = vmatprep.subr.mxu0 %v5144_v48 }
0x1340   :  { %3632 = vmatpush3.msra.mxu0 %v4626_v2 }
0x1341   :  { %3633 = vmatprep.subr.mxu0 %v5144_v48 }
0x1342   :  { %3634 = vmatpush3.msra.mxu0 %v4630_v11 }
0x1343   :  { %3635 = vmatprep.subr.mxu0 %v5144_v48 }
0x1344   :  { %3636 = vmatpush3.msra.mxu0 %v4634_v13 }
0x1345   :  { %3637 = vmatprep.subr.mxu0 %v5144_v48 }
0x1346   :  { %3638 = vmatpush3.msra.mxu0 %v4638_v51 }
0x1347   :  { %3639 = vmatprep.subr.mxu0 %v5144_v48 }
0x1348   :  { %3640 = vmatpush3.msra.mxu0 %v4643_v52 }
0x1349   :  { %3641 = vmatprep.subr.mxu0 %v5144_v48 }
0x134a   :  { %3642 = vmatpush3.msra.mxu0 %v4647_v25 }
0x134b   :  { %3643 = vmatprep.subr.mxu0 %v5144_v48 }
0x134c   :  { %3644 = vmatpush3.msra.mxu0 %v4651_v26 }
0x134d   :  { %3648 = vmatprep.subr.mxu0 %v5144_v48 }
0x13fd   :  { %v1949_v0 = vpop.f32.mrf.mxu0 }
0x13fe   :  { %v1950_v58 = vadd.f32 %v4756_v20, %v1949_v0 }
0x13ff   :  { %v3628_v56 = vpop.f32.mrf.mxu0 }
0x1400   :  { %v1953_v57 = vmax.f32 %v1950_v58, 0.0  ;;  %v2174_v56 = vld [vmem:[%s5124_s1 + $0x30] sm:$0xff] }
0x1402   :  { %v1954_v50 = vadd.f32 %v1953_v57, %v1856_v8  ;;  %v2069_v57 = vrot.slane %v2064_v31, %v4390_v3 }
0x1404   :  { %v1955_v27 = vmul.f32 %v1954_v50, %v1857_v49 }
0x1406   :  { %3646 = vmatmul.mubr.msk.f32.vlgmr.msra.gmra.mxu0 %vm263_vm2, %v1955_v27 }
0x1407   :  { %3649 = vmatpush3.msra.mxu0 %v4624_v10  ;;  %3664 = vmatprep.mubr.msk.f32.mxu0 %vm4002_vm0, %v5144_v48 }
0x1408   :  { %3650 = vmatprep.subr.mxu0 %v5144_v48 }
0x1409   :  { %3651 = vmatpush3.msra.mxu0 %v4626_v2 }
0x140a   :  { %3652 = vmatprep.subr.mxu0 %v5144_v48 }
0x140b   :  { %3653 = vmatpush3.msra.mxu0 %v4630_v11 }
0x140c   :  { %3654 = vmatprep.subr.mxu0 %v5144_v48 }
0x140d   :  { %3655 = vmatpush3.msra.mxu0 %v4634_v13 }
0x140e   :  { %3656 = vmatprep.subr.mxu0 %v5144_v48 }
0x140f   :  { %3657 = vmatpush3.msra.mxu0 %v4638_v51 }
0x1410   :  { %3658 = vmatprep.subr.mxu0 %v5144_v48 }
0x1411   :  { %3659 = vmatpush3.msra.mxu0 %v4643_v52 }
0x1412   :  { %3660 = vmatprep.subr.mxu0 %v5144_v48 }
0x1413   :  { %3661 = vmatpush3.msra.mxu0 %v4647_v25 }
0x1414   :  { %3662 = vmatprep.subr.mxu0 %v5144_v48 }
0x1415   :  { %3663 = vmatpush3.msra.mxu0 %v4651_v26 }
0x1416   :  { %3667 = vmatprep.subr.mxu0 %v5144_v48 }
0x14c6   :  { %v2025_v49 = vpop.f32.mrf.mxu0 }
0x14c7   :  { %v2026_v28 = vadd.f32 %v4756_v20, %v2025_v49 }
0x14c8   :  { %v3647_v29 = vpop.f32.mrf.mxu0 }
0x14c9   :  { %v2029_v30 = vmax.f32 %v2026_v28, 0.0 }
0x14cb   :  { %v2030_v33 = vadd.f32 %v2029_v30, %v1856_v8 }
0x14cd   :  { %v2031_v23 = vsel %vm263_vm2, %v2030_v33, %v4852_v34 }
0x14ce   :  { %2141 = vmatmul.mubr.f32.vlgmr.msra.gmra.mxu1 %v2031_v23 }
0x14cf   :  { %2394 = vmatpush1.msra.mxu1 %v4683_v36  ;;  %2457 = vmatprep.mubr.f32.mxu1 %v5144_v48 }
0x14d0   :  { %2395 = vmatprep.subr.mxu1 %v4685_v37 }
0x14d1   :  { %2396 = vmatpush1.msra.mxu1 %v4688_v38 }
0x14d2   :  { %2397 = vmatprep.subr.mxu1 %v4691_v39 }
0x14d3   :  { %2398 = vmatpush1.msra.mxu1 %v4694_v40 }
0x14d4   :  { %2399 = vmatprep.subr.mxu1 %v4697_v41 }
0x14d5   :  { %2400 = vmatpush1.msra.mxu1 %v4700_v42 }
0x14d6   :  { %2401 = vmatprep.subr.mxu1 %v4703_v43 }
0x14d7   :  { %2402 = vmatpush1.msra.mxu1 %v4706_v44 }
0x14d8   :  { %2403 = vmatprep.subr.mxu1 %v4709_v45 }
0x14d9   :  { %2404 = vmatpush1.msra.mxu1 %v4712_v47 }
0x14da   :  { %2405 = vmatprep.subr.mxu1 %v4715_v14 }
0x14db   :  { %2406 = vmatpush1.msra.mxu1 %v4718_v5 }
0x14dc   :  { %2407 = vmatprep.subr.mxu1 %v4721_v7 }
0x14dd   :  { %2408 = vmatpush1.msra.mxu1 %v4724_v9 }
0x14de   :  { %2409 = vmatprep.subr.mxu1 %v4727_v12 }
0x14df   :  { %2410 = vmatpush1.msra.mxu1 %v4730_v15 }
0x14e0   :  { %2411 = vmatprep.subr.mxu1 %v4733_v16 }
0x14e1   :  { %2412 = vmatpush1.msra.mxu1 %v4736_v18 }
0x14e2   :  { %2413 = vmatprep.subr.mxu1 %v4739_v17 }
0x14e3   :  { %2414 = vmatpush1.msra.mxu1 %v4742_v21 }
0x14e4   :  { %2415 = vmatprep.subr.mxu1 %v4745_v19 }
0x14e5   :  { %2416 = vmatpush1.msra.mxu1 %v4748_v22 }
0x14e6   :  { %2417 = vmatprep.subr.mxu1 %v4779_v1 }
0x14e7   :  { %2418 = vmatpush1.msra.mxu1 %v4782_v60 }
0x14e8   :  { %2419 = vmatprep.subr.mxu1 %v4785_v62 }
0x14e9   :  { %2420 = vmatpush1.msra.mxu1 %v4788_v63 }
0x14ea   :  { %2421 = vmatprep.subr.mxu1 %v4791_v54 }
0x14eb   :  { %2422 = vmatpush1.msra.mxu1 %v4794_v24 }
0x14ec   :  { %2423 = vmatprep.subr.mxu1 %v4797_v4 }
0x14ed   :  { %2424 = vmatpush1.msra.mxu1 %v4799_v6 }
0x14ee   :  { %2710 = vmatprep.subr.mxu1 %v4681_v35 }
0x158e   :  { %v2142_v55 = vpop.f32.mrf.mxu1 }
0x158f   :  { %v2143_v35 = vadd.f32 %v2142_v55, %v2069_v57 }
0x1590   :  { %v2144_v0 = vpop.f32.mrf.mxu1 }
0x1591   :  { %v2145_v58 = vadd.f32 %v2144_v0, %v2073_v53  ;;  %v3185_v8 = vmul.f32 -1.442695, %v2143_v35 }
0x1593   :  { %2154 = vrot.lane.b32.xlu1 %v2145_v58, %s4003_s0  ;;  %3824 = vpow2.f32 %v3185_v8 }
0x1597   :  { %2176 = vrot.lane.b32.xlu1 %v2174_v56, %s4003_s0 }
0x15a0   :  { %v3825_v50 = vpop.eup %3824 }
0x15a1   :  { %v2150_v27 = vadd.f32 1.0, %v3825_v50 }
0x15a3   :  { %3826 = vrcp.f32 %v2150_v27  ;;  %v2173_v27 = vld [vmem:[#allocation2 + $0x30] sm:$0xff] }
0x15b0   :  { %v3827_v49 = vpop.eup %3826 }
0x15b1   :  { %v2160_v23 = vsub.f32 1.0, %v3827_v49  ;;  %v2166_v0 = vmul.f32 %v3827_v49, %v4852_v34 }
0x1605   :  { %v2155_v28 = vpop.permute.xlu1 %2154 }
0x1606   :  { %v2157_v29 = vmul.f32 %v3827_v49, %v2155_v28 }
0x1608   :  { %v2158_v30 = vadd.f32 %v2157_v29, %v2145_v58 }
0x1609   :  { %v2177_v31 = vpop.permute.xlu1 %2176 }
0x160a   :  { %3828 = vtanh.f32 %v2158_v30 }
0x1617   :  { %v3829_v33 = vpop.eup %3828 }
0x1618   :  { %2162 = vrot.lane.b32.xlu0 %v3829_v33, %s4003_s0 }
0x168a   :  { %v2163_v53 = vpop.permute.xlu0 %2162 }
0x168b   :  { %v2165_v32 = vmul.f32 %v2163_v53, %v2160_v23 }
0x168d   :  { %v4943_v55 = vadd.f32 %v2166_v0, %v2165_v32 }
0x168f   :  { %v2179_v57 = vmul.f32 %v2177_v31, %v4943_v55 }
0x1691   :  { %2196 = vrot.lane.b32.xlu0 %v2179_v57, %s4003_s0  ;;  %v2822_v57 = vld [vmem:[#allocation10 + $0x30] sm:$0xff] }
0x1703   :  { %v2197_v35 = vpop.permute.xlu0 %2196 }
0x1704   :  { %3665 = vmatmul.mubr.msk.f32.vlgmr.msra.gmra.mxu0 %vm263_vm2, %v2197_v35 }
0x1705   :  { %3668 = vmatpush3.msra.mxu0 %v4624_v10  ;;  %3683 = vmatprep.mubr.msk.f32.mxu0 %vm4002_vm0, %v5144_v48 }
0x1706   :  { %3669 = vmatprep.subr.mxu0 %v5144_v48 }
0x1707   :  { %3670 = vmatpush3.msra.mxu0 %v4626_v2 }
0x1708   :  { %3671 = vmatprep.subr.mxu0 %v5144_v48 }
0x1709   :  { %3672 = vmatpush3.msra.mxu0 %v4630_v11 }
0x170a   :  { %3673 = vmatprep.subr.mxu0 %v5144_v48 }
0x170b   :  { %3674 = vmatpush3.msra.mxu0 %v4634_v13 }
0x170c   :  { %3675 = vmatprep.subr.mxu0 %v5144_v48 }
0x170d   :  { %3676 = vmatpush3.msra.mxu0 %v4638_v51 }
0x170e   :  { %3677 = vmatprep.subr.mxu0 %v5144_v48 }
0x170f   :  { %3678 = vmatpush3.msra.mxu0 %v4643_v52 }
0x1710   :  { %3679 = vmatprep.subr.mxu0 %v5144_v48 }
0x1711   :  { %3680 = vmatpush3.msra.mxu0 %v4647_v25 }
0x1712   :  { %3681 = vmatprep.subr.mxu0 %v5144_v48 }
0x1713   :  { %3682 = vmatpush3.msra.mxu0 %v4651_v26 }
0x1714   :  { %3686 = vmatprep.subr.mxu0 %v5144_v48 }
0x17c4   :  { %v2266_v32 = vpop.f32.mrf.mxu0 }
0x17c5   :  { %v2267_v58 = vadd.f32 %v4756_v20, %v2266_v32 }
0x17c6   :  { %v3666_v8 = vpop.f32.mrf.mxu0 }
0x17c7   :  { %v2270_v50 = vmax.f32 %v2267_v58, 0.0 }
0x17c9   :  { %v2271_v49 = vadd.f32 %v2270_v50, %v2173_v27 }
0x17cb   :  { %v2272_v28 = vmul.f32 %v2271_v49, %v2174_v56  ;;  %v2821_v49 = vld [vmem:[#allocation10 + $0x28] sm:$0xff] }
0x17cd   :  { %3684 = vmatmul.mubr.msk.f32.vlgmr.msra.gmra.mxu0 %vm263_vm2, %v2272_v28  ;;  %v2820_v28 = vld [vmem:[#allocation10 + $0x20] sm:$0xff] }
0x17ce   :  { %3687 = vmatpush3.msra.mxu0 %v4624_v10  ;;  %3702 = vmatprep.mubr.msk.f32.mxu0 %vm4002_vm0, %v5144_v48 }
0x17cf   :  { %3688 = vmatprep.subr.mxu0 %v5144_v48 }
0x17d0   :  { %3689 = vmatpush3.msra.mxu0 %v4626_v2 }
0x17d1   :  { %3690 = vmatprep.subr.mxu0 %v5144_v48 }
0x17d2   :  { %3691 = vmatpush3.msra.mxu0 %v4630_v11 }
0x17d3   :  { %3692 = vmatprep.subr.mxu0 %v5144_v48 }
0x17d4   :  { %3693 = vmatpush3.msra.mxu0 %v4634_v13 }
0x17d5   :  { %3694 = vmatprep.subr.mxu0 %v5144_v48 }
0x17d6   :  { %3695 = vmatpush3.msra.mxu0 %v4638_v51 }
0x17d7   :  { %3696 = vmatprep.subr.mxu0 %v5144_v48 }
0x17d8   :  { %3697 = vmatpush3.msra.mxu0 %v4643_v52 }
0x17d9   :  { %3698 = vmatprep.subr.mxu0 %v5144_v48 }
0x17da   :  { %3699 = vmatpush3.msra.mxu0 %v4647_v25 }
0x17db   :  { %3700 = vmatprep.subr.mxu0 %v5144_v48 }
0x17dc   :  { %3701 = vmatpush3.msra.mxu0 %v4651_v26 }
0x17dd   :  { %3705 = vmatprep.subr.mxu0 %v5144_v48 }
0x188d   :  { %v2342_v56 = vpop.f32.mrf.mxu0 }
0x188e   :  { %v2343_v29 = vadd.f32 %v4756_v20, %v2342_v56 }
0x188f   :  { %v3685_v30 = vpop.f32.mrf.mxu0 }
0x1890   :  { %v2346_v33 = vmax.f32 %v2343_v29, 0.0  ;;  %v2818_v29 = vld [vmem:[#allocation10 + $0x10] sm:$0xff] }
0x1892   :  { %v2347_v23 = vadd.f32 %v2346_v33, %v2173_v27 }
0x1894   :  { %v2348_v53 = vsel %vm263_vm2, %v2347_v23, %v4943_v55  ;;  %v2817_v23 = vld [vmem:[#allocation10 + $0x8] sm:$0xff] }
0x1895   :  { %2458 = vmatmul.mubr.f32.vlgmr.msra.gmra.mxu1 %v2348_v53  ;;  %v2816_v53 = vld [vmem:[#allocation10] sm:$0xff] }
0x1896   :  { %2711 = vmatpush1.msra.mxu1 %v4683_v36  ;;  %2774 = vmatprep.mubr.f32.mxu1 %v5144_v48  ;;  %v2381_v36 = vld [vmem:[%s5131_s8] sm:$0x3] }
0x1897   :  { %2712 = vmatprep.subr.mxu1 %v4685_v37  ;;  %v2390_v37 = vrot.slane %v2381_v36, %v4383_v59 }
0x1898   :  { %2713 = vmatpush1.msra.mxu1 %v4688_v38 }
0x1899   :  { %2714 = vmatprep.subr.mxu1 %v4691_v39 }
0x189a   :  { %2715 = vmatpush1.msra.mxu1 %v4694_v40 }
0x189b   :  { %2716 = vmatprep.subr.mxu1 %v4697_v41  ;;  %v2491_v41 = vld [vmem:[%s5124_s1 + $0x38] sm:$0xff] }
0x189c   :  { %2717 = vmatpush1.msra.mxu1 %v4700_v42  ;;  %v2386_v42 = vrot.slane %v2381_v36, %v4390_v3 }
0x189d   :  { %2718 = vmatprep.subr.mxu1 %v4703_v43 }
0x189e   :  { %2719 = vmatpush1.msra.mxu1 %v4706_v44 }
0x189f   :  { %2720 = vmatprep.subr.mxu1 %v4709_v45 }
0x18a0   :  { %2721 = vmatpush1.msra.mxu1 %v4712_v47 }
0x18a1   :  { %2722 = vmatprep.subr.mxu1 %v4715_v14 }
0x18a2   :  { %2723 = vmatpush1.msra.mxu1 %v4718_v5 }
0x18a3   :  { %2724 = vmatprep.subr.mxu1 %v4721_v7 }
0x18a4   :  { %2725 = vmatpush1.msra.mxu1 %v4724_v9 }
0x18a5   :  { %2726 = vmatprep.subr.mxu1 %v4727_v12 }
0x18a6   :  { %2727 = vmatpush1.msra.mxu1 %v4730_v15 }
0x18a7   :  { %2728 = vmatprep.subr.mxu1 %v4733_v16 }
0x18a8   :  { %2729 = vmatpush1.msra.mxu1 %v4736_v18 }
0x18a9   :  { %2730 = vmatprep.subr.mxu1 %v4739_v17 }
0x18aa   :  { %2731 = vmatpush1.msra.mxu1 %v4742_v21 }
0x18ab   :  { %2732 = vmatprep.subr.mxu1 %v4745_v19 }
0x18ac   :  { %2733 = vmatpush1.msra.mxu1 %v4748_v22 }
0x18ad   :  { %2734 = vmatprep.subr.mxu1 %v4779_v1 }
0x18ae   :  { %2735 = vmatpush1.msra.mxu1 %v4782_v60  ;;  %v2490_v60 = vld [vmem:[#allocation2 + $0x38] sm:$0xff] }
0x18af   :  { %2736 = vmatprep.subr.mxu1 %v4785_v62 }
0x18b0   :  { %2737 = vmatpush1.msra.mxu1 %v4788_v63 }
0x18b1   :  { %2738 = vmatprep.subr.mxu1 %v4791_v54 }
0x18b2   :  { %2739 = vmatpush1.msra.mxu1 %v4794_v24 }
0x18b3   :  { %2740 = vmatprep.subr.mxu1 %v4797_v4 }
0x18b4   :  { %2741 = vmatpush1.msra.mxu1 %v4799_v6 }
0x1955   :  { %v2459_v38 = vpop.f32.mrf.mxu1 }
0x1956   :  { %v2460_v43 = vadd.f32 %v2459_v38, %v2386_v42  ;;  %v5145_v38 = vld [vmem:[#allocation21_spill] sm:$0xff]  ;;  %v2975_v42 = vld [vmem:[#allocation12 + $0x38] sm:$0xff] }
0x1957   :  { %v2461_v39 = vpop.f32.mrf.mxu1 }
0x1958   :  { %v2462_v40 = vadd.f32 %v2461_v39, %v2390_v37  ;;  %v3189_v44 = vmul.f32 -1.442695, %v2460_v43  ;;  %v5146_v39 = vld [vmem:[#allocation22_spill] sm:$0xff] }
0x195a   :  { %2471 = vrot.lane.b32.xlu1 %v2462_v40, %s4003_s0  ;;  %3830 = vpow2.f32 %v3189_v44 }
0x195e   :  { %2493 = vrot.lane.b32.xlu1 %v2491_v41, %s4003_s0 }
0x1967   :  { %v3831_v45 = vpop.eup %3830 }
0x1968   :  { %v2467_v47 = vadd.f32 1.0, %v3831_v45 }
0x196a   :  { %3832 = vrcp.f32 %v2467_v47 }
0x1977   :  { %v3833_v14 = vpop.eup %3832 }
0x1978   :  { %v2477_v15 = vsub.f32 1.0, %v3833_v14  ;;  %v2483_v18 = vmul.f32 %v3833_v14, %v4943_v55 }
0x19cc   :  { %v2472_v5 = vpop.permute.xlu1 %2471 }
0x19cd   :  { %v2474_v7 = vmul.f32 %v3833_v14, %v2472_v5 }
0x19cf   :  { %v2475_v9 = vadd.f32 %v2474_v7, %v2462_v40 }
0x19d0   :  { %v2494_v21 = vpop.permute.xlu1 %2493 }
0x19d1   :  { %3834 = vtanh.f32 %v2475_v9  ;;  %v2974_v9 = vld [vmem:[#allocation12 + $0x30] sm:$0xff] }
0x19de   :  { %v3835_v12 = vpop.eup %3834 }
0x19df   :  { %2479 = vrot.lane.b32.xlu0 %v3835_v12, %s4003_s0  ;;  %v2973_v12 = vld [vmem:[#allocation12 + $0x28] sm:$0xff] }
0x1a51   :  { %v2480_v16 = vpop.permute.xlu0 %2479 }
0x1a52   :  { %v2482_v17 = vmul.f32 %v2480_v16, %v2477_v15  ;;  %v2972_v16 = vld [vmem:[#allocation12 + $0x20] sm:$0xff] }
0x1a54   :  { %v5033_v19 = vadd.f32 %v2483_v18, %v2482_v17 }
0x1a56   :  { %v2496_v22 = vmul.f32 %v2494_v21, %v5033_v19 }
0x1a58   :  { %2513 = vrot.lane.b32.xlu0 %v2496_v22, %s4003_s0  ;;  %v2970_v22 = vld [vmem:[#allocation12 + $0x10] sm:$0xff] }
0x1aca   :  { %v2514_v1 = vpop.permute.xlu0 %2513 }
0x1acb   :  { %3703 = vmatmul.mubr.msk.f32.vlgmr.msra.gmra.mxu0 %vm263_vm2, %v2514_v1  ;;  %v2969_v1 = vld [vmem:[#allocation12 + $0x8] sm:$0xff] }
0x1acc   :  { %3706 = vmatpush3.msra.mxu0 %v4624_v10  ;;  %3721 = vmatprep.mubr.msk.f32.mxu0 %vm4002_vm0, %v5144_v48 }
0x1acd   :  { %3707 = vmatprep.subr.mxu0 %v5144_v48 }
0x1ace   :  { %3708 = vmatpush3.msra.mxu0 %v4626_v2 }
0x1acf   :  { %3709 = vmatprep.subr.mxu0 %v5144_v48 }
0x1ad0   :  { %3710 = vmatpush3.msra.mxu0 %v4630_v11 }
0x1ad1   :  { %3711 = vmatprep.subr.mxu0 %v5144_v48 }
0x1ad2   :  { %3712 = vmatpush3.msra.mxu0 %v4634_v13 }
0x1ad3   :  { %3713 = vmatprep.subr.mxu0 %v5144_v48 }
0x1ad4   :  { %3714 = vmatpush3.msra.mxu0 %v4638_v51 }
0x1ad5   :  { %3715 = vmatprep.subr.mxu0 %v5144_v48 }
0x1ad6   :  { %3716 = vmatpush3.msra.mxu0 %v4643_v52 }
0x1ad7   :  { %3717 = vmatprep.subr.mxu0 %v5144_v48 }
0x1ad8   :  { %3718 = vmatpush3.msra.mxu0 %v4647_v25 }
0x1ad9   :  { %3719 = vmatprep.subr.mxu0 %v5144_v48 }
0x1ada   :  { %3720 = vmatpush3.msra.mxu0 %v4651_v26  ;;  %v2698_v26 = vld [vmem:[%s5131_s8] sm:$0x3] }
0x1adb   :  { %v2707_v6 = vrot.slane %v2698_v26, %v4383_v59  ;;  %v2703_v59 = vrot.slane %v2698_v26, %v4390_v3  ;;  %v2819_v3 = vld [vmem:[#allocation10 + $0x18] sm:$0xff] }
0x1b8b   :  { %v2583_v10 = vpop.f32.mrf.mxu0 }
0x1b8c   :  { %v2584_v2 = vadd.f32 %v4756_v20, %v2583_v10  ;;  %v2968_v10 = vld [vmem:[#allocation12] sm:$0xff] }
0x1b8d   :  { %v3704_v11 = vpop.f32.mrf.mxu0 }
0x1b8e   :  { %v2587_v13 = vmax.f32 %v2584_v2, 0.0 }
0x1b90   :  { %v2588_v62 = vadd.f32 %v2587_v13, %v2490_v60  ;;  %v3194_v13 = vld [vmem:[%s5133_s10] ss:$0 sm:$0xff]  ;;  %s4004_s10 = smov [#allocation14]  }
0x1b91   :  { %s3138_s23 = sshll.u32 %s4004_s10, 4  ;;  %s3139_s23 = int_to_ptr.vmem [resolvable:$true] %s3138_s23 }
0x1b92   :  { %v2589_v51 = vmul.f32 %v2588_v62, %v2491_v41  ;;  %s3942_s24 = scalar_lea.vmem %s3139_s23, 128  ;;  %p3947_p12 = scmp.lt.s32.totalorder %s3139_s23, %s3139_s23 }
0x1b93   :  { %p3943_p11 = scmp.ne.s32.totalorder %s3139_s23, %s3942_s24  ;;  %p3948_p13 = scmp.lt.s32.totalorder %s3942_s24, %s3942_s24 }
0x1b94   :  { %3722 = vmatmul.mubr.msk.f32.vlgmr.msra.gmra.mxu0 %vm263_vm2, %v2589_v51 }
0x1b95   :  { %p3949_p0 = por %p3948_p13, %p3947_p12 }
0x1b97   :  { %p3950_p1 = pnand %p3949_p0, %p3943_p11 }
0x1c54   :  { %v2659_v63 = vpop.f32.mrf.mxu0 }
0x1c55   :  { %v2660_v52 = vadd.f32 %v4756_v20, %v2659_v63  ;;  %v2823_v20 = vld [vmem:[#allocation10 + $0x38] sm:$0xff] }
0x1c56   :  { %v3723_v54 = vpop.f32.mrf.mxu0  ;;  %3724 = vmatprep.subr.mxu0 %v2823_v20 }
0x1c57   :  { %v2663_v24 = vmax.f32 %v2660_v52, 0.0  ;;  %3725 = vmatpush3.msra.mxu0 %v2823_v20 }
0x1c58   :  { %3726 = vmatprep.subr.mxu0 %v2822_v57 }
0x1c59   :  { %v2664_v25 = vadd.f32 %v2663_v24, %v2490_v60  ;;  %3727 = vmatpush3.msra.mxu0 %v2822_v57 }
0x1c5a   :  { %3728 = vmatprep.subr.mxu0 %v2821_v49 }
0x1c5b   :  { %v2665_v4 = vsel %vm263_vm2, %v2664_v25, %v5033_v19  ;;  %3729 = vmatpush3.msra.mxu0 %v2821_v49 }
0x1c5c   :  { %2775 = vmatmul.mubr.f32.vlgmr.msra.gmra.mxu1 %v2665_v4  ;;  %3730 = vmatprep.subr.mxu0 %v2820_v28 }
0x1c5d   :  { %3731 = vmatpush3.msra.mxu0 %v2820_v28 }
0x1c5e   :  { %3732 = vmatprep.subr.mxu0 %v2819_v3 }
0x1c5f   :  { %3733 = vmatpush3.msra.mxu0 %v2819_v3 }
0x1c60   :  { %3734 = vmatprep.subr.mxu0 %v2818_v29 }
0x1c61   :  { %3735 = vmatpush3.msra.mxu0 %v2818_v29 }
0x1c62   :  { %3736 = vmatprep.subr.mxu0 %v2817_v23 }
0x1c63   :  { %3737 = vmatpush3.msra.mxu0 %v2817_v23 }
0x1c64   :  { %3738 = vmatprep.subr.mxu0 %v2816_v53 }
0x1c65   :  { %3739 = vmatpush3.msra.mxu0 %v2816_v53 }
0x1c66   :  { %3752 = vmatprep.subr.mxu0 %v2975_v42 }
0x1d1c   :  { %v2776_v48 = vpop.f32.mrf.mxu1 }
0x1d1d   :  { %v2777_v35 = vadd.f32 %v2776_v48, %v2703_v59 }
0x1d1e   :  { %v2778_v0 = vpop.f32.mrf.mxu1 }
0x1d1f   :  { %v2779_v31 = vadd.f32 %v2778_v0, %v2707_v6  ;;  %v3193_v32 = vmul.f32 -1.442695, %v2777_v35 }
0x1d21   :  { %2788 = vrot.lane.b32.xlu1 %v2779_v31, %s4003_s0  ;;  %3836 = vpow2.f32 %v3193_v32 }
0x1d25   :  { %584 = vrot.lane.b32.xlu1 %v4399_v61, %s4003_s0 }
0x1d29   :  { %1218 = vrot.lane.b32.xlu1 %v4580_v46, %s4003_s0 }
0x1d2d   :  { %1852 = vrot.lane.b32.xlu1 %v4852_v34, %s4003_s0 }
0x1d2e   :  { %v3837_v61 = vpop.eup %3836 }
0x1d2f   :  { %v2784_v58 = vadd.f32 1.0, %v3837_v61 }
0x1d31   :  { %2486 = vrot.lane.b32.xlu1 %v5033_v19, %s4003_s0  ;;  %3838 = vrcp.f32 %v2784_v58 }
0x1d3e   :  { %v3839_v46 = vpop.eup %3838 }
0x1d3f   :  { %v2794_v40 = vsub.f32 1.0, %v3839_v46  ;;  %v2800_v43 = vmul.f32 %v3839_v46, %v5033_v19  ;;  %v2971_v19 = vld [vmem:[#allocation12 + $0x18] sm:$0xff] }
0x1d93   :  { %v2789_v8 = vpop.permute.xlu1 %2788 }
0x1d94   :  { %v2791_v34 = vmul.f32 %v3839_v46, %v2789_v8 }
0x1d96   :  { %v2792_v50 = vadd.f32 %v2791_v34, %v2779_v31 }
0x1d97   :  { %v585_v27 = vpop.permute.xlu1 %584 }
0x1d98   :  { %3840 = vtanh.f32 %v2792_v50  ;;  %587 = vst.msk [vmem:[#allocation3] sm:$0xff] %vm263_vm2, %v585_v27 }
0x1d9b   :  { %v1219_v56 = vpop.permute.xlu1 %1218 }
0x1d9c   :  { %1221 = vst.msk [vmem:[#allocation3 + $0x10] sm:$0xff] %vm263_vm2, %v1219_v56 }
0x1d9f   :  { %v1853_v30 = vpop.permute.xlu1 %1852  ;;  %v2808_v33 = vld [vmem:[#allocation3] sm:$0xff] }
0x1da0   :  { %1855 = vst.msk [vmem:[#allocation3 + $0x20] sm:$0xff] %vm263_vm2, %v1853_v30  ;;  %3740 = vmatprep.mubr.msk.f32.mxu0 %vm263_vm2, %v2808_v33 }
0x1da3   :  { %v2487_v36 = vpop.permute.xlu1 %2486 }
0x1da4   :  { %2489 = vst.msk [vmem:[#allocation3 + $0x30] sm:$0xff] %vm263_vm2, %v2487_v36 }
0x1da5   :  { %v3841_v37 = vpop.eup %3840 }
0x1da6   :  { %2796 = vrot.lane.b32.xlu0 %v3841_v37, %s4003_s0 }
0x1da7   :  { %v2812_v18 = vld [vmem:[#allocation3 + $0x20] sm:$0xff] }
0x1daa   :  { %901 = vrot.lane.b32.xlu0 %v5145_v38, %s4003_s0 }
0x1dab   :  { %v2814_v21 = vld [vmem:[#allocation3 + $0x30] sm:$0xff] }
0x1dae   :  { %1535 = vrot.lane.b32.xlu0 %v5146_v39, %s4003_s0 }
0x1db2   :  { %2169 = vrot.lane.b32.xlu0 %v4943_v55, %s4003_s0  ;;  %v2810_v55 = vld [vmem:[#allocation3 + $0x10] sm:$0xff] }
0x1e18   :  { %v2797_v41 = vpop.permute.xlu0 %2796 }
0x1e19   :  { %v2799_v44 = vmul.f32 %v2797_v41, %v2794_v40 }
0x1e1b   :  { %v2801_v45 = vadd.f32 %v2800_v43, %v2799_v44 }
0x1e1c   :  { %v902_v47 = vpop.permute.xlu0 %901 }
0x1e1d   :  { %904 = vst.msk [vmem:[#allocation3 + $0x8] sm:$0xff] %vm263_vm2, %v902_v47  ;;  %2803 = vrot.lane.b32.xlu0 %v2801_v45, %s4003_s0 }
0x1e20   :  { %v1536_v14 = vpop.permute.xlu0 %1535 }
0x1e21   :  { %1538 = vst.msk [vmem:[#allocation3 + $0x18] sm:$0xff] %vm263_vm2, %v1536_v14 }
0x1e24   :  { %v2170_v5 = vpop.permute.xlu0 %2169  ;;  %v2809_v7 = vld [vmem:[#allocation3 + $0x8] sm:$0xff] }
0x1e25   :  { %2172 = vst.msk [vmem:[#allocation3 + $0x28] sm:$0xff] %vm263_vm2, %v2170_v5  ;;  %3741 = vmatmul.mubr.msk.f32.vlgmr.msra.gmra.mxu0 %vm263_vm2, %v2809_v7 }
0x1e26   :  { %3743 = vmatprep.mubr.msk.f32.mxu0 %vm263_vm2, %v2810_v55  ;;  %3753 = vmatpush3.msra.mxu0 %v2975_v42 }
0x1e27   :  { %3754 = vmatprep.subr.mxu0 %v2974_v9 }
0x1e28   :  { %v2811_v15 = vld [vmem:[#allocation3 + $0x18] sm:$0xff]  ;;  %3755 = vmatpush3.msra.mxu0 %v2974_v9 }
0x1e29   :  { %3744 = vmatmul.mubr.msk.f32.gmra.mxu0 %vm263_vm2, %v2811_v15  ;;  %3756 = vmatprep.subr.mxu0 %v2973_v12 }
0x1e2a   :  { %3746 = vmatprep.mubr.msk.f32.mxu0 %vm263_vm2, %v2812_v18  ;;  %3757 = vmatpush3.msra.mxu0 %v2973_v12 }
0x1e2b   :  { %3758 = vmatprep.subr.mxu0 %v2972_v16 }
0x1e2c   :  { %v2813_v17 = vld [vmem:[#allocation3 + $0x28] sm:$0xff]  ;;  %3759 = vmatpush3.msra.mxu0 %v2972_v16 }
0x1e2d   :  { %3747 = vmatmul.mubr.msk.f32.gmra.mxu0 %vm263_vm2, %v2813_v17  ;;  %3760 = vmatprep.subr.mxu0 %v2971_v19 }
0x1e2e   :  { %3749 = vmatprep.mubr.msk.f32.mxu0 %vm263_vm2, %v2814_v21  ;;  %3761 = vmatpush3.msra.mxu0 %v2971_v19 }
0x1e2f   :  { %3762 = vmatprep.subr.mxu0 %v2970_v22 }
0x1e30   :  { %3763 = vmatpush3.msra.mxu0 %v2970_v22 }
0x1e31   :  { %3764 = vmatprep.subr.mxu0 %v2969_v1 }
0x1e32   :  { %3765 = vmatpush3.msra.mxu0 %v2969_v1 }
0x1e33   :  { %3766 = vmatprep.subr.mxu0 %v2968_v10 }
0x1e34   :  { %3767 = vmatpush3.msra.mxu0 %v2968_v10 }
0x1e8f   :  { %v2804_v2 = vpop.permute.xlu0 %2803 }
0x1e90   :  { %2806 = vst.msk [vmem:[#allocation3 + $0x38] sm:$0xff] %vm263_vm2, %v2804_v2  ;;  %2807 = vst.msk [vmem:[#allocation14] sm:$0xff] %vm263_vm2, %v2804_v2 }
0x1e97   :  { %v2815_v11 = vld [vmem:[#allocation3 + $0x38] sm:$0xff] }
0x1e98   :  { %3750 = vmatmul.mubr.msk.f32.gmra.mxu0 %vm263_vm2, %v2815_v11 }
0x1ee5   :  { %v3742_v60 = vpop.f32.mrf.mxu0 }
0x1ee6   :  { %v2927_v62 = vadd.f32 %v3742_v60, %v3194_v13 }
0x1ee7   :  { %v2921_v51 = vpop.f32.mrf.mxu0 }
0x1ee8   :  { %v2922_v63 = vadd.f32 %v3194_v13, %v2921_v51  ;;  %v2961_v24 = vmax.f32 %v2927_v62, 0.0 }
0x1ee9   :  { %v3745_v52 = vpop.f32.mrf.mxu0 }
0x1eea   :  { %v2960_v54 = vmax.f32 %v2922_v63, 0.0  ;;  %v2937_v25 = vadd.f32 %v3745_v52, %v3194_v13 }
0x1eeb   :  { %v2931_v4 = vpop.f32.mrf.mxu0 }
0x1eec   :  { %v2932_v26 = vadd.f32 %v3194_v13, %v2931_v4  ;;  %3768 = vmatprep.mubr.msk.f32.mxu0 %vm263_vm2, %v2960_v54  ;;  %v2963_v0 = vmax.f32 %v2937_v25, 0.0 }
0x1eed   :  { %v3748_v6 = vpop.f32.mrf.mxu0  ;;  %3769 = vmatmul.mubr.msk.f32.vlgmr.msra.gmra.mxu0 %vm263_vm2, %v2961_v24 }
0x1eee   :  { %v2962_v48 = vmax.f32 %v2932_v26, 0.0  ;;  %v2947_v31 = vadd.f32 %v3748_v6, %v3194_v13 }
0x1eef   :  { %v2941_v20 = vpop.f32.mrf.mxu0 }
0x1ef0   :  { %v2942_v57 = vadd.f32 %v3194_v13, %v2941_v20  ;;  %3771 = vmatprep.mubr.msk.f32.mxu0 %vm263_vm2, %v2962_v48  ;;  %v2965_v35 = vmax.f32 %v2947_v31, 0.0 }
0x1ef1   :  { %3772 = vmatmul.mubr.msk.f32.gmra.mxu0 %vm263_vm2, %v2963_v0 }
0x1ef2   :  { %v2964_v59 = vmax.f32 %v2942_v57, 0.0 }
0x1ef4   :  { %3774 = vmatprep.mubr.msk.f32.mxu0 %vm263_vm2, %v2964_v59 }
0x1ef5   :  { %3775 = vmatmul.mubr.msk.f32.gmra.mxu0 %vm263_vm2, %v2965_v35 }
0x1f58   :  { %v3751_v32 = vpop.f32.mrf.mxu0 }
0x1f59   :  { %v2957_v61 = vadd.f32 %v3751_v32, %v3194_v13 }
0x1f5a   :  { %v2951_v58 = vpop.f32.mrf.mxu0 }
0x1f5b   :  { %v2952_v46 = vadd.f32 %v3194_v13, %v2951_v58  ;;  %v2967_v34 = vmax.f32 %v2957_v61, 0.0 }
0x1f5d   :  { %v2966_v8 = vmax.f32 %v2952_v46, 0.0 }
0x1f5f   :  { %3777 = vmatprep.mubr.msk.f32.mxu0 %vm263_vm2, %v2966_v8 }
0x1f60   :  { %3778 = vmatmul.mubr.msk.f32.gmra.mxu0 %vm263_vm2, %v2967_v34 }
0x1f61   :  { %3953 = shalt.err (!%p3950_p1)
}
0x1f62   :  { %3141 = dma.vmem_to_hbm [thread:$0]  %s3139_s23, 128, %s5137_s14, [#allocation15]   ;;  %v3203_v50 = vld [vmem:[%s5135_s12] ss:$0 sm:$0xff] }
0x1f63   :  { %s4005_s12 = smov [#allocation13]  }
0x1f64   :  { %s3125_s14 = sshll.u32 %s4005_s12, 4  ;;  %s3126_s14 = int_to_ptr.vmem [resolvable:$true] %s3125_s14 }
0x1f65   :  { %s3962_s5 = scalar_lea.vmem %s3126_s14, 1024  ;;  %p3967_p3 = scmp.lt.s32.totalorder %s3126_s14, %s3126_s14 }
0x1f66   :  { %p3963_p2 = scmp.ne.s32.totalorder %s3126_s14, %s3962_s5  ;;  %p3968_p4 = scmp.lt.s32.totalorder %s3962_s5, %s3962_s5 }
0x1f68   :  { %p3969_p5 = por %p3968_p4, %p3967_p3 }
0x1f6a   :  { %p3970_p6 = pnand %p3969_p5, %p3963_p2 }
0x1fad   :  { %v3770_v27 = vpop.f32.mrf.mxu0 }
0x1fae   :  { %v3079_v49 = vadd.f32 %v3770_v27, %v3203_v50 }
0x1faf   :  { %v3073_v28 = vpop.f32.mrf.mxu0 }
0x1fb0   :  { %3113 = vst [vmem:[#allocation13 + $0x8] sm:$0xff] %v3079_v49  ;;  %v3074_v56 = vadd.f32 %v3203_v50, %v3073_v28 }
0x1fb1   :  { %v3773_v3 = vpop.f32.mrf.mxu0 }
0x1fb2   :  { %3112 = vst [vmem:[#allocation13] sm:$0xff] %v3074_v56  ;;  %v3089_v29 = vadd.f32 %v3773_v3, %v3203_v50 }
0x1fb3   :  { %v3083_v30 = vpop.f32.mrf.mxu0 }
0x1fb4   :  { %3115 = vst [vmem:[#allocation13 + $0x18] sm:$0xff] %v3089_v29  ;;  %v3084_v33 = vadd.f32 %v3203_v50, %v3083_v30 }
0x1fb5   :  { %v3776_v23 = vpop.f32.mrf.mxu0 }
0x1fb6   :  { %3114 = vst [vmem:[#allocation13 + $0x10] sm:$0xff] %v3084_v33  ;;  %v3099_v53 = vadd.f32 %v3776_v23, %v3203_v50 }
0x1fb7   :  { %v3093_v36 = vpop.f32.mrf.mxu0 }
0x1fb8   :  { %3117 = vst [vmem:[#allocation13 + $0x28] sm:$0xff] %v3099_v53  ;;  %v3094_v37 = vadd.f32 %v3203_v50, %v3093_v36 }
0x1fba   :  { %3116 = vst [vmem:[#allocation13 + $0x20] sm:$0xff] %v3094_v37 }
0x2020   :  { %v3779_v38 = vpop.f32.mrf.mxu0 }
0x2021   :  { %v3109_v39 = vadd.f32 %v3779_v38, %v3203_v50 }
0x2022   :  { %v3103_v40 = vpop.f32.mrf.mxu0 }
0x2023   :  { %3119 = vst [vmem:[#allocation13 + $0x38] sm:$0xff] %v3109_v39  ;;  %v3104_v41 = vadd.f32 %v3203_v50, %v3103_v40 }
0x2025   :  { %3118 = vst [vmem:[#allocation13 + $0x30] sm:$0xff] %v3104_v41 }
0x2026   :  { %3973 = shalt.err (!%p3970_p6)
}
0x2027   :  { %3131 = dma.vmem_to_hbm [thread:$0]  %s3126_s14, 1024, %s5136_s13, [#allocation6], %s3993_s16, %s3993_s16, %s3994_s17  }
0x2028   :  { %3988 = dma.done.wait [#allocation6], 1024  }
0x2029   :  { %3989 = vsyncadd [#allocation6], 4294966272 }
0x202a   :  { %3990 = dma.done.wait [#allocation15], 128  }
0x202b   :  { %3991 = vsyncadd [#allocation15], 4294967168 }
0x202c   :  { %3148 = vsyncpa [#allocation5], 1 }
0x202d   :  { %3149 = vsyncpa [#allocation8], 1 }
0x202e   :  { %3150 = vsyncpa [#allocation11], 1 }
0x202f   :  { %3151 = vsyncpa [#allocation6], 1 }
0x2030   :  { %3152 = vsyncpa [#allocation15], 1 }

</bundles_post_ra>
